<compile_context>
chip_gen: v5e
topology: v5e:2x2
jax: 0.10.0
libtpu: 0.0.40
codegen_flags: <defaults>
</compile_context>

<pallas_src>
import jax
import jax.numpy as jnp
from jax.experimental import pallas as pl
from jax.experimental.pallas import tpu as pltpu


# ----------------------------- small helpers --------------------------------

def _vmem_spec(shape):
    """Single full-array VMEM block (everything here is tiny)."""
    nd = len(shape)
    return pl.BlockSpec(shape, lambda i, _nd=nd: (0,) * _nd)


def _leaky(x):
    return jnp.where(x > 0, x, 0.01 * x)


def _bn_lrelu(x, gamma, beta):
    """BatchNorm2d (train mode: biased batch stats over all rows) + LeakyReLU."""
    mean = jnp.mean(x, axis=0, keepdims=True)
    var = jnp.mean((x - mean) * (x - mean), axis=0, keepdims=True)
    y = (x - mean) * jax.lax.rsqrt(var + 1e-5) * gamma + beta
    return _leaky(y)


def _zero_pad_borders(p_ref, n):
    """p_ref: (4, hh+1, (wh+1)*n, C) phase-split padded buffer.  The scatter
    fills rows [pi, pi+hh) and column-blocks [pj, pj+wh) of every phase; only
    the single remaining pad row / pad column-block needs zeroing."""
    _, hp, wpn, c = p_ref.shape
    hh, wh = hp - 1, wpn // n - 1
    for ph in range(2):
        for pw in range(2):
            phase = ph * 2 + pw
            pi, pj = 1 - ph, 1 - pw
            ur = hh if pi == 0 else 0            # un-scattered pad row
            uv = wh if pj == 0 else 0            # un-scattered pad column block
            p_ref[phase, ur, :, :] = jnp.zeros((wpn, c), jnp.float32)
            p_ref[phase, :, uv * n:(uv + 1) * n, :] = jnp.zeros((hp, n, c), jnp.float32)


def _scatter_phases(y, p_ref, ho, wo, n):
    """y: (ho*wo*n, C) conv output, rows ordered (i, j, sample).
    p_ref: (4, ho//2+1, (wo//2+1)*n, C) phase-split padded buffer for the next
    stride-2/pad-1 conv:
        p_ref[ph*2+pw, u, v*n+s, c] == pad(y_spatial, 1)[2u+ph, 2v+pw, s, c].
    Row-parity split is a free leading-dim reshape; only the column-parity
    de-interleave touches sub-tile sublane groups (clean once 2n >= 8)."""
    C = y.shape[-1]
    hh, wh = ho // 2, wo // 2
    y4 = y.reshape(hh, 2, wo * n, C)                      # rows -> (q, i-parity)
    for pi in range(2):
        rows = y4[:, pi]                                  # (hh, wo*n, C), i = 2q+pi
        grp = rows.reshape(hh, wh, 2 * n, C)              # cols -> (b, (j-parity, s))
        for pj in range(2):
            blk = grp[:, :, pj * n:(pj + 1) * n, :]       # j = 2b+pj
            blk = blk.reshape(hh, wh * n, C)
            phase = (1 - pi) * 2 + (1 - pj)
            p_ref[phase, pi:pi + hh, pj * n:(pj + wh) * n, :] = blk


def _im2col(p_ref, ho, wo, n):
    """Gather the 9 stride-2/pad-1 conv taps from the phase-split buffer and
    lane-concatenate them into a single (ho*wo*n, 9*Cin) bf16 MXU LHS."""
    cin = p_ref.shape[-1]
    m = ho * wo * n
    taps = []
    for kh in range(3):
        for kw in range(3):
            phase = (kh % 2) * 2 + (kw % 2)
            dh, dw = kh // 2, kw // 2
            t = p_ref[phase, dh:dh + ho, dw * n:(dw + wo) * n, :]   # (ho, wo*n, cin)
            taps.append(t.reshape(m, cin))
    return jnp.concatenate(taps, axis=1).astype(jnp.bfloat16)


# ----------------------------- fused kernel ---------------------------------

def _disc_kernel(x1_ref, w1_ref, b1_ref,
                 w2_ref, b2_ref, g2_ref, be2_ref,
                 w3_ref, b3_ref, g3_ref, be3_ref,
                 wfc_ref, bfc_ref,
                 o_ref,
                 p2_ref, p3_ref):
    n = o_ref.shape[0]                          # batch size

    # zero only the 1-element pad borders of the phase-split scratch buffers
    _zero_pad_borders(p2_ref, n)
    _zero_pad_borders(p3_ref, n)

    # ---- block 1: conv 1->32 as one (256N, 9) x (9, 32) matmul + LeakyReLU ----
    y1 = jnp.dot(x1_ref[...], w1_ref[...], preferred_element_type=jnp.float32)
    y1 = _leaky(y1 + b1_ref[...])               # (256N, 32), rows ordered (i, j, n)
    _scatter_phases(y1, p2_ref, 16, 16, n)

    # ---- block 2: conv 32->64, ONE bf16 MXU dot (K=288) + BatchNorm + LeakyReLU ----
    lhs2 = _im2col(p2_ref, 8, 8, n)                                   # (64N, 288)
    y2 = jnp.dot(lhs2, w2_ref[...], preferred_element_type=jnp.float32)
    y2 = _bn_lrelu(y2 + b2_ref[...], g2_ref[...], be2_ref[...])       # (64N, 64)
    _scatter_phases(y2, p3_ref, 8, 8, n)

    # ---- block 3: conv 64->128, ONE bf16 MXU dot (K=576) + BatchNorm + LeakyReLU ----
    lhs3 = _im2col(p3_ref, 4, 4, n)                                   # (16N, 576)
    y3 = jnp.dot(lhs3, w3_ref[...], preferred_element_type=jnp.float32)
    y3 = _bn_lrelu(y3 + b3_ref[...], g3_ref[...], be3_ref[...])       # (16N, 128)

    # ---- fc 2048->1 + sigmoid (reshape + reduce; weight pre-permuted to the
    #      kernel's (spatial, channel) order -> no transpose, no selector) ----
    e = y3.reshape(16, n, 128) * wfc_ref[...][:, None, :]             # (16, N, 128)
    logits = jnp.sum(jnp.sum(e, axis=0), axis=1, keepdims=True) + bfc_ref[0, 0]
    o_ref[...] = jax.nn.sigmoid(logits)


# ----------------------------- wrapper ---------------------------------------

def _conv1_im2col(x_nchw):
    """(N,1,32,32) -> (16*16*N, 9) f32 im2col for conv1 (stride 2, pad 1).
    Rows ordered (i, j, sample), columns ordered kh*3+kw.  Cin=1 so this is
    only 9x the input size; building it as input prep removes all conv1
    layout gymnastics from the kernel."""
    N = x_nchw.shape[0]
    x = x_nchw.reshape(N, 32, 32).astype(jnp.float32)
    xp = jnp.pad(x, ((0, 0), (1, 1), (1, 1)))                     # (N, 34, 34)
    taps = [xp[:, kh:kh + 31:2, kw:kw + 31:2]                     # (N, 16, 16)
            for kh in range(3) for kw in range(3)]
    c = jnp.stack(taps, axis=-1)                                   # (N, 16, 16, 9)
    return jnp.transpose(c, (1, 2, 0, 3)).reshape(N * 256, 9)      # rows (i, j, n)


def discriminator_forward(x_nchw, params):
    N = x_nchw.shape[0]
    x1 = _conv1_im2col(x_nchw)

    args = (x1, params["w1"], params["b1"],
            params["w2"], params["b2"], params["g2"], params["be2"],
            params["w3"], params["b3"], params["g3"], params["be3"],
            params["wfc"], params["bfc"])

    in_specs = [_vmem_spec(a.shape) for a in args[:-1]]
    in_specs.append(pl.BlockSpec(memory_space=pltpu.MemorySpace.SMEM))  # (1,1) fc bias

    return pl.pallas_call(
        _disc_kernel,
        grid=(1,),
        in_specs=in_specs,
        out_specs=_vmem_spec((N, 1)),
        out_shape=jax.ShapeDtypeStruct((N, 1), jnp.float32),
        scratch_shapes=[
            pltpu.VMEM((4, 9, 9 * N, 32), jnp.float32),   # conv2 input (phase-split + pad)
            pltpu.VMEM((4, 5, 5 * N, 64), jnp.float32),   # conv3 input (phase-split + pad)
        ],
        compiler_params=pltpu.CompilerParams(
            dimension_semantics=("arbitrary",),
            vmem_limit_bytes=32 * 1024 * 1024,
        ),
    )(*args)


# ----------------------------- param init ------------------------------------

def init_params(key):
    ks = jax.random.split(key, 12)

    def conv_w(k, cin, cout, dtype):
        # PyTorch layout (Cout, Cin, 3, 3) -> K-concatenated (9*Cin, Cout),
        # row index = (kh*3 + kw) * Cin + cin (matches the kernel's im2col).
        w = 0.1 * jax.random.normal(k, (cout, cin, 3, 3), jnp.float32)
        w = jnp.transpose(w, (2, 3, 1, 0)).reshape(9 * cin, cout)
        return w.astype(dtype)

    # PyTorch Linear weight (1, 2048) over NCHW features f = c*16 + (i*4 + j);
    # pre-permute once to (spatial=16, channel=128) matching the kernel's y3
    # (rows ordered (i, j, n), lanes = channel).
    wfc_pt = 0.02 * jax.random.normal(ks[10], (1, 2048), jnp.float32)
    wfc = jnp.transpose(wfc_pt.reshape(128, 16), (1, 0))          # (16, 128)

    return {
        "w1": conv_w(ks[0], 1, 32, jnp.float32),       # (9, 32), K=9 stays f32
        "b1": 0.1 * jax.random.normal(ks[1], (1, 32), jnp.float32),
        "w2": conv_w(ks[2], 32, 64, jnp.bfloat16),     # (288, 64) bf16 MXU operand
        "b2": 0.1 * jax.random.normal(ks[3], (1, 64), jnp.float32),
        "g2": 1.0 + 0.1 * jax.random.normal(ks[4], (1, 64), jnp.float32),
        "be2": 0.1 * jax.random.normal(ks[5], (1, 64), jnp.float32),
        "w3": conv_w(ks[6], 64, 128, jnp.bfloat16),    # (576, 128) bf16 MXU operand
        "b3": 0.1 * jax.random.normal(ks[7], (1, 128), jnp.float32),
        "g3": 1.0 + 0.1 * jax.random.normal(ks[8], (1, 128), jnp.float32),
        "be3": 0.1 * jax.random.normal(ks[9], (1, 128), jnp.float32),
        "wfc": wfc,
        "bfc": 0.1 * jax.random.normal(ks[11], (1, 1), jnp.float32),
    }


# ----------------------------- pure-JAX reference ----------------------------

def reference_forward(x_nchw, params):
    """Plain XLA f32 reference of the PyTorch module forward (same params)."""
    x = x_nchw.astype(jnp.float32)

    def conv(x, w_cat, b):
        cout = w_cat.shape[1]
        cin = w_cat.shape[0] // 9
        w = w_cat.astype(jnp.float32).reshape(3, 3, cin, cout)
        w = jnp.transpose(w, (3, 2, 0, 1))                        # OIHW
        y = jax.lax.conv_general_dilated(
            x, w, window_strides=(2, 2), padding=((1, 1), (1, 1)),
            dimension_numbers=("NCHW", "OIHW", "NCHW"))
        return y + b.reshape(1, cout, 1, 1)

    def bn(y, gamma, beta):
        mean = jnp.mean(y, axis=(0, 2, 3), keepdims=True)
        var = jnp.mean((y - mean) ** 2, axis=(0, 2, 3), keepdims=True)
        yn = (y - mean) * jax.lax.rsqrt(var + 1e-5)
        return yn * gamma.reshape(1, -1, 1, 1) + beta.reshape(1, -1, 1, 1)

    def lrelu(y):
        return jnp.where(y > 0, y, 0.01 * y)

    y = lrelu(conv(x, params["w1"], params["b1"]))
    y = lrelu(bn(conv(y, params["w2"], params["b2"]), params["g2"], params["be2"]))
    y = lrelu(bn(conv(y, params["w3"], params["b3"]), params["g3"], params["be3"]))
    flat = y.reshape(y.shape[0], -1)                              # NCHW view(-1, 2048)
    wfc = jnp.transpose(params["wfc"], (1, 0)).reshape(1, 2048)
    logits = flat @ wfc.T + params["bfc"]
    return jax.nn.sigmoid(logits)


if __name__ == "__main__":
    key = jax.random.PRNGKey(0)
    k_param, k_x = jax.random.split(key)
    params = init_params(k_param)

    # Linear(2048,1) <=> 128*4*4 after three stride-2 convs <=> (N,1,32,32) input
    x = jax.random.normal(k_x, (2, 1, 32, 32), jnp.float32)

    out = jax.block_until_ready(jax.jit(discriminator_forward)(x, params))
    assert out.shape == (2, 1)
    assert bool(jnp.all((out >= 0.0) & (out <= 1.0)))

    # cross-check against the pure-JAX f32 reference (conv2/conv3 use bf16 MXU
    # operands with f32 accumulation -> loose tolerance)
    ref = jax.block_until_ready(jax.jit(reference_forward)(x, params))
    assert bool(jnp.all(jnp.abs(out - ref) < 5e-2))

    print("KERNEL_OK")
</pallas_src>

<mosaic_0001>
module attributes {stable_mosaic.version = 11 : i64} {
  func.func @_disc_kernel(%arg0: i32, %arg1: memref<512x9xf32, #tpu.memory_space<vmem>>, %arg2: memref<9x32xf32, #tpu.memory_space<vmem>>, %arg3: memref<1x32xf32, #tpu.memory_space<vmem>>, %arg4: memref<288x64xbf16, #tpu.memory_space<vmem>>, %arg5: memref<1x64xf32, #tpu.memory_space<vmem>>, %arg6: memref<1x64xf32, #tpu.memory_space<vmem>>, %arg7: memref<1x64xf32, #tpu.memory_space<vmem>>, %arg8: memref<576x128xbf16, #tpu.memory_space<vmem>>, %arg9: memref<1x128xf32, #tpu.memory_space<vmem>>, %arg10: memref<1x128xf32, #tpu.memory_space<vmem>>, %arg11: memref<1x128xf32, #tpu.memory_space<vmem>>, %arg12: memref<16x128xf32, #tpu.memory_space<vmem>>, %arg13: memref<1x1xf32, #tpu.memory_space<smem>>, %arg14: memref<2x1xf32, #tpu.memory_space<vmem>>, %arg15: memref<4x9x18x32xf32, #tpu.memory_space<vmem>>, %arg16: memref<4x5x10x64xf32, #tpu.memory_space<vmem>>) attributes {dimension_semantics = [#tpu.dimension_semantics<arbitrary>], iteration_bounds = array<i64: 1>, scalar_prefetch = 0 : i64, scratch_operands = 2 : i64, tpu.core_type = #tpu.core_type<tc>, window_params = [{pipeline_mode = #tpu.pipeline_mode<synchronous>, transform_indices = @transform_0, window_bounds = array<i64: 512, 9>}, {pipeline_mode = #tpu.pipeline_mode<synchronous>, transform_indices = @transform_1, window_bounds = array<i64: 9, 32>}, {pipeline_mode = #tpu.pipeline_mode<synchronous>, transform_indices = @transform_2, window_bounds = array<i64: 1, 32>}, {pipeline_mode = #tpu.pipeline_mode<synchronous>, transform_indices = @transform_3, window_bounds = array<i64: 288, 64>}, {pipeline_mode = #tpu.pipeline_mode<synchronous>, transform_indices = @transform_4, window_bounds = array<i64: 1, 64>}, {pipeline_mode = #tpu.pipeline_mode<synchronous>, transform_indices = @transform_5, window_bounds = array<i64: 1, 64>}, {pipeline_mode = #tpu.pipeline_mode<synchronous>, transform_indices = @transform_6, window_bounds = array<i64: 1, 64>}, {pipeline_mode = #tpu.pipeline_mode<synchronous>, transform_indices = @transform_7, window_bounds = array<i64: 576, 128>}, {pipeline_mode = #tpu.pipeline_mode<synchronous>, transform_indices = @transform_8, window_bounds = array<i64: 1, 128>}, {pipeline_mode = #tpu.pipeline_mode<synchronous>, transform_indices = @transform_9, window_bounds = array<i64: 1, 128>}, {pipeline_mode = #tpu.pipeline_mode<synchronous>, transform_indices = @transform_10, window_bounds = array<i64: 1, 128>}, {pipeline_mode = #tpu.pipeline_mode<synchronous>, transform_indices = @transform_11, window_bounds = array<i64: 16, 128>}, {transform_indices = @transform_12, window_bounds = array<i64: 1, 1>}, {pipeline_mode = #tpu.pipeline_mode<synchronous>, transform_indices = @transform_13, window_bounds = array<i64: 2, 1>}]} {
    %cst = arith.constant 0.000000e+00 : f32
    %0 = vector.broadcast %cst : f32 to vector<18x32xf32>
    %c0 = arith.constant 0 : index
    %c0_0 = arith.constant 0 : index
    %c0_1 = arith.constant 0 : index
    %c0_2 = arith.constant 0 : index
    %1 = vector.load %arg15[%c0, %c0_0, %c0_1, %c0_2] : memref<4x9x18x32xf32, #tpu.memory_space<vmem>>, vector<1x1x18x32xf32>
    %2 = vector.shape_cast %1 : vector<1x1x18x32xf32> to vector<18x32xf32>
    %3 = vector.shape_cast %0 : vector<18x32xf32> to vector<1x1x18x32xf32>
    tpu.vector_store %arg15[%c0, %c0_0, %c0_1, %c0_2], %3 {strides = array<i32>} : memref<4x9x18x32xf32, #tpu.memory_space<vmem>>, vector<1x1x18x32xf32>,
    %cst_3 = arith.constant 0.000000e+00 : f32
    %4 = vector.broadcast %cst_3 : f32 to vector<9x2x32xf32>
    %c0_4 = arith.constant 0 : index
    %c0_5 = arith.constant 0 : index
    %c0_6 = arith.constant 0 : index
    %c0_7 = arith.constant 0 : index
    %5 = vector.load %arg15[%c0_4, %c0_5, %c0_6, %c0_7] : memref<4x9x18x32xf32, #tpu.memory_space<vmem>>, vector<1x9x2x32xf32>
    %6 = vector.shape_cast %5 : vector<1x9x2x32xf32> to vector<9x2x32xf32>
    %7 = vector.shape_cast %4 : vector<9x2x32xf32> to vector<1x9x2x32xf32>
    tpu.vector_store %arg15[%c0_4, %c0_5, %c0_6, %c0_7], %7 {strides = array<i32>} : memref<4x9x18x32xf32, #tpu.memory_space<vmem>>, vector<1x9x2x32xf32>,
    %cst_8 = arith.constant 0.000000e+00 : f32
    %8 = vector.broadcast %cst_8 : f32 to vector<18x32xf32>
    %c1 = arith.constant 1 : index
    %c0_9 = arith.constant 0 : index
    %c0_10 = arith.constant 0 : index
    %c0_11 = arith.constant 0 : index
    %9 = vector.load %arg15[%c1, %c0_9, %c0_10, %c0_11] : memref<4x9x18x32xf32, #tpu.memory_space<vmem>>, vector<1x1x18x32xf32>
    %10 = vector.shape_cast %9 : vector<1x1x18x32xf32> to vector<18x32xf32>
    %11 = vector.shape_cast %8 : vector<18x32xf32> to vector<1x1x18x32xf32>
    tpu.vector_store %arg15[%c1, %c0_9, %c0_10, %c0_11], %11 {strides = array<i32>} : memref<4x9x18x32xf32, #tpu.memory_space<vmem>>, vector<1x1x18x32xf32>,
    %cst_12 = arith.constant 0.000000e+00 : f32
    %12 = vector.broadcast %cst_12 : f32 to vector<9x2x32xf32>
    %c1_13 = arith.constant 1 : index
    %c0_14 = arith.constant 0 : index
    %c16 = arith.constant 16 : index
    %c0_15 = arith.constant 0 : index
    %13 = vector.load %arg15[%c1_13, %c0_14, %c16, %c0_15] : memref<4x9x18x32xf32, #tpu.memory_space<vmem>>, vector<1x9x2x32xf32>
    %14 = vector.shape_cast %13 : vector<1x9x2x32xf32> to vector<9x2x32xf32>
    %15 = vector.shape_cast %12 : vector<9x2x32xf32> to vector<1x9x2x32xf32>
    tpu.vector_store %arg15[%c1_13, %c0_14, %c16, %c0_15], %15 {strides = array<i32>} : memref<4x9x18x32xf32, #tpu.memory_space<vmem>>, vector<1x9x2x32xf32>,
    %cst_16 = arith.constant 0.000000e+00 : f32
    %16 = vector.broadcast %cst_16 : f32 to vector<18x32xf32>
    %c2 = arith.constant 2 : index
    %c8 = arith.constant 8 : index
    %c0_17 = arith.constant 0 : index
    %c0_18 = arith.constant 0 : index
    %17 = vector.load %arg15[%c2, %c8, %c0_17, %c0_18] : memref<4x9x18x32xf32, #tpu.memory_space<vmem>>, vector<1x1x18x32xf32>
    %18 = vector.shape_cast %17 : vector<1x1x18x32xf32> to vector<18x32xf32>
    %19 = vector.shape_cast %16 : vector<18x32xf32> to vector<1x1x18x32xf32>
    tpu.vector_store %arg15[%c2, %c8, %c0_17, %c0_18], %19 {strides = array<i32>} : memref<4x9x18x32xf32, #tpu.memory_space<vmem>>, vector<1x1x18x32xf32>,
    %cst_19 = arith.constant 0.000000e+00 : f32
    %20 = vector.broadcast %cst_19 : f32 to vector<9x2x32xf32>
    %c2_20 = arith.constant 2 : index
    %c0_21 = arith.constant 0 : index
    %c0_22 = arith.constant 0 : index
    %c0_23 = arith.constant 0 : index
    %21 = vector.load %arg15[%c2_20, %c0_21, %c0_22, %c0_23] : memref<4x9x18x32xf32, #tpu.memory_space<vmem>>, vector<1x9x2x32xf32>
    %22 = vector.shape_cast %21 : vector<1x9x2x32xf32> to vector<9x2x32xf32>
    %23 = vector.shape_cast %20 : vector<9x2x32xf32> to vector<1x9x2x32xf32>
    tpu.vector_store %arg15[%c2_20, %c0_21, %c0_22, %c0_23], %23 {strides = array<i32>} : memref<4x9x18x32xf32, #tpu.memory_space<vmem>>, vector<1x9x2x32xf32>,
    %cst_24 = arith.constant 0.000000e+00 : f32
    %24 = vector.broadcast %cst_24 : f32 to vector<18x32xf32>
    %c3 = arith.constant 3 : index
    %c8_25 = arith.constant 8 : index
    %c0_26 = arith.constant 0 : index
    %c0_27 = arith.constant 0 : index
    %25 = vector.load %arg15[%c3, %c8_25, %c0_26, %c0_27] : memref<4x9x18x32xf32, #tpu.memory_space<vmem>>, vector<1x1x18x32xf32>
    %26 = vector.shape_cast %25 : vector<1x1x18x32xf32> to vector<18x32xf32>
    %27 = vector.shape_cast %24 : vector<18x32xf32> to vector<1x1x18x32xf32>
    tpu.vector_store %arg15[%c3, %c8_25, %c0_26, %c0_27], %27 {strides = array<i32>} : memref<4x9x18x32xf32, #tpu.memory_space<vmem>>, vector<1x1x18x32xf32>,
    %cst_28 = arith.constant 0.000000e+00 : f32
    %28 = vector.broadcast %cst_28 : f32 to vector<9x2x32xf32>
    %c3_29 = arith.constant 3 : index
    %c0_30 = arith.constant 0 : index
    %c16_31 = arith.constant 16 : index
    %c0_32 = arith.constant 0 : index
    %29 = vector.load %arg15[%c3_29, %c0_30, %c16_31, %c0_32] : memref<4x9x18x32xf32, #tpu.memory_space<vmem>>, vector<1x9x2x32xf32>
    %30 = vector.shape_cast %29 : vector<1x9x2x32xf32> to vector<9x2x32xf32>
    %31 = vector.shape_cast %28 : vector<9x2x32xf32> to vector<1x9x2x32xf32>
    tpu.vector_store %arg15[%c3_29, %c0_30, %c16_31, %c0_32], %31 {strides = array<i32>} : memref<4x9x18x32xf32, #tpu.memory_space<vmem>>, vector<1x9x2x32xf32>,
    %cst_33 = arith.constant 0.000000e+00 : f32
    %32 = vector.broadcast %cst_33 : f32 to vector<10x64xf32>
    %c0_34 = arith.constant 0 : index
    %c0_35 = arith.constant 0 : index
    %c0_36 = arith.constant 0 : index
    %c0_37 = arith.constant 0 : index
    %33 = vector.load %arg16[%c0_34, %c0_35, %c0_36, %c0_37] : memref<4x5x10x64xf32, #tpu.memory_space<vmem>>, vector<1x1x10x64xf32>
    %34 = vector.shape_cast %33 : vector<1x1x10x64xf32> to vector<10x64xf32>
    %35 = vector.shape_cast %32 : vector<10x64xf32> to vector<1x1x10x64xf32>
    tpu.vector_store %arg16[%c0_34, %c0_35, %c0_36, %c0_37], %35 {strides = array<i32>} : memref<4x5x10x64xf32, #tpu.memory_space<vmem>>, vector<1x1x10x64xf32>,
    %cst_38 = arith.constant 0.000000e+00 : f32
    %36 = vector.broadcast %cst_38 : f32 to vector<5x2x64xf32>
    %c0_39 = arith.constant 0 : index
    %c0_40 = arith.constant 0 : index
    %c0_41 = arith.constant 0 : index
    %c0_42 = arith.constant 0 : index
    %37 = vector.load %arg16[%c0_39, %c0_40, %c0_41, %c0_42] : memref<4x5x10x64xf32, #tpu.memory_space<vmem>>, vector<1x5x2x64xf32>
    %38 = vector.shape_cast %37 : vector<1x5x2x64xf32> to vector<5x2x64xf32>
    %39 = vector.shape_cast %36 : vector<5x2x64xf32> to vector<1x5x2x64xf32>
    tpu.vector_store %arg16[%c0_39, %c0_40, %c0_41, %c0_42], %39 {strides = array<i32>} : memref<4x5x10x64xf32, #tpu.memory_space<vmem>>, vector<1x5x2x64xf32>,
    %cst_43 = arith.constant 0.000000e+00 : f32
    %40 = vector.broadcast %cst_43 : f32 to vector<10x64xf32>
    %c1_44 = arith.constant 1 : index
    %c0_45 = arith.constant 0 : index
    %c0_46 = arith.constant 0 : index
    %c0_47 = arith.constant 0 : index
    %41 = vector.load %arg16[%c1_44, %c0_45, %c0_46, %c0_47] : memref<4x5x10x64xf32, #tpu.memory_space<vmem>>, vector<1x1x10x64xf32>
    %42 = vector.shape_cast %41 : vector<1x1x10x64xf32> to vector<10x64xf32>
    %43 = vector.shape_cast %40 : vector<10x64xf32> to vector<1x1x10x64xf32>
    tpu.vector_store %arg16[%c1_44, %c0_45, %c0_46, %c0_47], %43 {strides = array<i32>} : memref<4x5x10x64xf32, #tpu.memory_space<vmem>>, vector<1x1x10x64xf32>,
    %cst_48 = arith.constant 0.000000e+00 : f32
    %44 = vector.broadcast %cst_48 : f32 to vector<5x2x64xf32>
    %c1_49 = arith.constant 1 : index
    %c0_50 = arith.constant 0 : index
    %c8_51 = arith.constant 8 : index
    %c0_52 = arith.constant 0 : index
    %45 = vector.load %arg16[%c1_49, %c0_50, %c8_51, %c0_52] : memref<4x5x10x64xf32, #tpu.memory_space<vmem>>, vector<1x5x2x64xf32>
    %46 = vector.shape_cast %45 : vector<1x5x2x64xf32> to vector<5x2x64xf32>
    %47 = vector.shape_cast %44 : vector<5x2x64xf32> to vector<1x5x2x64xf32>
    tpu.vector_store %arg16[%c1_49, %c0_50, %c8_51, %c0_52], %47 {strides = array<i32>} : memref<4x5x10x64xf32, #tpu.memory_space<vmem>>, vector<1x5x2x64xf32>,
    %cst_53 = arith.constant 0.000000e+00 : f32
    %48 = vector.broadcast %cst_53 : f32 to vector<10x64xf32>
    %c2_54 = arith.constant 2 : index
    %c4 = arith.constant 4 : index
    %c0_55 = arith.constant 0 : index
    %c0_56 = arith.constant 0 : index
    %49 = vector.load %arg16[%c2_54, %c4, %c0_55, %c0_56] : memref<4x5x10x64xf32, #tpu.memory_space<vmem>>, vector<1x1x10x64xf32>
    %50 = vector.shape_cast %49 : vector<1x1x10x64xf32> to vector<10x64xf32>
    %51 = vector.shape_cast %48 : vector<10x64xf32> to vector<1x1x10x64xf32>
    tpu.vector_store %arg16[%c2_54, %c4, %c0_55, %c0_56], %51 {strides = array<i32>} : memref<4x5x10x64xf32, #tpu.memory_space<vmem>>, vector<1x1x10x64xf32>,
    %cst_57 = arith.constant 0.000000e+00 : f32
    %52 = vector.broadcast %cst_57 : f32 to vector<5x2x64xf32>
    %c2_58 = arith.constant 2 : index
    %c0_59 = arith.constant 0 : index
    %c0_60 = arith.constant 0 : index
    %c0_61 = arith.constant 0 : index
    %53 = vector.load %arg16[%c2_58, %c0_59, %c0_60, %c0_61] : memref<4x5x10x64xf32, #tpu.memory_space<vmem>>, vector<1x5x2x64xf32>
    %54 = vector.shape_cast %53 : vector<1x5x2x64xf32> to vector<5x2x64xf32>
    %55 = vector.shape_cast %52 : vector<5x2x64xf32> to vector<1x5x2x64xf32>
    tpu.vector_store %arg16[%c2_58, %c0_59, %c0_60, %c0_61], %55 {strides = array<i32>} : memref<4x5x10x64xf32, #tpu.memory_space<vmem>>, vector<1x5x2x64xf32>,
    %cst_62 = arith.constant 0.000000e+00 : f32
    %56 = vector.broadcast %cst_62 : f32 to vector<10x64xf32>
    %c3_63 = arith.constant 3 : index
    %c4_64 = arith.constant 4 : index
    %c0_65 = arith.constant 0 : index
    %c0_66 = arith.constant 0 : index
    %57 = vector.load %arg16[%c3_63, %c4_64, %c0_65, %c0_66] : memref<4x5x10x64xf32, #tpu.memory_space<vmem>>, vector<1x1x10x64xf32>
    %58 = vector.shape_cast %57 : vector<1x1x10x64xf32> to vector<10x64xf32>
    %59 = vector.shape_cast %56 : vector<10x64xf32> to vector<1x1x10x64xf32>
    tpu.vector_store %arg16[%c3_63, %c4_64, %c0_65, %c0_66], %59 {strides = array<i32>} : memref<4x5x10x64xf32, #tpu.memory_space<vmem>>, vector<1x1x10x64xf32>,
    %cst_67 = arith.constant 0.000000e+00 : f32
    %60 = vector.broadcast %cst_67 : f32 to vector<5x2x64xf32>
    %c3_68 = arith.constant 3 : index
    %c0_69 = arith.constant 0 : index
    %c8_70 = arith.constant 8 : index
    %c0_71 = arith.constant 0 : index
    %61 = vector.load %arg16[%c3_68, %c0_69, %c8_70, %c0_71] : memref<4x5x10x64xf32, #tpu.memory_space<vmem>>, vector<1x5x2x64xf32>
    %62 = vector.shape_cast %61 : vector<1x5x2x64xf32> to vector<5x2x64xf32>
    %63 = vector.shape_cast %60 : vector<5x2x64xf32> to vector<1x5x2x64xf32>
    tpu.vector_store %arg16[%c3_68, %c0_69, %c8_70, %c0_71], %63 {strides = array<i32>} : memref<4x5x10x64xf32, #tpu.memory_space<vmem>>, vector<1x5x2x64xf32>,
    %c0_72 = arith.constant 0 : index
    %c0_73 = arith.constant 0 : index
    %64 = vector.load %arg1[%c0_72, %c0_73] : memref<512x9xf32, #tpu.memory_space<vmem>>, vector<512x9xf32>
    %c0_74 = arith.constant 0 : index
    %c0_75 = arith.constant 0 : index
    %65 = vector.load %arg2[%c0_74, %c0_75] : memref<9x32xf32, #tpu.memory_space<vmem>>, vector<9x32xf32>
    %cst_76 = arith.constant dense<0.000000e+00> : vector<512x32xf32>
    %66 = tpu.matmul %64, %65, %cst_76 {dimension_numbers = #tpu.dot_dimension_numbers<[1], [0], [0], [1], [0, 0, 1, 1], [], []>} : vector<512x9xf32>, vector<9x32xf32>, vector<512x32xf32> -> vector<512x32xf32>
    %c0_77 = arith.constant 0 : index
    %c0_78 = arith.constant 0 : index
    %67 = vector.load %arg3[%c0_77, %c0_78] : memref<1x32xf32, #tpu.memory_space<vmem>>, vector<1x32xf32>
    %68 = vector.broadcast %67 : vector<1x32xf32> to vector<512x32xf32>
    %69 = arith.addf %66, %68 : vector<512x32xf32>
    %cst_79 = arith.constant 0.000000e+00 : f32
    %70 = vector.broadcast %cst_79 : f32 to vector<512x32xf32>
    %71 = arith.cmpf ogt, %69, %70 : vector<512x32xf32>
    %cst_80 = arith.constant 0.00999999977 : f32
    %72 = vector.broadcast %cst_80 : f32 to vector<512x32xf32>
    %73 = arith.mulf %72, %69 : vector<512x32xf32>
    %74 = arith.select %71, %69, %73 : vector<512x32xi1>, vector<512x32xf32>
    %75 = vector.shape_cast %74 : vector<512x32xf32> to vector<8x2x32x32xf32>
    %76 = vector.extract_strided_slice %75 {offsets = [0, 0, 0, 0], sizes = [8, 1, 32, 32], strides = [1, 1, 1, 1]} : vector<8x2x32x32xf32> to vector<8x1x32x32xf32>
    %77 = vector.shape_cast %76 : vector<8x1x32x32xf32> to vector<8x32x32xf32>
    %78 = vector.shape_cast %77 : vector<8x32x32xf32> to vector<8x8x4x32xf32>
    %79 = vector.extract_strided_slice %78 {offsets = [0, 0, 0, 0], sizes = [8, 8, 2, 32], strides = [1, 1, 1, 1]} : vector<8x8x4x32xf32> to vector<8x8x2x32xf32>
    %80 = vector.shape_cast %79 : vector<8x8x2x32xf32> to vector<8x16x32xf32>
    %c3_81 = arith.constant 3 : index
    %c0_82 = arith.constant 0 : index
    %c0_83 = arith.constant 0 : index
    %c0_84 = arith.constant 0 : index
    %81 = vector.load %arg15[%c3_81, %c0_82, %c0_83, %c0_84] : memref<4x9x18x32xf32, #tpu.memory_space<vmem>>, vector<1x8x16x32xf32>
    %82 = vector.shape_cast %81 : vector<1x8x16x32xf32> to vector<8x16x32xf32>
    %83 = vector.shape_cast %80 : vector<8x16x32xf32> to vector<1x8x16x32xf32>
    tpu.vector_store %arg15[%c3_81, %c0_82, %c0_83, %c0_84], %83 {strides = array<i32>} : memref<4x9x18x32xf32, #tpu.memory_space<vmem>>, vector<1x8x16x32xf32>,
    %84 = vector.extract_strided_slice %78 {offsets = [0, 0, 2, 0], sizes = [8, 8, 2, 32], strides = [1, 1, 1, 1]} : vector<8x8x4x32xf32> to vector<8x8x2x32xf32>
    %85 = vector.shape_cast %84 : vector<8x8x2x32xf32> to vector<8x16x32xf32>
    %c2_85 = arith.constant 2 : index
    %c0_86 = arith.constant 0 : index
    %c2_87 = arith.constant 2 : index
    %c0_88 = arith.constant 0 : index
    %86 = vector.load %arg15[%c2_85, %c0_86, %c2_87, %c0_88] : memref<4x9x18x32xf32, #tpu.memory_space<vmem>>, vector<1x8x16x32xf32>
    %87 = vector.shape_cast %86 : vector<1x8x16x32xf32> to vector<8x16x32xf32>
    %88 = vector.shape_cast %85 : vector<8x16x32xf32> to vector<1x8x16x32xf32>
    tpu.vector_store %arg15[%c2_85, %c0_86, %c2_87, %c0_88], %88 {strides = array<i32>} : memref<4x9x18x32xf32, #tpu.memory_space<vmem>>, vector<1x8x16x32xf32>,
    %89 = vector.extract_strided_slice %75 {offsets = [0, 1, 0, 0], sizes = [8, 1, 32, 32], strides = [1, 1, 1, 1]} : vector<8x2x32x32xf32> to vector<8x1x32x32xf32>
    %90 = vector.shape_cast %89 : vector<8x1x32x32xf32> to vector<8x32x32xf32>
    %91 = vector.shape_cast %90 : vector<8x32x32xf32> to vector<8x8x4x32xf32>
    %92 = vector.extract_strided_slice %91 {offsets = [0, 0, 0, 0], sizes = [8, 8, 2, 32], strides = [1, 1, 1, 1]} : vector<8x8x4x32xf32> to vector<8x8x2x32xf32>
    %93 = vector.shape_cast %92 : vector<8x8x2x32xf32> to vector<8x16x32xf32>
    %c1_89 = arith.constant 1 : index
    %c1_90 = arith.constant 1 : index
    %c0_91 = arith.constant 0 : index
    %c0_92 = arith.constant 0 : index
    %94 = vector.load %arg15[%c1_89, %c1_90, %c0_91, %c0_92] : memref<4x9x18x32xf32, #tpu.memory_space<vmem>>, vector<1x8x16x32xf32>
    %95 = vector.shape_cast %94 : vector<1x8x16x32xf32> to vector<8x16x32xf32>
    %96 = vector.shape_cast %93 : vector<8x16x32xf32> to vector<1x8x16x32xf32>
    tpu.vector_store %arg15[%c1_89, %c1_90, %c0_91, %c0_92], %96 {strides = array<i32>} : memref<4x9x18x32xf32, #tpu.memory_space<vmem>>, vector<1x8x16x32xf32>,
    %97 = vector.extract_strided_slice %91 {offsets = [0, 0, 2, 0], sizes = [8, 8, 2, 32], strides = [1, 1, 1, 1]} : vector<8x8x4x32xf32> to vector<8x8x2x32xf32>
    %98 = vector.shape_cast %97 : vector<8x8x2x32xf32> to vector<8x16x32xf32>
    %c0_93 = arith.constant 0 : index
    %c1_94 = arith.constant 1 : index
    %c2_95 = arith.constant 2 : index
    %c0_96 = arith.constant 0 : index
    %99 = vector.load %arg15[%c0_93, %c1_94, %c2_95, %c0_96] : memref<4x9x18x32xf32, #tpu.memory_space<vmem>>, vector<1x8x16x32xf32>
    %100 = vector.shape_cast %99 : vector<1x8x16x32xf32> to vector<8x16x32xf32>
    %101 = vector.shape_cast %98 : vector<8x16x32xf32> to vector<1x8x16x32xf32>
    tpu.vector_store %arg15[%c0_93, %c1_94, %c2_95, %c0_96], %101 {strides = array<i32>} : memref<4x9x18x32xf32, #tpu.memory_space<vmem>>, vector<1x8x16x32xf32>,
    %c0_97 = arith.constant 0 : index
    %c0_98 = arith.constant 0 : index
    %c0_99 = arith.constant 0 : index
    %c0_100 = arith.constant 0 : index
    %102 = vector.load %arg15[%c0_97, %c0_98, %c0_99, %c0_100] : memref<4x9x18x32xf32, #tpu.memory_space<vmem>>, vector<1x8x16x32xf32>
    %103 = vector.shape_cast %102 : vector<1x8x16x32xf32> to vector<8x16x32xf32>
    %104 = vector.shape_cast %103 : vector<8x16x32xf32> to vector<128x32xf32>
    %c1_101 = arith.constant 1 : index
    %c0_102 = arith.constant 0 : index
    %c0_103 = arith.constant 0 : index
    %c0_104 = arith.constant 0 : index
    %105 = vector.load %arg15[%c1_101, %c0_102, %c0_103, %c0_104] : memref<4x9x18x32xf32, #tpu.memory_space<vmem>>, vector<1x8x16x32xf32>
    %106 = vector.shape_cast %105 : vector<1x8x16x32xf32> to vector<8x16x32xf32>
    %107 = vector.shape_cast %106 : vector<8x16x32xf32> to vector<128x32xf32>
    %c0_105 = arith.constant 0 : index
    %c0_106 = arith.constant 0 : index
    %c2_107 = arith.constant 2 : index
    %c0_108 = arith.constant 0 : index
    %108 = vector.load %arg15[%c0_105, %c0_106, %c2_107, %c0_108] : memref<4x9x18x32xf32, #tpu.memory_space<vmem>>, vector<1x8x16x32xf32>
    %109 = vector.shape_cast %108 : vector<1x8x16x32xf32> to vector<8x16x32xf32>
    %110 = vector.shape_cast %109 : vector<8x16x32xf32> to vector<128x32xf32>
    %c2_109 = arith.constant 2 : index
    %c0_110 = arith.constant 0 : index
    %c0_111 = arith.constant 0 : index
    %c0_112 = arith.constant 0 : index
    %111 = vector.load %arg15[%c2_109, %c0_110, %c0_111, %c0_112] : memref<4x9x18x32xf32, #tpu.memory_space<vmem>>, vector<1x8x16x32xf32>
    %112 = vector.shape_cast %111 : vector<1x8x16x32xf32> to vector<8x16x32xf32>
    %113 = vector.shape_cast %112 : vector<8x16x32xf32> to vector<128x32xf32>
    %c3_113 = arith.constant 3 : index
    %c0_114 = arith.constant 0 : index
    %c0_115 = arith.constant 0 : index
    %c0_116 = arith.constant 0 : index
    %114 = vector.load %arg15[%c3_113, %c0_114, %c0_115, %c0_116] : memref<4x9x18x32xf32, #tpu.memory_space<vmem>>, vector<1x8x16x32xf32>
    %115 = vector.shape_cast %114 : vector<1x8x16x32xf32> to vector<8x16x32xf32>
    %116 = vector.shape_cast %115 : vector<8x16x32xf32> to vector<128x32xf32>
    %c2_117 = arith.constant 2 : index
    %c0_118 = arith.constant 0 : index
    %c2_119 = arith.constant 2 : index
    %c0_120 = arith.constant 0 : index
    %117 = vector.load %arg15[%c2_117, %c0_118, %c2_119, %c0_120] : memref<4x9x18x32xf32, #tpu.memory_space<vmem>>, vector<1x8x16x32xf32>
    %118 = vector.shape_cast %117 : vector<1x8x16x32xf32> to vector<8x16x32xf32>
    %119 = vector.shape_cast %118 : vector<8x16x32xf32> to vector<128x32xf32>
    %c0_121 = arith.constant 0 : index
    %c1_122 = arith.constant 1 : index
    %c0_123 = arith.constant 0 : index
    %c0_124 = arith.constant 0 : index
    %120 = vector.load %arg15[%c0_121, %c1_122, %c0_123, %c0_124] : memref<4x9x18x32xf32, #tpu.memory_space<vmem>>, vector<1x8x16x32xf32>
    %121 = vector.shape_cast %120 : vector<1x8x16x32xf32> to vector<8x16x32xf32>
    %122 = vector.shape_cast %121 : vector<8x16x32xf32> to vector<128x32xf32>
    %c1_125 = arith.constant 1 : index
    %c1_126 = arith.constant 1 : index
    %c0_127 = arith.constant 0 : index
    %c0_128 = arith.constant 0 : index
    %123 = vector.load %arg15[%c1_125, %c1_126, %c0_127, %c0_128] : memref<4x9x18x32xf32, #tpu.memory_space<vmem>>, vector<1x8x16x32xf32>
    %124 = vector.shape_cast %123 : vector<1x8x16x32xf32> to vector<8x16x32xf32>
    %125 = vector.shape_cast %124 : vector<8x16x32xf32> to vector<128x32xf32>
    %c0_129 = arith.constant 0 : index
    %c1_130 = arith.constant 1 : index
    %c2_131 = arith.constant 2 : index
    %c0_132 = arith.constant 0 : index
    %126 = vector.load %arg15[%c0_129, %c1_130, %c2_131, %c0_132] : memref<4x9x18x32xf32, #tpu.memory_space<vmem>>, vector<1x8x16x32xf32>
    %127 = vector.shape_cast %126 : vector<1x8x16x32xf32> to vector<8x16x32xf32>
    %128 = vector.shape_cast %127 : vector<8x16x32xf32> to vector<128x32xf32>
    %129 = tpu.concatenate %104, %107, %110, %113, %116, %119, %122, %125, %128 in 1 : vector<128x32xf32>, vector<128x32xf32>, vector<128x32xf32>, vector<128x32xf32>, vector<128x32xf32>, vector<128x32xf32>, vector<128x32xf32>, vector<128x32xf32>, vector<128x32xf32> -> vector<128x288xf32>
    %130 = arith.truncf %129 : vector<128x288xf32> to vector<128x288xbf16>
    %c0_133 = arith.constant 0 : index
    %c0_134 = arith.constant 0 : index
    %131 = vector.load %arg4[%c0_133, %c0_134] : memref<288x64xbf16, #tpu.memory_space<vmem>>, vector<288x64xbf16>
    %cst_135 = arith.constant dense<0.000000e+00> : vector<128x64xf32>
    %132 = tpu.matmul %130, %131, %cst_135 {dimension_numbers = #tpu.dot_dimension_numbers<[1], [0], [0], [1], [0, 0, 1, 1], [], []>} : vector<128x288xbf16>, vector<288x64xbf16>, vector<128x64xf32> -> vector<128x64xf32>
    %c0_136 = arith.constant 0 : index
    %c0_137 = arith.constant 0 : index
    %133 = vector.load %arg5[%c0_136, %c0_137] : memref<1x64xf32, #tpu.memory_space<vmem>>, vector<1x64xf32>
    %134 = vector.broadcast %133 : vector<1x64xf32> to vector<128x64xf32>
    %135 = arith.addf %132, %134 : vector<128x64xf32>
    %c0_138 = arith.constant 0 : index
    %c0_139 = arith.constant 0 : index
    %136 = vector.load %arg6[%c0_138, %c0_139] : memref<1x64xf32, #tpu.memory_space<vmem>>, vector<1x64xf32>
    %c0_140 = arith.constant 0 : index
    %c0_141 = arith.constant 0 : index
    %137 = vector.load %arg7[%c0_140, %c0_141] : memref<1x64xf32, #tpu.memory_space<vmem>>, vector<1x64xf32>
    %cst_142 = arith.constant dense<0.000000e+00> : vector<64xf32>
    %138 = vector.multi_reduction <add>, %135, %cst_142 [0] : vector<128x64xf32> to vector<64xf32>
    %139 = vector.shape_cast %138 : vector<64xf32> to vector<1x64xf32>
    %cst_143 = arith.constant 1.280000e+02 : f32
    %140 = vector.broadcast %cst_143 : f32 to vector<1x64xf32>
    %141 = arith.divf %139, %140 : vector<1x64xf32>
    %142 = vector.broadcast %141 : vector<1x64xf32> to vector<128x64xf32>
    %143 = arith.subf %135, %142 : vector<128x64xf32>
    %144 = vector.broadcast %141 : vector<1x64xf32> to vector<128x64xf32>
    %145 = arith.subf %135, %144 : vector<128x64xf32>
    %146 = arith.mulf %143, %145 : vector<128x64xf32>
    %cst_144 = arith.constant dense<0.000000e+00> : vector<64xf32>
    %147 = vector.multi_reduction <add>, %146, %cst_144 [0] : vector<128x64xf32> to vector<64xf32>
    %148 = vector.shape_cast %147 : vector<64xf32> to vector<1x64xf32>
    %cst_145 = arith.constant 1.280000e+02 : f32
    %149 = vector.broadcast %cst_145 : f32 to vector<1x64xf32>
    %150 = arith.divf %148, %149 : vector<1x64xf32>
    %151 = vector.broadcast %141 : vector<1x64xf32> to vector<128x64xf32>
    %152 = arith.subf %135, %151 : vector<128x64xf32>
    %cst_146 = arith.constant 9.99999974E-6 : f32
    %153 = vector.broadcast %cst_146 : f32 to vector<1x64xf32>
    %154 = arith.addf %150, %153 : vector<1x64xf32>
    %155 = math.rsqrt %154 : vector<1x64xf32>
    %156 = vector.broadcast %155 : vector<1x64xf32> to vector<128x64xf32>
    %157 = arith.mulf %152, %156 : vector<128x64xf32>
    %158 = vector.broadcast %136 : vector<1x64xf32> to vector<128x64xf32>
    %159 = arith.mulf %157, %158 : vector<128x64xf32>
    %160 = vector.broadcast %137 : vector<1x64xf32> to vector<128x64xf32>
    %161 = arith.addf %159, %160 : vector<128x64xf32>
    %cst_147 = arith.constant 0.000000e+00 : f32
    %162 = vector.broadcast %cst_147 : f32 to vector<128x64xf32>
    %163 = arith.cmpf ogt, %161, %162 : vector<128x64xf32>
    %cst_148 = arith.constant 0.00999999977 : f32
    %164 = vector.broadcast %cst_148 : f32 to vector<128x64xf32>
    %165 = arith.mulf %164, %161 : vector<128x64xf32>
    %166 = arith.select %163, %161, %165 : vector<128x64xi1>, vector<128x64xf32>
    %167 = vector.shape_cast %166 : vector<128x64xf32> to vector<4x2x16x64xf32>
    %168 = vector.extract_strided_slice %167 {offsets = [0, 0, 0, 0], sizes = [4, 1, 16, 64], strides = [1, 1, 1, 1]} : vector<4x2x16x64xf32> to vector<4x1x16x64xf32>
    %169 = vector.shape_cast %168 : vector<4x1x16x64xf32> to vector<4x16x64xf32>
    %170 = vector.shape_cast %169 : vector<4x16x64xf32> to vector<4x4x4x64xf32>
    %171 = vector.extract_strided_slice %170 {offsets = [0, 0, 0, 0], sizes = [4, 4, 2, 64], strides = [1, 1, 1, 1]} : vector<4x4x4x64xf32> to vector<4x4x2x64xf32>
    %172 = vector.shape_cast %171 : vector<4x4x2x64xf32> to vector<4x8x64xf32>
    %c3_149 = arith.constant 3 : index
    %c0_150 = arith.constant 0 : index
    %c0_151 = arith.constant 0 : index
    %c0_152 = arith.constant 0 : index
    %173 = vector.load %arg16[%c3_149, %c0_150, %c0_151, %c0_152] : memref<4x5x10x64xf32, #tpu.memory_space<vmem>>, vector<1x4x8x64xf32>
    %174 = vector.shape_cast %173 : vector<1x4x8x64xf32> to vector<4x8x64xf32>
    %175 = vector.shape_cast %172 : vector<4x8x64xf32> to vector<1x4x8x64xf32>
    tpu.vector_store %arg16[%c3_149, %c0_150, %c0_151, %c0_152], %175 {strides = array<i32>} : memref<4x5x10x64xf32, #tpu.memory_space<vmem>>, vector<1x4x8x64xf32>,
    %176 = vector.extract_strided_slice %170 {offsets = [0, 0, 2, 0], sizes = [4, 4, 2, 64], strides = [1, 1, 1, 1]} : vector<4x4x4x64xf32> to vector<4x4x2x64xf32>
    %177 = vector.shape_cast %176 : vector<4x4x2x64xf32> to vector<4x8x64xf32>
    %c2_153 = arith.constant 2 : index
    %c0_154 = arith.constant 0 : index
    %c2_155 = arith.constant 2 : index
    %c0_156 = arith.constant 0 : index
    %178 = vector.load %arg16[%c2_153, %c0_154, %c2_155, %c0_156] : memref<4x5x10x64xf32, #tpu.memory_space<vmem>>, vector<1x4x8x64xf32>
    %179 = vector.shape_cast %178 : vector<1x4x8x64xf32> to vector<4x8x64xf32>
    %180 = vector.shape_cast %177 : vector<4x8x64xf32> to vector<1x4x8x64xf32>
    tpu.vector_store %arg16[%c2_153, %c0_154, %c2_155, %c0_156], %180 {strides = array<i32>} : memref<4x5x10x64xf32, #tpu.memory_space<vmem>>, vector<1x4x8x64xf32>,
    %181 = vector.extract_strided_slice %167 {offsets = [0, 1, 0, 0], sizes = [4, 1, 16, 64], strides = [1, 1, 1, 1]} : vector<4x2x16x64xf32> to vector<4x1x16x64xf32>
    %182 = vector.shape_cast %181 : vector<4x1x16x64xf32> to vector<4x16x64xf32>
    %183 = vector.shape_cast %182 : vector<4x16x64xf32> to vector<4x4x4x64xf32>
    %184 = vector.extract_strided_slice %183 {offsets = [0, 0, 0, 0], sizes = [4, 4, 2, 64], strides = [1, 1, 1, 1]} : vector<4x4x4x64xf32> to vector<4x4x2x64xf32>
    %185 = vector.shape_cast %184 : vector<4x4x2x64xf32> to vector<4x8x64xf32>
    %c1_157 = arith.constant 1 : index
    %c1_158 = arith.constant 1 : index
    %c0_159 = arith.constant 0 : index
    %c0_160 = arith.constant 0 : index
    %186 = vector.load %arg16[%c1_157, %c1_158, %c0_159, %c0_160] : memref<4x5x10x64xf32, #tpu.memory_space<vmem>>, vector<1x4x8x64xf32>
    %187 = vector.shape_cast %186 : vector<1x4x8x64xf32> to vector<4x8x64xf32>
    %188 = vector.shape_cast %185 : vector<4x8x64xf32> to vector<1x4x8x64xf32>
    tpu.vector_store %arg16[%c1_157, %c1_158, %c0_159, %c0_160], %188 {strides = array<i32>} : memref<4x5x10x64xf32, #tpu.memory_space<vmem>>, vector<1x4x8x64xf32>,
    %189 = vector.extract_strided_slice %183 {offsets = [0, 0, 2, 0], sizes = [4, 4, 2, 64], strides = [1, 1, 1, 1]} : vector<4x4x4x64xf32> to vector<4x4x2x64xf32>
    %190 = vector.shape_cast %189 : vector<4x4x2x64xf32> to vector<4x8x64xf32>
    %c0_161 = arith.constant 0 : index
    %c1_162 = arith.constant 1 : index
    %c2_163 = arith.constant 2 : index
    %c0_164 = arith.constant 0 : index
    %191 = vector.load %arg16[%c0_161, %c1_162, %c2_163, %c0_164] : memref<4x5x10x64xf32, #tpu.memory_space<vmem>>, vector<1x4x8x64xf32>
    %192 = vector.shape_cast %191 : vector<1x4x8x64xf32> to vector<4x8x64xf32>
    %193 = vector.shape_cast %190 : vector<4x8x64xf32> to vector<1x4x8x64xf32>
    tpu.vector_store %arg16[%c0_161, %c1_162, %c2_163, %c0_164], %193 {strides = array<i32>} : memref<4x5x10x64xf32, #tpu.memory_space<vmem>>, vector<1x4x8x64xf32>,
    %c0_165 = arith.constant 0 : index
    %c0_166 = arith.constant 0 : index
    %c0_167 = arith.constant 0 : index
    %c0_168 = arith.constant 0 : index
    %194 = vector.load %arg16[%c0_165, %c0_166, %c0_167, %c0_168] : memref<4x5x10x64xf32, #tpu.memory_space<vmem>>, vector<1x4x8x64xf32>
    %195 = vector.shape_cast %194 : vector<1x4x8x64xf32> to vector<4x8x64xf32>
    %196 = vector.shape_cast %195 : vector<4x8x64xf32> to vector<32x64xf32>
    %c1_169 = arith.constant 1 : index
    %c0_170 = arith.constant 0 : index
    %c0_171 = arith.constant 0 : index
    %c0_172 = arith.constant 0 : index
    %197 = vector.load %arg16[%c1_169, %c0_170, %c0_171, %c0_172] : memref<4x5x10x64xf32, #tpu.memory_space<vmem>>, vector<1x4x8x64xf32>
    %198 = vector.shape_cast %197 : vector<1x4x8x64xf32> to vector<4x8x64xf32>
    %199 = vector.shape_cast %198 : vector<4x8x64xf32> to vector<32x64xf32>
    %c0_173 = arith.constant 0 : index
    %c0_174 = arith.constant 0 : index
    %c2_175 = arith.constant 2 : index
    %c0_176 = arith.constant 0 : index
    %200 = vector.load %arg16[%c0_173, %c0_174, %c2_175, %c0_176] : memref<4x5x10x64xf32, #tpu.memory_space<vmem>>, vector<1x4x8x64xf32>
    %201 = vector.shape_cast %200 : vector<1x4x8x64xf32> to vector<4x8x64xf32>
    %202 = vector.shape_cast %201 : vector<4x8x64xf32> to vector<32x64xf32>
    %c2_177 = arith.constant 2 : index
    %c0_178 = arith.constant 0 : index
    %c0_179 = arith.constant 0 : index
    %c0_180 = arith.constant 0 : index
    %203 = vector.load %arg16[%c2_177, %c0_178, %c0_179, %c0_180] : memref<4x5x10x64xf32, #tpu.memory_space<vmem>>, vector<1x4x8x64xf32>
    %204 = vector.shape_cast %203 : vector<1x4x8x64xf32> to vector<4x8x64xf32>
    %205 = vector.shape_cast %204 : vector<4x8x64xf32> to vector<32x64xf32>
    %c3_181 = arith.constant 3 : index
    %c0_182 = arith.constant 0 : index
    %c0_183 = arith.constant 0 : index
    %c0_184 = arith.constant 0 : index
    %206 = vector.load %arg16[%c3_181, %c0_182, %c0_183, %c0_184] : memref<4x5x10x64xf32, #tpu.memory_space<vmem>>, vector<1x4x8x64xf32>
    %207 = vector.shape_cast %206 : vector<1x4x8x64xf32> to vector<4x8x64xf32>
    %208 = vector.shape_cast %207 : vector<4x8x64xf32> to vector<32x64xf32>
    %c2_185 = arith.constant 2 : index
    %c0_186 = arith.constant 0 : index
    %c2_187 = arith.constant 2 : index
    %c0_188 = arith.constant 0 : index
    %209 = vector.load %arg16[%c2_185, %c0_186, %c2_187, %c0_188] : memref<4x5x10x64xf32, #tpu.memory_space<vmem>>, vector<1x4x8x64xf32>
    %210 = vector.shape_cast %209 : vector<1x4x8x64xf32> to vector<4x8x64xf32>
    %211 = vector.shape_cast %210 : vector<4x8x64xf32> to vector<32x64xf32>
    %c0_189 = arith.constant 0 : index
    %c1_190 = arith.constant 1 : index
    %c0_191 = arith.constant 0 : index
    %c0_192 = arith.constant 0 : index
    %212 = vector.load %arg16[%c0_189, %c1_190, %c0_191, %c0_192] : memref<4x5x10x64xf32, #tpu.memory_space<vmem>>, vector<1x4x8x64xf32>
    %213 = vector.shape_cast %212 : vector<1x4x8x64xf32> to vector<4x8x64xf32>
    %214 = vector.shape_cast %213 : vector<4x8x64xf32> to vector<32x64xf32>
    %c1_193 = arith.constant 1 : index
    %c1_194 = arith.constant 1 : index
    %c0_195 = arith.constant 0 : index
    %c0_196 = arith.constant 0 : index
    %215 = vector.load %arg16[%c1_193, %c1_194, %c0_195, %c0_196] : memref<4x5x10x64xf32, #tpu.memory_space<vmem>>, vector<1x4x8x64xf32>
    %216 = vector.shape_cast %215 : vector<1x4x8x64xf32> to vector<4x8x64xf32>
    %217 = vector.shape_cast %216 : vector<4x8x64xf32> to vector<32x64xf32>
    %c0_197 = arith.constant 0 : index
    %c1_198 = arith.constant 1 : index
    %c2_199 = arith.constant 2 : index
    %c0_200 = arith.constant 0 : index
    %218 = vector.load %arg16[%c0_197, %c1_198, %c2_199, %c0_200] : memref<4x5x10x64xf32, #tpu.memory_space<vmem>>, vector<1x4x8x64xf32>
    %219 = vector.shape_cast %218 : vector<1x4x8x64xf32> to vector<4x8x64xf32>
    %220 = vector.shape_cast %219 : vector<4x8x64xf32> to vector<32x64xf32>
    %221 = tpu.concatenate %196, %199, %202, %205, %208, %211, %214, %217, %220 in 1 : vector<32x64xf32>, vector<32x64xf32>, vector<32x64xf32>, vector<32x64xf32>, vector<32x64xf32>, vector<32x64xf32>, vector<32x64xf32>, vector<32x64xf32>, vector<32x64xf32> -> vector<32x576xf32>
    %222 = arith.truncf %221 : vector<32x576xf32> to vector<32x576xbf16>
    %c0_201 = arith.constant 0 : index
    %c0_202 = arith.constant 0 : index
    %223 = vector.load %arg8[%c0_201, %c0_202] : memref<576x128xbf16, #tpu.memory_space<vmem>>, vector<576x128xbf16>
    %cst_203 = arith.constant dense<0.000000e+00> : vector<32x128xf32>
    %224 = tpu.matmul %222, %223, %cst_203 {dimension_numbers = #tpu.dot_dimension_numbers<[1], [0], [0], [1], [0, 0, 1, 1], [], []>} : vector<32x576xbf16>, vector<576x128xbf16>, vector<32x128xf32> -> vector<32x128xf32>
    %c0_204 = arith.constant 0 : index
    %c0_205 = arith.constant 0 : index
    %225 = vector.load %arg9[%c0_204, %c0_205] : memref<1x128xf32, #tpu.memory_space<vmem>>, vector<1x128xf32>
    %226 = vector.broadcast %225 : vector<1x128xf32> to vector<32x128xf32>
    %227 = arith.addf %224, %226 : vector<32x128xf32>
    %c0_206 = arith.constant 0 : index
    %c0_207 = arith.constant 0 : index
    %228 = vector.load %arg10[%c0_206, %c0_207] : memref<1x128xf32, #tpu.memory_space<vmem>>, vector<1x128xf32>
    %c0_208 = arith.constant 0 : index
    %c0_209 = arith.constant 0 : index
    %229 = vector.load %arg11[%c0_208, %c0_209] : memref<1x128xf32, #tpu.memory_space<vmem>>, vector<1x128xf32>
    %cst_210 = arith.constant dense<0.000000e+00> : vector<128xf32>
    %230 = vector.multi_reduction <add>, %227, %cst_210 [0] : vector<32x128xf32> to vector<128xf32>
    %231 = vector.shape_cast %230 : vector<128xf32> to vector<1x128xf32>
    %cst_211 = arith.constant 3.200000e+01 : f32
    %232 = vector.broadcast %cst_211 : f32 to vector<1x128xf32>
    %233 = arith.divf %231, %232 : vector<1x128xf32>
    %234 = vector.broadcast %233 : vector<1x128xf32> to vector<32x128xf32>
    %235 = arith.subf %227, %234 : vector<32x128xf32>
    %236 = vector.broadcast %233 : vector<1x128xf32> to vector<32x128xf32>
    %237 = arith.subf %227, %236 : vector<32x128xf32>
    %238 = arith.mulf %235, %237 : vector<32x128xf32>
    %cst_212 = arith.constant dense<0.000000e+00> : vector<128xf32>
    %239 = vector.multi_reduction <add>, %238, %cst_212 [0] : vector<32x128xf32> to vector<128xf32>
    %240 = vector.shape_cast %239 : vector<128xf32> to vector<1x128xf32>
    %cst_213 = arith.constant 3.200000e+01 : f32
    %241 = vector.broadcast %cst_213 : f32 to vector<1x128xf32>
    %242 = arith.divf %240, %241 : vector<1x128xf32>
    %243 = vector.broadcast %233 : vector<1x128xf32> to vector<32x128xf32>
    %244 = arith.subf %227, %243 : vector<32x128xf32>
    %cst_214 = arith.constant 9.99999974E-6 : f32
    %245 = vector.broadcast %cst_214 : f32 to vector<1x128xf32>
    %246 = arith.addf %242, %245 : vector<1x128xf32>
    %247 = math.rsqrt %246 : vector<1x128xf32>
    %248 = vector.broadcast %247 : vector<1x128xf32> to vector<32x128xf32>
    %249 = arith.mulf %244, %248 : vector<32x128xf32>
    %250 = vector.broadcast %228 : vector<1x128xf32> to vector<32x128xf32>
    %251 = arith.mulf %249, %250 : vector<32x128xf32>
    %252 = vector.broadcast %229 : vector<1x128xf32> to vector<32x128xf32>
    %253 = arith.addf %251, %252 : vector<32x128xf32>
    %cst_215 = arith.constant 0.000000e+00 : f32
    %254 = vector.broadcast %cst_215 : f32 to vector<32x128xf32>
    %255 = arith.cmpf ogt, %253, %254 : vector<32x128xf32>
    %cst_216 = arith.constant 0.00999999977 : f32
    %256 = vector.broadcast %cst_216 : f32 to vector<32x128xf32>
    %257 = arith.mulf %256, %253 : vector<32x128xf32>
    %258 = arith.select %255, %253, %257 : vector<32x128xi1>, vector<32x128xf32>
    %259 = vector.shape_cast %258 : vector<32x128xf32> to vector<16x2x128xf32>
    %c0_217 = arith.constant 0 : index
    %c0_218 = arith.constant 0 : index
    %260 = vector.load %arg12[%c0_217, %c0_218] : memref<16x128xf32, #tpu.memory_space<vmem>>, vector<16x128xf32>
    %261 = vector.shape_cast %260 : vector<16x128xf32> to vector<16x1x128xf32>
    %262 = vector.broadcast %261 : vector<16x1x128xf32> to vector<16x2x128xf32>
    %263 = arith.mulf %259, %262 : vector<16x2x128xf32>
    %cst_219 = arith.constant dense<0.000000e+00> : vector<2x128xf32>
    %264 = vector.multi_reduction <add>, %263, %cst_219 [0] : vector<16x2x128xf32> to vector<2x128xf32>
    %cst_220 = arith.constant dense<0.000000e+00> : vector<2xf32>
    %265 = vector.multi_reduction <add>, %264, %cst_220 [1] : vector<2x128xf32> to vector<2xf32>
    %266 = vector.shape_cast %265 : vector<2xf32> to vector<2x1xf32>
    %c0_221 = arith.constant 0 : index
    %c0_222 = arith.constant 0 : index
    %267 = memref.load %arg13[%c0_221, %c0_222] : memref<1x1xf32, #tpu.memory_space<smem>>
    %268 = vector.broadcast %267 : f32 to vector<2x1xf32>
    %269 = arith.addf %266, %268 : vector<2x1xf32>
    %270 = arith.negf %269 : vector<2x1xf32>
    %271 = math.exp %270 : vector<2x1xf32>
    %cst_223 = arith.constant 1.000000e+00 : f32
    %272 = vector.broadcast %cst_223 : f32 to vector<2x1xf32>
    %273 = arith.addf %272, %271 : vector<2x1xf32>
    %274 = arith.divf %272, %273 : vector<2x1xf32>
    %c0_224 = arith.constant 0 : index
    %c0_225 = arith.constant 0 : index
    %275 = vector.load %arg14[%c0_224, %c0_225] : memref<2x1xf32, #tpu.memory_space<vmem>>, vector<2x1xf32>
    tpu.vector_store %arg14[%c0_224, %c0_225], %274 {strides = array<i32>} : memref<2x1xf32, #tpu.memory_space<vmem>>, vector<2x1xf32>,
    return
  }
  func.func @transform_0(%arg0: i32) -> (i32, i32) {
    %c0_i32 = arith.constant 0 : i32
    %c0_i32_0 = arith.constant 0 : i32
    %c0_i32_1 = arith.constant 0 : i32
    return %c0_i32, %c0_i32_0 : i32, i32
  }
  func.func @transform_1(%arg0: i32) -> (i32, i32) {
    %c0_i32 = arith.constant 0 : i32
    %c0_i32_0 = arith.constant 0 : i32
    %c0_i32_1 = arith.constant 0 : i32
    return %c0_i32, %c0_i32_0 : i32, i32
  }
  func.func @transform_2(%arg0: i32) -> (i32, i32) {
    %c0_i32 = arith.constant 0 : i32
    %c0_i32_0 = arith.constant 0 : i32
    %c0_i32_1 = arith.constant 0 : i32
    return %c0_i32, %c0_i32_0 : i32, i32
  }
  func.func @transform_3(%arg0: i32) -> (i32, i32) {
    %c0_i32 = arith.constant 0 : i32
    %c0_i32_0 = arith.constant 0 : i32
    %c0_i32_1 = arith.constant 0 : i32
    return %c0_i32, %c0_i32_0 : i32, i32
  }
  func.func @transform_4(%arg0: i32) -> (i32, i32) {
    %c0_i32 = arith.constant 0 : i32
    %c0_i32_0 = arith.constant 0 : i32
    %c0_i32_1 = arith.constant 0 : i32
    return %c0_i32, %c0_i32_0 : i32, i32
  }
  func.func @transform_5(%arg0: i32) -> (i32, i32) {
    %c0_i32 = arith.constant 0 : i32
    %c0_i32_0 = arith.constant 0 : i32
    %c0_i32_1 = arith.constant 0 : i32
    return %c0_i32, %c0_i32_0 : i32, i32
  }
  func.func @transform_6(%arg0: i32) -> (i32, i32) {
    %c0_i32 = arith.constant 0 : i32
    %c0_i32_0 = arith.constant 0 : i32
    %c0_i32_1 = arith.constant 0 : i32
    return %c0_i32, %c0_i32_0 : i32, i32
  }
  func.func @transform_7(%arg0: i32) -> (i32, i32) {
    %c0_i32 = arith.constant 0 : i32
    %c0_i32_0 = arith.constant 0 : i32
    %c0_i32_1 = arith.constant 0 : i32
    return %c0_i32, %c0_i32_0 : i32, i32
  }
  func.func @transform_8(%arg0: i32) -> (i32, i32) {
    %c0_i32 = arith.constant 0 : i32
    %c0_i32_0 = arith.constant 0 : i32
    %c0_i32_1 = arith.constant 0 : i32
    return %c0_i32, %c0_i32_0 : i32, i32
  }
  func.func @transform_9(%arg0: i32) -> (i32, i32) {
    %c0_i32 = arith.constant 0 : i32
    %c0_i32_0 = arith.constant 0 : i32
    %c0_i32_1 = arith.constant 0 : i32
    return %c0_i32, %c0_i32_0 : i32, i32
  }
  func.func @transform_10(%arg0: i32) -> (i32, i32) {
    %c0_i32 = arith.constant 0 : i32
    %c0_i32_0 = arith.constant 0 : i32
    %c0_i32_1 = arith.constant 0 : i32
    return %c0_i32, %c0_i32_0 : i32, i32
  }
  func.func @transform_11(%arg0: i32) -> (i32, i32) {
    %c0_i32 = arith.constant 0 : i32
    %c0_i32_0 = arith.constant 0 : i32
    %c0_i32_1 = arith.constant 0 : i32
    return %c0_i32, %c0_i32_0 : i32, i32
  }
  func.func @transform_12(%arg0: i32) -> (i32, i32) {
    %c0_i32 = arith.constant 0 : i32
    %c0_i32_0 = arith.constant 0 : i32
    %c0_i32_1 = arith.constant 0 : i32
    return %c0_i32, %c0_i32_0 : i32, i32
  }
  func.func @transform_13(%arg0: i32) -> (i32, i32) {
    %c0_i32 = arith.constant 0 : i32
    %c0_i32_0 = arith.constant 0 : i32
    %c0_i32_1 = arith.constant 0 : i32
    return %c0_i32, %c0_i32_0 : i32, i32
  }
}

</mosaic_0001>

<bundles_post_ra>
// kernel: discriminator_forward.1
= control target key start
LH: loop header
LB: loop body
LE: loop exit
PB: predicated region body
PF: predicated region fallthrough
CT: control target
= control target key end

     0   :  { %vm399_vm0 = vcmask 1040384   ;;  %vm206_vm1 = vcmask 72704   ;;  %vm46_vm6 = vcmask 261120   ;;  %s4555_s17 = smov 32   ;;  %s7043_s1 = inlined_call_operand.vmem [shape: f32[9,32], index: 1, kind: input, shape index: {}]   ;;  %s7044_s0 = inlined_call_operand.vmem [shape: f32[512,9], index: 0, kind: input, shape index: {}]   ;;  %s7045_s2 = inlined_call_operand.vmem [shape: f32[1,32], index: 2, kind: input, shape index: {}]   ;;  %s7046_s3 = inlined_call_operand.vmem [shape: bf16[288,64], index: 3, kind: input, shape index: {}]   ;;  %s7047_s4 = inlined_call_operand.vmem [shape: f32[1,64], index: 4, kind: input, shape index: {}]   ;;  %s7048_s5 = inlined_call_operand.vmem [shape: f32[1,64], index: 5, kind: input, shape index: {}]   ;;  %s7049_s6 = inlined_call_operand.vmem [shape: f32[1,64], index: 6, kind: input, shape index: {}]   ;;  %s7050_s7 = inlined_call_operand.vmem [shape: bf16[576,128], index: 7, kind: input, shape index: {}]   ;;  %s7051_s8 = inlined_call_operand.vmem [shape: f32[1,128], index: 8, kind: input, shape index: {}]   ;;  %s7052_s9 = inlined_call_operand.vmem [shape: f32[1,128], index: 9, kind: input, shape index: {}]   ;;  %s7053_s10 = inlined_call_operand.vmem [shape: f32[1,128], index: 10, kind: input, shape index: {}]   ;;  %s7054_s11 = inlined_call_operand.vmem [shape: f32[16,128], index: 11, kind: input, shape index: {}]   ;;  %s7055_s12 = inlined_call_operand.<no memory space> [shape: f32[1,1], index: 12, kind: input, shape index: {}]   ;;  %s7056_s13 = inlined_call_operand.vmem [shape: f32[2,1], index: 13, kind: output, shape index: {}]  }
   0x1   :  { %v201_v0 = vld [vmem:[%s7043_s1 + $0x8] sm:$0x1]  ;;  %v200_v1 = vld [vmem:[%s7043_s1] sm:$0xff]  ;;  %v138_v4 = vld [vmem:[%s7044_s0 + $0x10] sm:$0xff] }
   0x2   :  { %3872 = vmatpush.msk.msra.mxu0 %vm399_vm0, %v201_v0  ;;  %v136_v2 = vld [vmem:[%s7044_s0] sm:$0xff]  ;;  %4219 = vmatpush.msk.msra.mxu2 %vm399_vm0, %v201_v0  ;;  %v137_v3 = vld [vmem:[%s7044_s0 + $0x8] sm:$0xff]  ;;  %v139_v5 = vld [vmem:[%s7044_s0 + $0x18] sm:$0xff] }
   0x3   :  { %4218 = vmatpush.msk.msra.mxu1 %vm399_vm0, %v201_v0  ;;  %v140_v6 = vld [vmem:[%s7044_s0 + $0x20] sm:$0xff]  ;;  %v141_v7 = vld [vmem:[%s7044_s0 + $0x28] sm:$0xff]  ;;  %v174_v8 = vld [vmem:[%s7044_s0 + $0x130] sm:$0xff] }
   0x4   :  { %418 = vmatpush.msra.mxu0 %v200_v1  ;;  %4221 = vmatpush.msra.mxu2 %v200_v1  ;;  %v142_v9 = vld [vmem:[%s7044_s0 + $0x30] sm:$0xff]  ;;  %v175_v10 = vld [vmem:[%s7044_s0 + $0x138] sm:$0xff]  ;;  %v176_v12 = vld [vmem:[%s7044_s0 + $0x140] sm:$0xff] }
   0x5   :  { %3873 = vmatmul.msk.f32.vlgmr.msra.gmra.mxu0 %vm206_vm1, %v136_v2  ;;  %4220 = vmatpush.msra.mxu1 %v200_v1  ;;  %v143_v11 = vld [vmem:[%s7044_s0 + $0x38] sm:$0xff]  ;;  %v144_v13 = vld [vmem:[%s7044_s0 + $0x40] sm:$0xff]  ;;  %v177_v14 = vld [vmem:[%s7044_s0 + $0x148] sm:$0xff] }
   0x6   :  { %3911 = vmatmul.msk.f32.vlgmr.msra.gmra.mxu2 %vm206_vm1, %v174_v8  ;;  %v145_v15 = vld [vmem:[%s7044_s0 + $0x48] sm:$0xff]  ;;  %v178_v16 = vld [vmem:[%s7044_s0 + $0x150] sm:$0xff]  ;;  %v179_v18 = vld [vmem:[%s7044_s0 + $0x158] sm:$0xff] }
   0x7   :  { %v146_v17 = vld [vmem:[%s7044_s0 + $0x50] sm:$0xff]  ;;  %v147_v19 = vld [vmem:[%s7044_s0 + $0x58] sm:$0xff]  ;;  %v180_v20 = vld [vmem:[%s7044_s0 + $0x160] sm:$0xff] }
   0x8   :  { %v148_v21 = vld [vmem:[%s7044_s0 + $0x60] sm:$0xff]  ;;  %v181_v22 = vld [vmem:[%s7044_s0 + $0x168] sm:$0xff]  ;;  %v182_v24 = vld [vmem:[%s7044_s0 + $0x170] sm:$0xff] }
   0x9   :  { %v149_v23 = vld [vmem:[%s7044_s0 + $0x68] sm:$0xff]  ;;  %v150_v25 = vld [vmem:[%s7044_s0 + $0x70] sm:$0xff]  ;;  %v183_v26 = vld [vmem:[%s7044_s0 + $0x178] sm:$0xff] }
   0xa   :  { %v151_v27 = vld [vmem:[%s7044_s0 + $0x78] sm:$0xff]  ;;  %v184_v28 = vld [vmem:[%s7044_s0 + $0x180] sm:$0xff]  ;;  %v185_v34 = vld [vmem:[%s7044_s0 + $0x188] sm:$0xff] }
   0xb   :  { %v4744_v29 = vld [vmem:[%s7045_s2] ss:$0 sm:$0xff]  ;;  %v153_v38 = vld [vmem:[%s7044_s0 + $0x88] sm:$0xff]  ;;  %v186_v41 = vld [vmem:[%s7044_s0 + $0x190] sm:$0xff] }
   0xc   :  { %v152_v31 = vld [vmem:[%s7044_s0 + $0x80] sm:$0xff]  ;;  %v154_v45 = vld [vmem:[%s7044_s0 + $0x90] sm:$0xff]  ;;  %v187_v48 = vld [vmem:[%s7044_s0 + $0x198] sm:$0xff] }
   0xd   :  { %3874 = vmatmul.msk.f32.gmra.mxu0 %vm206_vm1, %v137_v3  ;;  %v155_v52 = vld [vmem:[%s7044_s0 + $0x98] sm:$0xff]  ;;  %v188_v56 = vld [vmem:[%s7044_s0 + $0x1a0] sm:$0xff]  ;;  %v189_v61 = vld [vmem:[%s7044_s0 + $0x1a8] sm:$0xff] }
   0xe   :  { %3912 = vmatmul.msk.f32.gmra.mxu2 %vm206_vm1, %v175_v10  ;;  %v156_v60 = vld [vmem:[%s7044_s0 + $0xa0] sm:$0xff]  ;;  %v157_v0 = vld [vmem:[%s7044_s0 + $0xa8] sm:$0xff]  ;;  %v190_v1 = vld [vmem:[%s7044_s0 + $0x1b0] sm:$0xff] }
   0xf   :  { %v158_v3 = vld [vmem:[%s7044_s0 + $0xb0] sm:$0xff]  ;;  %v192_v10 = vld [vmem:[%s7044_s0 + $0x1c0] sm:$0xff] }
  0x15   :  { %3875 = vmatmul.msk.f32.gmra.mxu0 %vm206_vm1, %v138_v4 }
  0x16   :  { %3913 = vmatmul.msk.f32.gmra.mxu2 %vm206_vm1, %v176_v12  ;;  %v160_v12 = vld [vmem:[%s7044_s0 + $0xc0] sm:$0xff] }
  0x1d   :  { %3876 = vmatmul.msk.f32.gmra.mxu0 %vm206_vm1, %v139_v5  ;;  %v191_v5 = vld [vmem:[%s7044_s0 + $0x1b8] sm:$0xff] }
  0x1e   :  { %3914 = vmatmul.msk.f32.gmra.mxu2 %vm206_vm1, %v177_v14 }
  0x25   :  { %3877 = vmatmul.msk.f32.gmra.mxu0 %vm206_vm1, %v140_v6 }
  0x26   :  { %3915 = vmatmul.msk.f32.gmra.mxu2 %vm206_vm1, %v178_v16 }
  0x2d   :  { %3878 = vmatmul.msk.f32.gmra.mxu0 %vm206_vm1, %v141_v7  ;;  %v159_v7 = vld [vmem:[%s7044_s0 + $0xb8] sm:$0xff] }
  0x2e   :  { %3916 = vmatmul.msk.f32.gmra.mxu2 %vm206_vm1, %v179_v18 }
  0x35   :  { %3879 = vmatmul.msk.f32.gmra.mxu0 %vm206_vm1, %v142_v9  ;;  %v170_v9 = vld [vmem:[%s7044_s0 + $0x110] sm:$0xff] }
  0x36   :  { %3917 = vmatmul.msk.f32.gmra.mxu2 %vm206_vm1, %v180_v20  ;;  %3907 = vmatmul.msk.f32.vlgmr.msra.gmra.mxu1 %vm206_vm1, %v170_v9 }
  0x3d   :  { %3880 = vmatmul.msk.f32.gmra.mxu0 %vm206_vm1, %v143_v11 }
  0x3e   :  { %3918 = vmatmul.msk.f32.gmra.mxu2 %vm206_vm1, %v181_v22 }
  0x45   :  { %3881 = vmatmul.msk.f32.gmra.mxu0 %vm206_vm1, %v144_v13 }
  0x46   :  { %3919 = vmatmul.msk.f32.gmra.mxu2 %vm206_vm1, %v182_v24 }
  0x4d   :  { %3882 = vmatmul.msk.f32.gmra.mxu0 %vm206_vm1, %v145_v15  ;;  %v171_v15 = vld [vmem:[%s7044_s0 + $0x118] sm:$0xff] }
  0x4e   :  { %3920 = vmatmul.msk.f32.gmra.mxu2 %vm206_vm1, %v183_v26  ;;  %3908 = vmatmul.msk.f32.gmra.mxu1 %vm206_vm1, %v171_v15 }
  0x55   :  { %3883 = vmatmul.msk.f32.gmra.mxu0 %vm206_vm1, %v146_v17  ;;  %v193_v17 = vld [vmem:[%s7044_s0 + $0x1c8] sm:$0xff] }
  0x56   :  { %3921 = vmatmul.msk.f32.gmra.mxu2 %vm206_vm1, %v184_v28 }
  0x5d   :  { %3884 = vmatmul.msk.f32.gmra.mxu0 %vm206_vm1, %v147_v19 }
  0x5e   :  { %3922 = vmatmul.msk.f32.gmra.mxu2 %vm206_vm1, %v185_v34  ;;  %v195_v34 = vld [vmem:[%s7044_s0 + $0x1d8] sm:$0xff] }
  0x65   :  { %3885 = vmatmul.msk.f32.gmra.mxu0 %vm206_vm1, %v148_v21  ;;  %v161_v21 = vld [vmem:[%s7044_s0 + $0xc8] sm:$0xff] }
  0x66   :  { %3923 = vmatmul.msk.f32.gmra.mxu2 %vm206_vm1, %v186_v41  ;;  %v163_v41 = vld [vmem:[%s7044_s0 + $0xd8] sm:$0xff] }
  0x6d   :  { %3886 = vmatmul.msk.f32.gmra.mxu0 %vm206_vm1, %v149_v23 }
  0x6e   :  { %3924 = vmatmul.msk.f32.gmra.mxu2 %vm206_vm1, %v187_v48 }
  0x75   :  { %3887 = vmatmul.msk.f32.gmra.mxu0 %vm206_vm1, %v150_v25  ;;  %v194_v25 = vld [vmem:[%s7044_s0 + $0x1d0] sm:$0xff] }
  0x76   :  { %3925 = vmatmul.msk.f32.gmra.mxu2 %vm206_vm1, %v188_v56  ;;  %v165_v56 = vld [vmem:[%s7044_s0 + $0xe8] sm:$0xff] }
  0x7d   :  { %3888 = vmatmul.msk.f32.gmra.mxu0 %vm206_vm1, %v151_v27 }
  0x7e   :  { %3926 = vmatmul.msk.f32.gmra.mxu2 %vm206_vm1, %v189_v61 }
  0x82   :  { %v420_v30 = vpop.f32.mrf.mxu0 }
  0x83   :  { %v421_v32 = vadd.f32 %v4744_v29, %v420_v30  ;;  %v162_v30 = vld [vmem:[%s7044_s0 + $0xd0] sm:$0xff] }
  0x85   :  { %vm612_vm2 = vcmp.gt.f32.partialorder %v421_v32, 0.0  ;;  %v676_v33 = vmul.f32 0.01, %v421_v32  ;;  %3889 = vmatmul.msk.f32.gmra.mxu0 %vm206_vm1, %v152_v31 }
  0x86   :  { %3927 = vmatmul.msk.f32.gmra.mxu2 %vm206_vm1, %v190_v1  ;;  %v167_v1 = vld [vmem:[%s7044_s0 + $0xf8] sm:$0xff] }
  0x87   :  { %v4755_v35 = vsel %vm612_vm2, %v421_v32, %v676_v33 }
  0x88   :  { %v7064_v36 = vrot.slane %v4755_v35, 4  ;;  %868 = vst [vmem:[#allocation1] ss:$4 sm:$0xff] %v4755_v35 }
  0x89   :  { %v4834_v4 = vpop.f32.mrf.mxu2 }
  0x8a   :  { %870 = vst [vmem:[#allocation1 + $0x1] ss:$4 sm:$0xff] %v7064_v36  ;;  %v423_v37 = vpop.f32.mrf.mxu0 }
  0x8b   :  { %v424_v39 = vadd.f32 %v4744_v29, %v423_v37  ;;  %7108 = vst [vmem:[#allocation6_spill] sm:$0xff] %v4834_v4 }
  0x8d   :  { %vm613_vm3 = vcmp.gt.f32.partialorder %v424_v39, 0.0  ;;  %v677_v40 = vmul.f32 0.01, %v424_v39  ;;  %3890 = vmatmul.msk.f32.gmra.mxu0 %vm206_vm1, %v153_v38 }
  0x8e   :  { %3928 = vmatmul.msk.f32.gmra.mxu2 %vm206_vm1, %v191_v5 }
  0x8f   :  { %v4770_v42 = vsel %vm613_vm3, %v424_v39, %v677_v40 }
  0x90   :  { %v7073_v43 = vrot.slane %v4770_v42, 4  ;;  %872 = vst [vmem:[#allocation1 + $0x2] ss:$4 sm:$0xff] %v4770_v42 }
  0x91   :  { %v4846_v8 = vpop.f32.mrf.mxu2 }
  0x92   :  { %874 = vst [vmem:[#allocation1 + $0x3] ss:$4 sm:$0xff] %v7073_v43  ;;  %v426_v44 = vpop.f32.mrf.mxu0 }
  0x93   :  { %v427_v46 = vadd.f32 %v4744_v29, %v426_v44  ;;  %7110 = vst [vmem:[#allocation8_spill] sm:$0xff] %v4846_v8 }
  0x95   :  { %vm614_vm4 = vcmp.gt.f32.partialorder %v427_v46, 0.0  ;;  %v678_v47 = vmul.f32 0.01, %v427_v46  ;;  %3891 = vmatmul.msk.f32.gmra.mxu0 %vm206_vm1, %v154_v45 }
  0x96   :  { %3929 = vmatmul.msk.f32.gmra.mxu2 %vm206_vm1, %v192_v10 }
  0x97   :  { %v4785_v49 = vsel %vm614_vm4, %v427_v46, %v678_v47 }
  0x98   :  { %v7062_v50 = vrot.slane %v4785_v49, 4  ;;  %876 = vst [vmem:[#allocation1 + $0x20] ss:$4 sm:$0xff] %v4785_v49 }
  0x99   :  { %v883_v55 = vld.sshfl [vmem:[#allocation1] sm:$0xff pattern:$0x73625140]  ;;  %v4860_v13 = vpop.f32.mrf.mxu2 }
  0x9a   :  { %878 = vst [vmem:[#allocation1 + $0x21] ss:$4 sm:$0xff] %v7062_v50  ;;  %v429_v51 = vpop.f32.mrf.mxu0 }
  0x9b   :  { %v430_v53 = vadd.f32 %v4744_v29, %v429_v51  ;;  %971 = vst.msk [vmem:[#allocation2 + $0x288] sm:$0xff] %vm46_vm6, %v883_v55 }
  0x9d   :  { %vm615_vm5 = vcmp.gt.f32.partialorder %v430_v53, 0.0  ;;  %v679_v54 = vmul.f32 0.01, %v430_v53  ;;  %3892 = vmatmul.msk.f32.gmra.mxu0 %vm206_vm1, %v155_v52  ;;  %v164_v52 = vld [vmem:[%s7044_s0 + $0xe0] sm:$0xff] }
  0x9e   :  { %3930 = vmatmul.msk.f32.gmra.mxu2 %vm206_vm1, %v193_v17 }
  0x9f   :  { %v4800_v57 = vsel %vm615_vm5, %v430_v53, %v679_v54 }
  0xa0   :  { %v7072_v58 = vrot.slane %v4800_v57, 4  ;;  %880 = vst [vmem:[#allocation1 + $0x22] ss:$4 sm:$0xff] %v4800_v57 }
  0xa1   :  { %v4881_v22 = vpop.f32.mrf.mxu2 }
  0xa2   :  { %882 = vst [vmem:[#allocation1 + $0x23] ss:$4 sm:$0xff] %v7072_v58  ;;  %v4808_v59 = vpop.f32.mrf.mxu0 }
  0xa5   :  { %3893 = vmatmul.msk.f32.gmra.mxu0 %vm206_vm1, %v156_v60 }
  0xa6   :  { %3931 = vmatmul.msk.f32.gmra.mxu2 %vm206_vm1, %v194_v25 }
  0xa9   :  { %v884_v62 = vld.sshfl [vmem:[#allocation1 + $0x20] sm:$0xff pattern:$0x73625140]  ;;  %v4898_v31 = vpop.f32.mrf.mxu2 }
  0xaa   :  { %v4818_v63 = vpop.f32.mrf.mxu0  ;;  %972 = vst.msk [vmem:[#allocation2 + $0x290] sm:$0xff] %vm46_vm6, %v884_v62  ;;  %v166_v62 = vld [vmem:[%s7044_s0 + $0xf0] sm:$0xff] }
  0xad   :  { %3894 = vmatmul.msk.f32.gmra.mxu0 %vm206_vm1, %v157_v0 }
  0xae   :  { %3932 = vmatmul.msk.f32.gmra.mxu2 %vm206_vm1, %v195_v34 }
  0xb1   :  { %v4917_v45 = vpop.f32.mrf.mxu2 }
  0xb2   :  { %v4829_v2 = vpop.f32.mrf.mxu0 }
  0xb3   :  { %7107 = vst [vmem:[#allocation5_spill] sm:$0xff] %v4829_v2 }
  0xb5   :  { %3895 = vmatmul.msk.f32.gmra.mxu0 %vm206_vm1, %v158_v3 }
  0xb9   :  { %v4932_v53 = vpop.f32.mrf.mxu2 }
  0xba   :  { %v4841_v6 = vpop.f32.mrf.mxu0  ;;  %7111 = vst [vmem:[#allocation9_spill] sm:$0xff] %v4932_v53 }
  0xbb   :  { %7109 = vst [vmem:[#allocation7_spill] sm:$0xff] %v4841_v6 }
  0xbd   :  { %3896 = vmatmul.msk.f32.gmra.mxu0 %vm206_vm1, %v159_v7  ;;  %v168_v7 = vld [vmem:[%s7044_s0 + $0x100] sm:$0xff] }
  0xc1   :  { %v4941_v60 = vpop.f32.mrf.mxu2 }
  0xc2   :  { %v444_v11 = vpop.f32.mrf.mxu0  ;;  %7112 = vst [vmem:[#allocation10_spill] sm:$0xff] %v4941_v60 }
  0xc3   :  { %v445_v14 = vadd.f32 %v4744_v29, %v444_v11 }
  0xc5   :  { %vm620_vm7 = vcmp.gt.f32.partialorder %v445_v14, 0.0  ;;  %v684_v16 = vmul.f32 0.01, %v445_v14  ;;  %3897 = vmatmul.msk.f32.gmra.mxu0 %vm206_vm1, %v160_v12 }
  0xc7   :  { %v4871_v18 = vsel %vm620_vm7, %v445_v14, %v684_v16  ;;  %v169_v16 = vld [vmem:[%s7044_s0 + $0x108] sm:$0xff] }
  0xc8   :  { %v7061_v19 = vrot.slane %v4871_v18, 4  ;;  %885 = vst [vmem:[#allocation1] ss:$4 sm:$0xff] %v4871_v18  ;;  %v7139_v8 = vrot.slane %v4871_v18, 4 }
  0xc9   :  { %v4954_v3 = vpop.f32.mrf.mxu2 }
  0xca   :  { %886 = vst [vmem:[#allocation1 + $0x1] ss:$4 sm:$0xff] %v7061_v19  ;;  %v447_v20 = vpop.f32.mrf.mxu0 }
  0xcb   :  { %v448_v23 = vadd.f32 %v4744_v29, %v447_v20  ;;  %7115 = vst [vmem:[#allocation13_spill] sm:$0xff] %v4954_v3 }
  0xcd   :  { %vm621_vm8 = vcmp.gt.f32.partialorder %v448_v23, 0.0  ;;  %v685_v24 = vmul.f32 0.01, %v448_v23  ;;  %3898 = vmatmul.msk.f32.gmra.mxu0 %vm206_vm1, %v161_v21 }
  0xcf   :  { %v4888_v26 = vsel %vm621_vm8, %v448_v23, %v685_v24 }
  0xd0   :  { %v7070_v27 = vrot.slane %v4888_v26, 4  ;;  %887 = vst [vmem:[#allocation1 + $0x2] ss:$4 sm:$0xff] %v4888_v26 }
  0xd1   :  { %v4961_v10 = vpop.f32.mrf.mxu2 }
  0xd2   :  { %888 = vst [vmem:[#allocation1 + $0x3] ss:$4 sm:$0xff] %v7070_v27  ;;  %v450_v28 = vpop.f32.mrf.mxu0 }
  0xd3   :  { %v451_v32 = vadd.f32 %v4744_v29, %v450_v28  ;;  %7116 = vst [vmem:[#allocation14_spill] sm:$0xff] %v4961_v10 }
  0xd5   :  { %vm622_vm9 = vcmp.gt.f32.partialorder %v451_v32, 0.0  ;;  %v686_v33 = vmul.f32 0.01, %v451_v32  ;;  %3899 = vmatmul.msk.f32.gmra.mxu0 %vm206_vm1, %v162_v30 }
  0xd7   :  { %v4905_v37 = vsel %vm622_vm9, %v451_v32, %v686_v33 }
  0xd8   :  { %v7060_v38 = vrot.slane %v4905_v37, 4  ;;  %889 = vst [vmem:[#allocation1 + $0x20] ss:$4 sm:$0xff] %v4905_v37 }
  0xd9   :  { %v893_v39 = vld.sshfl [vmem:[#allocation1] sm:$0xff pattern:$0x73625140]  ;;  %v4975_v21 = vpop.f32.mrf.mxu2 }
  0xda   :  { %890 = vst [vmem:[#allocation1 + $0x21] ss:$4 sm:$0xff] %v7060_v38  ;;  %v453_v40 = vpop.f32.mrf.mxu0 }
  0xdb   :  { %v454_v44 = vadd.f32 %v4744_v29, %v453_v40  ;;  %973 = vst.msk [vmem:[#allocation2 + $0x2a0] sm:$0xff] %vm46_vm6, %v893_v39 }
  0xdd   :  { %vm623_vm10 = vcmp.gt.f32.partialorder %v454_v44, 0.0  ;;  %v687_v46 = vmul.f32 0.01, %v454_v44  ;;  %3900 = vmatmul.msk.f32.gmra.mxu0 %vm206_vm1, %v163_v41 }
  0xdf   :  { %v4920_v47 = vsel %vm623_vm10, %v454_v44, %v687_v46 }
  0xe0   :  { %v7068_v48 = vrot.slane %v4920_v47, 4  ;;  %891 = vst [vmem:[#allocation1 + $0x22] ss:$4 sm:$0xff] %v4920_v47 }
  0xe1   :  { %v4988_v34 = vpop.f32.mrf.mxu2 }
  0xe2   :  { %892 = vst [vmem:[#allocation1 + $0x23] ss:$4 sm:$0xff] %v7068_v48  ;;  %v4926_v51 = vpop.f32.mrf.mxu0 }
  0xe5   :  { %3901 = vmatmul.msk.f32.gmra.mxu0 %vm206_vm1, %v164_v52 }
  0xe9   :  { %v894_v54 = vld.sshfl [vmem:[#allocation1 + $0x20] sm:$0xff pattern:$0x73625140] }
  0xea   :  { %v4934_v55 = vpop.f32.mrf.mxu0  ;;  %974 = vst.msk [vmem:[#allocation2 + $0x2a8] sm:$0xff] %vm46_vm6, %v894_v54 }
  0xed   :  { %3902 = vmatmul.msk.f32.gmra.mxu0 %vm206_vm1, %v165_v56  ;;  %v5002_v56 = vpop.f32.mrf.mxu2 }
  0xf2   :  { %v4943_v61 = vpop.f32.mrf.mxu0 }
  0xf3   :  { %7113 = vst [vmem:[#allocation11_spill] sm:$0xff] %v4943_v61 }
  0xf5   :  { %3903 = vmatmul.msk.f32.gmra.mxu0 %vm206_vm1, %v166_v62 }
  0xfa   :  { %v4949_v0 = vpop.f32.mrf.mxu0 }
  0xfb   :  { %7114 = vst [vmem:[#allocation12_spill] sm:$0xff] %v4949_v0 }
  0xfd   :  { %3904 = vmatmul.msk.f32.gmra.mxu0 %vm206_vm1, %v167_v1 }
 0x102   :  { %v468_v5 = vpop.f32.mrf.mxu0 }
 0x103   :  { %v469_v9 = vadd.f32 %v4744_v29, %v468_v5  ;;  %v5007_v5 = vpop.f32.mrf.mxu2 }
 0x104   :  { %v574_v58 = vadd.f32 %v4744_v29, %v5007_v5 }
 0x105   :  { %vm628_vm11 = vcmp.gt.f32.partialorder %v469_v9, 0.0  ;;  %v692_v11 = vmul.f32 0.01, %v469_v9  ;;  %3905 = vmatmul.msk.f32.gmra.mxu0 %vm206_vm1, %v168_v7 }
 0x106   :  { %vm663_vm9 = vcmp.gt.f32.partialorder %v574_v58, 0.0 }
 0x107   :  { %v4964_v12 = vsel %vm628_vm11, %v469_v9, %v692_v11 }
 0x108   :  { %v7059_v14 = vrot.slane %v4964_v12, 4  ;;  %895 = vst [vmem:[#allocation1] ss:$4 sm:$0xff] %v4964_v12 }
 0x10a   :  { %896 = vst [vmem:[#allocation1 + $0x1] ss:$4 sm:$0xff] %v7059_v14  ;;  %v471_v15 = vpop.f32.mrf.mxu0 }
 0x10b   :  { %v472_v17 = vadd.f32 %v4744_v29, %v471_v15  ;;  %v5011_v9 = vpop.f32.mrf.mxu2 }
 0x10c   :  { %7120 = vst [vmem:[#allocation18_spill] sm:$0xff] %v5011_v9 }
 0x10d   :  { %vm629_vm12 = vcmp.gt.f32.partialorder %v472_v17, 0.0  ;;  %v693_v20 = vmul.f32 0.01, %v472_v17  ;;  %3906 = vmatmul.msk.f32.gmra.mxu0 %vm206_vm1, %v169_v16 }
 0x10f   :  { %v4977_v23 = vsel %vm629_vm12, %v472_v17, %v693_v20 }
 0x110   :  { %v7067_v24 = vrot.slane %v4977_v23, 4  ;;  %897 = vst [vmem:[#allocation1 + $0x2] ss:$4 sm:$0xff] %v4977_v23 }
 0x112   :  { %898 = vst [vmem:[#allocation1 + $0x3] ss:$4 sm:$0xff] %v7067_v24  ;;  %v474_v25 = vpop.f32.mrf.mxu0 }
 0x113   :  { %v475_v28 = vadd.f32 %v4744_v29, %v474_v25  ;;  %v5015_v15 = vpop.f32.mrf.mxu2 }
 0x114   :  { %7122 = vst [vmem:[#allocation20_spill] sm:$0xff] %v5015_v15 }
 0x115   :  { %vm630_vm13 = vcmp.gt.f32.partialorder %v475_v28, 0.0  ;;  %v694_v30 = vmul.f32 0.01, %v475_v28 }
 0x117   :  { %v4984_v32 = vsel %vm630_vm13, %v475_v28, %v694_v30 }
 0x118   :  { %v7058_v33 = vrot.slane %v4984_v32, 4  ;;  %899 = vst [vmem:[#allocation1 + $0x20] ss:$4 sm:$0xff] %v4984_v32 }
 0x119   :  { %v903_v39 = vld.sshfl [vmem:[#allocation1] sm:$0xff pattern:$0x73625140] }
 0x11a   :  { %900 = vst [vmem:[#allocation1 + $0x21] ss:$4 sm:$0xff] %v7058_v33  ;;  %v477_v40 = vpop.f32.mrf.mxu0 }
 0x11b   :  { %v478_v41 = vadd.f32 %v4744_v29, %v477_v40  ;;  %975 = vst.msk [vmem:[#allocation2 + $0x2b8] sm:$0xff] %vm46_vm6, %v903_v39  ;;  %v5024_v39 = vpop.f32.mrf.mxu2 }
 0x11c   :  { %7123 = vst [vmem:[#allocation21_spill] sm:$0xff] %v5024_v39 }
 0x11d   :  { %vm631_vm14 = vcmp.gt.f32.partialorder %v478_v41, 0.0  ;;  %v695_v44 = vmul.f32 0.01, %v478_v41 }
 0x11f   :  { %v4994_v46 = vsel %vm631_vm14, %v478_v41, %v695_v44 }
 0x120   :  { %v7066_v52 = vrot.slane %v4994_v46, 4  ;;  %901 = vst [vmem:[#allocation1 + $0x22] ss:$4 sm:$0xff] %v4994_v46 }
 0x122   :  { %902 = vst [vmem:[#allocation1 + $0x23] ss:$4 sm:$0xff] %v7066_v52  ;;  %v5000_v54 = vpop.f32.mrf.mxu0  ;;  %v547_v52 = vadd.f32 %v4744_v29, %v4898_v31 }
 0x123   :  { %7117 = vst [vmem:[#allocation15_spill] sm:$0xff] %v5000_v54 }
 0x124   :  { %vm654_vm7 = vcmp.gt.f32.partialorder %v547_v52, 0.0 }
 0x129   :  { %v904_v62 = vld.sshfl [vmem:[#allocation1 + $0x20] sm:$0xff pattern:$0x73625140] }
 0x12a   :  { %v5004_v1 = vpop.f32.mrf.mxu0  ;;  %976 = vst.msk [vmem:[#allocation2 + $0x2c0] sm:$0xff] %vm46_vm6, %v904_v62 }
 0x12b   :  { %7118 = vst [vmem:[#allocation16_spill] sm:$0xff] %v5004_v1 }
 0x132   :  { %v5009_v7 = vpop.f32.mrf.mxu0 }
 0x133   :  { %7119 = vst [vmem:[#allocation17_spill] sm:$0xff] %v5009_v7 }
 0x13a   :  { %v5013_v11 = vpop.f32.mrf.mxu0 }
 0x13b   :  { %7121 = vst [vmem:[#allocation19_spill] sm:$0xff] %v5013_v11 }
 0x142   :  { %v492_v16 = vpop.f32.mrf.mxu0 }
 0x143   :  { %v493_v17 = vadd.f32 %v4744_v29, %v492_v16  ;;  %v522_v16 = vpop.f32.mrf.mxu1 }
 0x145   :  { %vm636_vm15 = vcmp.gt.f32.partialorder %v493_v17, 0.0  ;;  %v700_v20 = vmul.f32 0.01, %v493_v17 }
 0x147   :  { %v5018_v25 = vsel %vm636_vm15, %v493_v17, %v700_v20 }
 0x148   :  { %v7057_v28 = vrot.slane %v5018_v25, 4  ;;  %905 = vst [vmem:[#allocation1] ss:$4 sm:$0xff] %v5018_v25  ;;  %v7147_v7 = vrot.slane %v5018_v25, 4 }
 0x14a   :  { %906 = vst [vmem:[#allocation1 + $0x1] ss:$4 sm:$0xff] %v7057_v28  ;;  %v495_v30 = vpop.f32.mrf.mxu0  ;;  %v5034_v28 = vpop.f32.mrf.mxu2 }
 0x14b   :  { %v496_v40 = vadd.f32 %v4744_v29, %v495_v30  ;;  %7124 = vst [vmem:[#allocation22_spill] sm:$0xff] %v5034_v28  ;;  %v525_v19 = vpop.f32.mrf.mxu1 }
 0x14d   :  { %vm637_vm0 = vcmp.gt.f32.partialorder %v496_v40, 0.0  ;;  %v701_v41 = vmul.f32 0.01, %v496_v40 }
 0x14f   :  { %v5027_v44 = vsel %vm637_vm0, %v496_v40, %v701_v41 }
 0x150   :  { %v7063_v62 = vrot.slane %v5027_v44, 4  ;;  %907 = vst [vmem:[#allocation1 + $0x2] ss:$4 sm:$0xff] %v5027_v44 }
 0x152   :  { %908 = vst [vmem:[#allocation1 + $0x3] ss:$4 sm:$0xff] %v7063_v62  ;;  %v498_v17 = vpop.f32.mrf.mxu0 }
 0x153   :  { %v499_v20 = vadd.f32 %v4744_v29, %v498_v17  ;;  %v523_v17 = vadd.f32 %v4744_v29, %v522_v16 }
 0x155   :  { %vm638_vm2 = vcmp.gt.f32.partialorder %v499_v20, 0.0  ;;  %v702_v33 = vmul.f32 0.01, %v499_v20  ;;  %vm646_vm4 = vcmp.gt.f32.partialorder %v523_v17, 0.0 }
 0x157   :  { %v5036_v30 = vsel %vm638_vm2, %v499_v20, %v702_v33  ;;  %v526_v33 = vadd.f32 %v4744_v29, %v525_v19  ;;  %v5046_v20 = vpop.f32.mrf.mxu2 }
 0x158   :  { %v7065_v40 = vrot.slane %v5036_v30, 4  ;;  %909 = vst [vmem:[#allocation1 + $0x20] ss:$4 sm:$0xff] %v5036_v30  ;;  %v7149_v61 = vrot.slane %v5036_v30, 4 }
 0x159   :  { %v913_v41 = vld.sshfl [vmem:[#allocation1] sm:$0xff pattern:$0x73625140]  ;;  %v711_v16 = vmul.f32 0.01, %v526_v33  ;;  %vm647_vm5 = vcmp.gt.f32.partialorder %v526_v33, 0.0 }
 0x15a   :  { %910 = vst [vmem:[#allocation1 + $0x21] ss:$4 sm:$0xff] %v7065_v40  ;;  %v501_v14 = vpop.f32.mrf.mxu0  ;;  %v710_v40 = vmul.f32 0.01, %v523_v17 }
 0x15b   :  { %v502_v38 = vadd.f32 %v4744_v29, %v501_v14  ;;  %977 = vst.msk [vmem:[#allocation2 + $0x2d0] sm:$0xff] %vm46_vm6, %v913_v41  ;;  %v5058_v19 = vsel %vm647_vm5, %v526_v33, %v711_v16 }
 0x15c   :  { %v5056_v41 = vsel %vm646_vm4, %v523_v17, %v710_v40  ;;  %v7074_v48 = vrot.slane %v5058_v19, 4  ;;  %v550_v40 = vadd.f32 %v4744_v29, %v4917_v45  ;;  %v718_v17 = vmul.f32 0.01, %v547_v52 }
 0x15d   :  { %vm639_vm3 = vcmp.gt.f32.partialorder %v502_v38, 0.0  ;;  %v703_v50 = vmul.f32 0.01, %v502_v38 }
 0x15e   :  { %v719_v31 = vmul.f32 0.01, %v550_v40  ;;  %vm655_vm8 = vcmp.gt.f32.partialorder %v550_v40, 0.0  ;;  %v5077_v33 = vsel %vm654_vm7, %v547_v52, %v718_v17  ;;  %v727_v52 = vmul.f32 0.01, %v574_v58 }
 0x15f   :  { %v5048_v62 = vsel %vm639_vm3, %v502_v38, %v703_v50  ;;  %v7071_v50 = vrot.slane %v5056_v41, 4  ;;  %v5061_v38 = vpop.f32.mrf.mxu2 }
 0x160   :  { %v7069_v36 = vrot.slane %v5048_v62, 4  ;;  %911 = vst [vmem:[#allocation1 + $0x22] ss:$4 sm:$0xff] %v5048_v62  ;;  %v5081_v45 = vsel %vm655_vm8, %v550_v40, %v719_v31  ;;  %v5098_v17 = vsel %vm663_vm9, %v574_v58, %v727_v52 }
 0x162   :  { %912 = vst [vmem:[#allocation1 + $0x23] ss:$4 sm:$0xff] %v7069_v36  ;;  %v5054_v14 = vpop.f32.mrf.mxu0 }
 0x163   :  { %7125 = vst [vmem:[#allocation23_spill] sm:$0xff] %v5054_v14  ;;  %v7154_v14 = vrot.slane %v5056_v41, 4 }
 0x167   :  { %v594_v27 = vpop.f32.mrf.mxu2 }
 0x169   :  { %v914_v24 = vld.sshfl [vmem:[#allocation1 + $0x20] sm:$0xff pattern:$0x73625140] }
 0x16a   :  { %919 = vst [vmem:[#allocation1 + $0x20] ss:$4 sm:$0xff] %v5056_v41  ;;  %v5067_v36 = vpop.f32.mrf.mxu0 }
 0x16b   :  { %7126 = vst [vmem:[#allocation24_spill] sm:$0xff] %v5067_v36 }
 0x16c   :  { %920 = vst [vmem:[#allocation1 + $0x21] ss:$4 sm:$0xff] %v7071_v50  ;;  %v7075_v50 = vrot.slane %v5077_v33, 4 }
 0x16d   :  { %921 = vst [vmem:[#allocation1 + $0x22] ss:$4 sm:$0xff] %v5058_v19 }
 0x16e   :  { %922 = vst [vmem:[#allocation1 + $0x23] ss:$4 sm:$0xff] %v7074_v48  ;;  %v7076_v48 = vrot.slane %v5081_v45, 4 }
 0x16f   :  { %978 = vst.msk [vmem:[#allocation2 + $0x2d8] sm:$0xff] %vm46_vm6, %v914_v24  ;;  %v571_v24 = vadd.f32 %v4744_v29, %v5002_v56  ;;  %v597_v31 = vpop.f32.mrf.mxu2  ;;  %v595_v56 = vadd.f32 %v4744_v29, %v594_v27 }
 0x170   :  { %v598_v10 = vadd.f32 %v4744_v29, %v597_v31 }
 0x171   :  { %v726_v5 = vmul.f32 0.01, %v571_v24  ;;  %vm662_vm10 = vcmp.gt.f32.partialorder %v571_v24, 0.0  ;;  %vm670_vm11 = vcmp.gt.f32.partialorder %v595_v56, 0.0 }
 0x172   :  { %v5079_v16 = vpop.f32.mrf.mxu0  ;;  %v735_v27 = vmul.f32 0.01, %v598_v10  ;;  %vm671_vm12 = vcmp.gt.f32.partialorder %v598_v10, 0.0 }
 0x173   :  { %7127 = vst [vmem:[#allocation25_spill] sm:$0xff] %v5079_v16  ;;  %v5101_v28 = vsel %vm662_vm10, %v571_v24, %v726_v5  ;;  %v7142_v16 = vrot.slane %v5058_v19, 4 }
 0x174   :  { %v5116_v31 = vsel %vm671_vm12, %v598_v10, %v735_v27  ;;  %v7129_v27 = vrot.slane %v4770_v42, 4 }
 0x175   :  { %v924_v43 = vld.sshfl [vmem:[#allocation1 + $0x20] sm:$0xff pattern:$0x73625140] }
 0x176   :  { %929 = vst [vmem:[#allocation1 + $0x20] ss:$4 sm:$0xff] %v5077_v33 }
 0x177   :  { %930 = vst [vmem:[#allocation1 + $0x21] ss:$4 sm:$0xff] %v7075_v50  ;;  %v7077_v50 = vrot.slane %v5098_v17, 4 }
 0x178   :  { %931 = vst [vmem:[#allocation1 + $0x22] ss:$4 sm:$0xff] %v5081_v45 }
 0x179   :  { %932 = vst [vmem:[#allocation1 + $0x23] ss:$4 sm:$0xff] %v7076_v48  ;;  %v734_v48 = vmul.f32 0.01, %v595_v56 }
 0x17a   :  { %980 = vst.msk [vmem:[#allocation2 + $0x2f0] sm:$0xff] %vm46_vm6, %v924_v43  ;;  %v5096_v40 = vpop.f32.mrf.mxu0  ;;  %v7078_v43 = vrot.slane %v5101_v28, 4 }
 0x17b   :  { %7128 = vst [vmem:[#allocation26_spill] sm:$0xff] %v5096_v40  ;;  %v5114_v52 = vsel %vm670_vm11, %v595_v56, %v734_v48  ;;  %v541_v56 = vadd.f32 %v4744_v29, %v4860_v13 }
 0x17c   :  { %v7079_v3 = vrot.slane %v5114_v52, 4 }
 0x17d   :  { %vm652_vm15 = vcmp.gt.f32.partialorder %v541_v56, 0.0 }
 0x180   :  { %v934_v39 = vld.sshfl [vmem:[#allocation1 + $0x20] sm:$0xff pattern:$0x73625140] }
 0x181   :  { %941 = vst [vmem:[#allocation1 + $0x22] ss:$4 sm:$0xff] %v5098_v17 }
 0x182   :  { %942 = vst [vmem:[#allocation1 + $0x23] ss:$4 sm:$0xff] %v7077_v50  ;;  %v516_v58 = vpop.f32.mrf.mxu0 }
 0x183   :  { %939 = vst [vmem:[#allocation1 + $0x20] ss:$4 sm:$0xff] %v5101_v28  ;;  %v517_v24 = vadd.f32 %v4744_v29, %v516_v58  ;;  %v7080_v58 = vrot.slane %v5116_v31, 4 }
 0x184   :  { %940 = vst [vmem:[#allocation1 + $0x21] ss:$4 sm:$0xff] %v7078_v43 }
 0x185   :  { %982 = vst.msk [vmem:[#allocation2 + $0x308] sm:$0xff] %vm46_vm6, %v934_v39  ;;  %vm644_vm13 = vcmp.gt.f32.partialorder %v517_v24, 0.0  ;;  %v708_v5 = vmul.f32 0.01, %v517_v24 }
 0x187   :  { %v5118_v50 = vsel %vm644_vm13, %v517_v24, %v708_v5  ;;  %v544_v5 = vadd.f32 %v4744_v29, %v4881_v22  ;;  %v7130_v22 = vrot.slane %v4800_v57, 4 }
 0x188   :  { %v7081_v15 = vrot.slane %v5118_v50, 4  ;;  %915 = vst [vmem:[#allocation1] ss:$4 sm:$0xff] %v5118_v50  ;;  %v7151_v2 = vrot.slane %v5118_v50, 4 }
 0x189   :  { %v717_v13 = vmul.f32 0.01, %v544_v5  ;;  %vm653_vm0 = vcmp.gt.f32.partialorder %v544_v5, 0.0 }
 0x18a   :  { %916 = vst [vmem:[#allocation1 + $0x1] ss:$4 sm:$0xff] %v7081_v15  ;;  %v519_v48 = vpop.f32.mrf.mxu0 }
 0x18b   :  { %v944_v43 = vld.sshfl [vmem:[#allocation1 + $0x20] sm:$0xff pattern:$0x73625140]  ;;  %v520_v10 = vadd.f32 %v4744_v29, %v519_v48 }
 0x18c   :  { %949 = vst [vmem:[#allocation1 + $0x20] ss:$4 sm:$0xff] %v5114_v52 }
 0x18d   :  { %950 = vst [vmem:[#allocation1 + $0x21] ss:$4 sm:$0xff] %v7079_v3  ;;  %vm645_vm14 = vcmp.gt.f32.partialorder %v520_v10, 0.0  ;;  %v709_v39 = vmul.f32 0.01, %v520_v10 }
 0x18e   :  { %951 = vst [vmem:[#allocation1 + $0x22] ss:$4 sm:$0xff] %v5116_v31  ;;  %v716_v3 = vmul.f32 0.01, %v541_v56 }
 0x18f   :  { %952 = vst [vmem:[#allocation1 + $0x23] ss:$4 sm:$0xff] %v7080_v58  ;;  %v5137_v24 = vsel %vm645_vm14, %v520_v10, %v709_v39  ;;  %v5153_v39 = vsel %vm653_vm0, %v544_v5, %v717_v13 }
 0x190   :  { %996 = vst.sshfl [vmem:[#allocation1 + $0x30] sm:$0xff pattern:$0x75643120] %v7129_v27  ;;  %v7082_v48 = vrot.slane %v5137_v24, 4  ;;  %v5146_v27 = vsel %vm652_vm15, %v541_v56, %v716_v3  ;;  %v565_v3 = vadd.f32 %v4744_v29, %v4975_v21  ;;  %v7131_v21 = vrot.slane %v4888_v26, 4 }
 0x191   :  { %917 = vst [vmem:[#allocation1 + $0x2] ss:$4 sm:$0xff] %v5137_v24  ;;  %v7144_v11 = vrot.slane %v5153_v39, 4 }
 0x192   :  { %984 = vst.msk [vmem:[#allocation2 + $0x320] sm:$0xff] %vm46_vm6, %v944_v43  ;;  %v7083_v43 = vrot.slane %v5146_v27, 4  ;;  %v724_v5 = vmul.f32 0.01, %v565_v3  ;;  %vm660_vm2 = vcmp.gt.f32.partialorder %v565_v3, 0.0 }
 0x193   :  { %918 = vst [vmem:[#allocation1 + $0x3] ss:$4 sm:$0xff] %v7082_v48  ;;  %v7084_v48 = vrot.slane %v5153_v39, 4 }
 0x196   :  { %v954_v58 = vld.sshfl [vmem:[#allocation1 + $0x20] sm:$0xff pattern:$0x73625140] }
 0x197   :  { %993 = vst.sshfl [vmem:[#allocation1 + $0x20] sm:$0xff pattern:$0x75643120] %v4770_v42  ;;  %v5149_v10 = vld [vmem:[#allocation1 + $0x31] ss:$2 sm:$0xff]  ;;  %v568_v42 = vadd.f32 %v4744_v29, %v4988_v34 }
 0x198   :  { %1005 = vst.sshfl [vmem:[#allocation1 + $0x30] sm:$0xff pattern:$0x75643120] %v7130_v22  ;;  %v5176_v22 = vsel %vm660_vm2, %v565_v3, %v724_v5 }
 0x199   :  { %986 = vst.msk [vmem:[#allocation2 + $0x338] sm:$0xff] %vm46_vm6, %v954_v58  ;;  %v725_v13 = vmul.f32 0.01, %v568_v42  ;;  %vm661_vm3 = vcmp.gt.f32.partialorder %v568_v42, 0.0 }
 0x19a   :  { %v923_v15 = vld.sshfl [vmem:[#allocation1] sm:$0xff pattern:$0x73625140] }
 0x19b   :  { %925 = vst [vmem:[#allocation1] ss:$4 sm:$0xff] %v5146_v27 }
 0x19c   :  { %926 = vst [vmem:[#allocation1 + $0x1] ss:$4 sm:$0xff] %v7083_v43  ;;  %v5178_v43 = vsel %vm661_vm3, %v568_v42, %v725_v13  ;;  %v592_v42 = vadd.f32 %v4744_v29, %v5061_v38  ;;  %v7133_v38 = vrot.slane %v4977_v23, 4 }
 0x19d   :  { %927 = vst [vmem:[#allocation1 + $0x2] ss:$4 sm:$0xff] %v5153_v39  ;;  %v7086_v3 = vrot.slane %v5178_v43, 4 }
 0x19e   :  { %v5166_v56 = vld [vmem:[#allocation1 + $0x21] ss:$2 sm:$0xff]  ;;  %928 = vst [vmem:[#allocation1 + $0x3] ss:$4 sm:$0xff] %v7084_v48  ;;  %v589_v48 = vadd.f32 %v4744_v29, %v5046_v20  ;;  %vm669_vm5 = vcmp.gt.f32.partialorder %v592_v42, 0.0 }
 0x19f   :  { %1003 = vst.sshfl [vmem:[#allocation1 + $0x20] sm:$0xff pattern:$0x75643120] %v4800_v57  ;;  %v5171_v58 = vld [vmem:[#allocation1 + $0x31] ss:$2 sm:$0xff]  ;;  %v7085_v57 = vrot.slane %v5176_v22, 4 }
 0x1a0   :  { %1013 = vst.sshfl [vmem:[#allocation1 + $0x30] sm:$0xff pattern:$0x75643120] %v7131_v21  ;;  %v732_v5 = vmul.f32 0.01, %v589_v48  ;;  %vm668_vm4 = vcmp.gt.f32.partialorder %v589_v48, 0.0 }
 0x1a1   :  { %979 = vst.msk [vmem:[#allocation2 + $0x2e8] sm:$0xff] %vm46_vm6, %v923_v15  ;;  %v7132_v15 = vrot.slane %v4920_v47, 4 }
 0x1a2   :  { %v5202_v13 = vsel %vm668_vm4, %v589_v48, %v732_v5  ;;  %v7135_v5 = vrot.slane %v4755_v35, 4 }
 0x1a5   :  { %v933_v34 = vld.sshfl [vmem:[#allocation1] sm:$0xff pattern:$0x73625140] }
 0x1a6   :  { %v5180_v9 = vld [vmem:[#allocation1 + $0x21] ss:$2 sm:$0xff]  ;;  %935 = vst [vmem:[#allocation1] ss:$4 sm:$0xff] %v5176_v22 }
 0x1a7   :  { %1011 = vst.sshfl [vmem:[#allocation1 + $0x20] sm:$0xff pattern:$0x75643120] %v4888_v26  ;;  %v5187_v21 = vld [vmem:[#allocation1 + $0x31] ss:$2 sm:$0xff] }
 0x1a8   :  { %1021 = vst.sshfl [vmem:[#allocation1 + $0x30] sm:$0xff pattern:$0x75643120] %v7132_v15  ;;  %v733_v26 = vmul.f32 0.01, %v592_v42 }
 0x1a9   :  { %936 = vst [vmem:[#allocation1 + $0x1] ss:$4 sm:$0xff] %v7085_v57  ;;  %v7087_v57 = vrot.slane %v5202_v13, 4 }
 0x1aa   :  { %937 = vst [vmem:[#allocation1 + $0x2] ss:$4 sm:$0xff] %v5178_v43  ;;  %v5209_v15 = vsel %vm669_vm5, %v592_v42, %v733_v26  ;;  %v7134_v42 = vrot.slane %v4994_v46, 4 }
 0x1ab   :  { %938 = vst [vmem:[#allocation1 + $0x3] ss:$4 sm:$0xff] %v7086_v3 }
 0x1ac   :  { %981 = vst.msk [vmem:[#allocation2 + $0x300] sm:$0xff] %vm46_vm6, %v933_v34  ;;  %v7088_v34 = vrot.slane %v5209_v15, 4 }
 0x1ae   :  { %v5200_v20 = vld [vmem:[#allocation1 + $0x21] ss:$2 sm:$0xff] }
 0x1af   :  { %1019 = vst.sshfl [vmem:[#allocation1 + $0x20] sm:$0xff pattern:$0x75643120] %v4920_v47  ;;  %v5205_v29 = vld [vmem:[#allocation1 + $0x31] ss:$2 sm:$0xff] }
 0x1b0   :  { %1029 = vst.sshfl [vmem:[#allocation1 + $0x30] sm:$0xff pattern:$0x75643120] %v7133_v38 }
 0x1b2   :  { %v943_v3 = vld.sshfl [vmem:[#allocation1] sm:$0xff pattern:$0x73625140] }
 0x1b3   :  { %945 = vst [vmem:[#allocation1] ss:$4 sm:$0xff] %v5202_v13 }
 0x1b4   :  { %946 = vst [vmem:[#allocation1 + $0x1] ss:$4 sm:$0xff] %v7087_v57 }
 0x1b5   :  { %947 = vst [vmem:[#allocation1 + $0x2] ss:$4 sm:$0xff] %v5209_v15 }
 0x1b6   :  { %v5217_v47 = vld [vmem:[#allocation1 + $0x21] ss:$2 sm:$0xff]  ;;  %948 = vst [vmem:[#allocation1 + $0x3] ss:$4 sm:$0xff] %v7088_v34 }
 0x1b7   :  { %1027 = vst.sshfl [vmem:[#allocation1 + $0x20] sm:$0xff pattern:$0x75643120] %v4977_v23  ;;  %v5222_v48 = vld [vmem:[#allocation1 + $0x31] ss:$2 sm:$0xff]  ;;  %v7136_v23 = vrot.slane %v5027_v44, 4 }
 0x1b8   :  { %1037 = vst.sshfl [vmem:[#allocation1 + $0x30] sm:$0xff pattern:$0x75643120] %v7134_v42  ;;  %v7137_v42 = vrot.slane %v4785_v49, 4 }
 0x1b9   :  { %990 = vst.sshfl [vmem:[#allocation1 + $0x10] sm:$0xff pattern:$0x75643120] %v7135_v5 }
 0x1ba   :  { %983 = vst.msk [vmem:[#allocation2 + $0x318] sm:$0xff] %vm46_vm6, %v943_v3 }
 0x1bd   :  { %v953_v26 = vld.sshfl [vmem:[#allocation1] sm:$0xff pattern:$0x73625140] }
 0x1be   :  { %v5229_v38 = vld [vmem:[#allocation1 + $0x21] ss:$2 sm:$0xff]  ;;  %987 = vst.sshfl [vmem:[#allocation1] sm:$0xff pattern:$0x75643120] %v4755_v35 }
 0x1bf   :  { %v5232_v57 = vld [vmem:[#allocation1 + $0x31] ss:$2 sm:$0xff]  ;;  %1035 = vst.sshfl [vmem:[#allocation1 + $0x20] sm:$0xff pattern:$0x75643120] %v4994_v46  ;;  %v7138_v46 = vrot.slane %v5048_v62, 4 }
 0x1c0   :  { %1045 = vst.sshfl [vmem:[#allocation1 + $0x30] sm:$0xff pattern:$0x75643120] %v7136_v23  ;;  %v5237_v34 = vld [vmem:[#allocation1 + $0x11] ss:$2 sm:$0xff] }
 0x1c1   :  { %1001 = vst.sshfl [vmem:[#allocation1 + $0x10] sm:$0xff pattern:$0x75643120] %v7137_v42 }
 0x1c2   :  { %985 = vst.msk [vmem:[#allocation2 + $0x330] sm:$0xff] %vm46_vm6, %v953_v26 }
 0x1c5   :  { %v5242_v3 = vld [vmem:[#allocation1 + $0x1] ss:$2 sm:$0xff] }
 0x1c6   :  { %999 = vst.sshfl [vmem:[#allocation1] sm:$0xff pattern:$0x75643120] %v4785_v49  ;;  %v5245_v5 = vld [vmem:[#allocation1 + $0x21] ss:$2 sm:$0xff] }
 0x1c7   :  { %v5247_v35 = vld [vmem:[#allocation1 + $0x31] ss:$2 sm:$0xff]  ;;  %1043 = vst.sshfl [vmem:[#allocation1 + $0x20] sm:$0xff pattern:$0x75643120] %v5027_v44  ;;  %v7140_v44 = vrot.slane %v5137_v24, 4 }
 0x1c8   :  { %1053 = vst.sshfl [vmem:[#allocation1 + $0x30] sm:$0xff pattern:$0x75643120] %v7138_v46  ;;  %v5252_v23 = vld [vmem:[#allocation1 + $0x11] ss:$2 sm:$0xff]  ;;  %v7141_v46 = vrot.slane %v4905_v37, 4 }
 0x1c9   :  { %1009 = vst.sshfl [vmem:[#allocation1 + $0x10] sm:$0xff pattern:$0x75643120] %v7139_v8 }
 0x1cd   :  { %v5256_v42 = vld [vmem:[#allocation1 + $0x1] ss:$2 sm:$0xff] }
 0x1ce   :  { %1007 = vst.sshfl [vmem:[#allocation1] sm:$0xff pattern:$0x75643120] %v4871_v18  ;;  %v5259_v26 = vld [vmem:[#allocation1 + $0x21] ss:$2 sm:$0xff] }
 0x1cf   :  { %1051 = vst.sshfl [vmem:[#allocation1 + $0x20] sm:$0xff pattern:$0x75643120] %v5048_v62  ;;  %v5262_v49 = vld [vmem:[#allocation1 + $0x31] ss:$2 sm:$0xff] }
 0x1d0   :  { %v5264_v4 = vld [vmem:[#allocation1 + $0x11] ss:$2 sm:$0xff]  ;;  %1061 = vst.sshfl [vmem:[#allocation1 + $0x30] sm:$0xff pattern:$0x75643120] %v7140_v44  ;;  %v7143_v44 = vrot.slane %v4964_v12, 4 }
 0x1d1   :  { %1017 = vst.sshfl [vmem:[#allocation1 + $0x10] sm:$0xff pattern:$0x75643120] %v7141_v46 }
 0x1d5   :  { %v5270_v40 = vld [vmem:[#allocation1 + $0x1] ss:$2 sm:$0xff] }
 0x1d6   :  { %1015 = vst.sshfl [vmem:[#allocation1] sm:$0xff pattern:$0x75643120] %v4905_v37  ;;  %v5273_v8 = vld [vmem:[#allocation1 + $0x21] ss:$2 sm:$0xff] }
 0x1d7   :  { %1059 = vst.sshfl [vmem:[#allocation1 + $0x20] sm:$0xff pattern:$0x75643120] %v5137_v24  ;;  %v5276_v18 = vld [vmem:[#allocation1 + $0x31] ss:$2 sm:$0xff] }
 0x1d8   :  { %v5278_v62 = vld [vmem:[#allocation1 + $0x11] ss:$2 sm:$0xff]  ;;  %1069 = vst.sshfl [vmem:[#allocation1 + $0x30] sm:$0xff pattern:$0x75643120] %v7142_v16  ;;  %v7145_v16 = vrot.slane %v4984_v32, 4 }
 0x1d9   :  { %1025 = vst.sshfl [vmem:[#allocation1 + $0x10] sm:$0xff pattern:$0x75643120] %v7143_v44 }
 0x1dd   :  { %v5284_v60 = vld [vmem:[#allocation1 + $0x1] ss:$2 sm:$0xff] }
 0x1de   :  { %1023 = vst.sshfl [vmem:[#allocation1] sm:$0xff pattern:$0x75643120] %v4964_v12  ;;  %v5287_v46 = vld [vmem:[#allocation1 + $0x21] ss:$2 sm:$0xff] }
 0x1df   :  { %1067 = vst.sshfl [vmem:[#allocation1 + $0x20] sm:$0xff pattern:$0x75643120] %v5058_v19  ;;  %v5290_v37 = vld [vmem:[#allocation1 + $0x31] ss:$2 sm:$0xff]  ;;  %v196_v12 = vld [vmem:[%s7044_s0 + $0x1e0] sm:$0xff] }
 0x1e0   :  { %v5292_v24 = vld [vmem:[#allocation1 + $0x11] ss:$2 sm:$0xff]  ;;  %1077 = vst.sshfl [vmem:[#allocation1 + $0x30] sm:$0xff pattern:$0x75643120] %v7144_v11  ;;  %3933 = vmatmul.msk.f32.gmra.mxu2 %vm206_vm1, %v196_v12 }
 0x1e1   :  { %1033 = vst.sshfl [vmem:[#allocation1 + $0x10] sm:$0xff pattern:$0x75643120] %v7145_v16  ;;  %v7146_v16 = vrot.slane %v5081_v45, 4 }
 0x1e5   :  { %v5298_v53 = vld [vmem:[#allocation1 + $0x1] ss:$2 sm:$0xff] }
 0x1e6   :  { %1031 = vst.sshfl [vmem:[#allocation1] sm:$0xff pattern:$0x75643120] %v4984_v32  ;;  %v5301_v44 = vld [vmem:[#allocation1 + $0x21] ss:$2 sm:$0xff] }
 0x1e7   :  { %1075 = vst.sshfl [vmem:[#allocation1 + $0x20] sm:$0xff pattern:$0x75643120] %v5153_v39  ;;  %v5307_v19 = vld [vmem:[#allocation1 + $0x31] ss:$2 sm:$0xff]  ;;  %v197_v39 = vld [vmem:[%s7044_s0 + $0x1e8] sm:$0xff] }
 0x1e8   :  { %v5310_v11 = vld [vmem:[#allocation1 + $0x11] ss:$2 sm:$0xff]  ;;  %1085 = vst.sshfl [vmem:[#allocation1 + $0x30] sm:$0xff pattern:$0x75643120] %v7146_v16  ;;  %3934 = vmatmul.msk.f32.gmra.mxu2 %vm206_vm1, %v197_v39 }
 0x1e9   :  { %1041 = vst.sshfl [vmem:[#allocation1 + $0x10] sm:$0xff pattern:$0x75643120] %v7147_v7  ;;  %v7148_v7 = vrot.slane %v5178_v43, 4 }
 0x1ed   :  { %v5316_v32 = vld [vmem:[#allocation1 + $0x1] ss:$2 sm:$0xff] }
 0x1ee   :  { %1039 = vst.sshfl [vmem:[#allocation1] sm:$0xff pattern:$0x75643120] %v5018_v25  ;;  %v5319_v0 = vld [vmem:[#allocation1 + $0x21] ss:$2 sm:$0xff] }
 0x1ef   :  { %1083 = vst.sshfl [vmem:[#allocation1 + $0x20] sm:$0xff pattern:$0x75643120] %v5081_v45  ;;  %v5325_v12 = vld [vmem:[#allocation1 + $0x31] ss:$2 sm:$0xff] }
 0x1f0   :  { %v5328_v16 = vld [vmem:[#allocation1 + $0x11] ss:$2 sm:$0xff]  ;;  %1093 = vst.sshfl [vmem:[#allocation1 + $0x30] sm:$0xff pattern:$0x75643120] %v7148_v7 }
 0x1f1   :  { %1049 = vst.sshfl [vmem:[#allocation1 + $0x10] sm:$0xff pattern:$0x75643120] %v7149_v61  ;;  %v198_v45 = vld [vmem:[%s7044_s0 + $0x1f0] sm:$0xff]  ;;  %v7150_v61 = vrot.slane %v5098_v17, 4 }
 0x1f2   :  { %3935 = vmatmul.msk.f32.gmra.mxu2 %vm206_vm1, %v198_v45 }
 0x1f5   :  { %v5334_v25 = vld [vmem:[#allocation1 + $0x1] ss:$2 sm:$0xff] }
 0x1f6   :  { %1047 = vst.sshfl [vmem:[#allocation1] sm:$0xff pattern:$0x75643120] %v5036_v30  ;;  %v5337_v6 = vld [vmem:[#allocation1 + $0x21] ss:$2 sm:$0xff] }
 0x1f7   :  { %1091 = vst.sshfl [vmem:[#allocation1 + $0x20] sm:$0xff pattern:$0x75643120] %v5178_v43  ;;  %v5343_v39 = vld [vmem:[#allocation1 + $0x31] ss:$2 sm:$0xff] }
 0x1f8   :  { %v5346_v7 = vld [vmem:[#allocation1 + $0x11] ss:$2 sm:$0xff]  ;;  %1101 = vst.sshfl [vmem:[#allocation1 + $0x30] sm:$0xff pattern:$0x75643120] %v7150_v61 }
 0x1f9   :  { %1057 = vst.sshfl [vmem:[#allocation1 + $0x10] sm:$0xff pattern:$0x75643120] %v7151_v2  ;;  %v199_v43 = vld [vmem:[%s7044_s0 + $0x1f8] sm:$0xff]  ;;  %v7153_v2 = vrot.slane %v5209_v15, 4 }
 0x1fa   :  { %3936 = vmatmul.msk.f32.gmra.mxu2 %vm206_vm1, %v199_v43  ;;  %v7156_v43 = vrot.slane %v5116_v31, 4 }
 0x1fd   :  { %v5352_v30 = vld [vmem:[#allocation1 + $0x1] ss:$2 sm:$0xff] }
 0x1fe   :  { %1055 = vst.sshfl [vmem:[#allocation1] sm:$0xff pattern:$0x75643120] %v5118_v50  ;;  %v5355_v36 = vld [vmem:[#allocation1 + $0x21] ss:$2 sm:$0xff] }
 0x1ff   :  { %1099 = vst.sshfl [vmem:[#allocation1 + $0x20] sm:$0xff pattern:$0x75643120] %v5098_v17  ;;  %v5361_v45 = vld [vmem:[#allocation1 + $0x31] ss:$2 sm:$0xff] }
 0x200   :  { %7152 = vst [vmem:[#allocation27_spill] sm:$0xff] %v5361_v45  ;;  %v5364_v61 = vld [vmem:[#allocation1 + $0x11] ss:$2 sm:$0xff] }
 0x201   :  { %1109 = vst.sshfl [vmem:[#allocation1 + $0x30] sm:$0xff pattern:$0x75643120] %v7153_v2  ;;  %v7157_v2 = vrot.slane %v5146_v27, 4 }
 0x202   :  { %1065 = vst.sshfl [vmem:[#allocation1 + $0x10] sm:$0xff pattern:$0x75643120] %v7154_v14  ;;  %v172_v14 = vld [vmem:[%s7044_s0 + $0x120] sm:$0xff] }
 0x203   :  { %3909 = vmatmul.msk.f32.gmra.mxu1 %vm206_vm1, %v172_v14 }
 0x205   :  { %v5370_v50 = vld [vmem:[#allocation1 + $0x1] ss:$2 sm:$0xff] }
 0x206   :  { %1063 = vst.sshfl [vmem:[#allocation1] sm:$0xff pattern:$0x75643120] %v5056_v41  ;;  %v5373_v1 = vld [vmem:[#allocation1 + $0x21] ss:$2 sm:$0xff] }
 0x207   :  { %7155 = vst [vmem:[#allocation28_spill] sm:$0xff] %v5373_v1 }
 0x208   :  { %1107 = vst.sshfl [vmem:[#allocation1 + $0x20] sm:$0xff pattern:$0x75643120] %v5209_v15  ;;  %v5376_v17 = vld [vmem:[#allocation1 + $0x31] ss:$2 sm:$0xff] }
 0x209   :  { %v5378_v45 = vld [vmem:[#allocation1 + $0x11] ss:$2 sm:$0xff]  ;;  %1117 = vst.sshfl [vmem:[#allocation1 + $0x30] sm:$0xff pattern:$0x75643120] %v7156_v43  ;;  %v7158_v43 = vrot.slane %v5077_v33, 4 }
 0x20a   :  { %1073 = vst.sshfl [vmem:[#allocation1 + $0x10] sm:$0xff pattern:$0x75643120] %v7157_v2  ;;  %v173_v2 = vld [vmem:[%s7044_s0 + $0x128] sm:$0xff]  ;;  %s4553_s0 = smov 64  }
 0x20b   :  { %3910 = vmatmul.msk.f32.gmra.mxu1 %vm206_vm1, %v173_v2  ;;  %vm49_vm1 = vcmask 254976  }
 0x20d   :  { %v1064_v41 = vld [vmem:[#allocation1 + $0x1] ss:$2 sm:$0xff] }
 0x20e   :  { %1071 = vst.sshfl [vmem:[#allocation1] sm:$0xff pattern:$0x75643120] %v5146_v27 }
 0x20f   :  { %v5389_v15 = vld [vmem:[#allocation1 + $0x21] ss:$2 sm:$0xff] }
 0x210   :  { %1115 = vst.sshfl [vmem:[#allocation1 + $0x20] sm:$0xff pattern:$0x75643120] %v5116_v31  ;;  %v5404_v14 = vld [vmem:[#allocation1 + $0x31] ss:$2 sm:$0xff] }
 0x211   :  { %v5392_v1 = vld [vmem:[#allocation1 + $0x11] ss:$2 sm:$0xff]  ;;  %1127 = vst [vmem:[#allocation1 + $0x20] ss:$4 sm:$0xff] %v5256_v42 }
 0x212   :  { %1081 = vst.sshfl [vmem:[#allocation1 + $0x10] sm:$0xff pattern:$0x75643120] %v7158_v43 }
 0x213   :  { %1131 = vst [vmem:[#allocation1 + $0x22] ss:$4 sm:$0xff] %v5180_v9  ;;  %v7159_v9 = vrot.slane %v5176_v22, 4 }
 0x215   :  { %v5402_v27 = vld [vmem:[#allocation1 + $0x1] ss:$2 sm:$0xff] }
 0x216   :  { %1079 = vst.sshfl [vmem:[#allocation1] sm:$0xff pattern:$0x75643120] %v5077_v33  ;;  %v7160_v33 = vrot.slane %v5101_v28, 4 }
 0x217   :  { %v5407_v31 = vld [vmem:[#allocation1 + $0x21] ss:$2 sm:$0xff] }
 0x218   :  { %1129 = vst [vmem:[#allocation1 + $0x21] ss:$4 sm:$0xff] %v5252_v23  ;;  %v7161_v23 = vrot.slane %v5202_v13, 4 }
 0x219   :  { %v5410_v42 = vld [vmem:[#allocation1 + $0x11] ss:$2 sm:$0xff]  ;;  %1133 = vst [vmem:[#allocation1 + $0x23] ss:$4 sm:$0xff] %v5171_v58 }
 0x21a   :  { %1089 = vst.sshfl [vmem:[#allocation1 + $0x10] sm:$0xff pattern:$0x75643120] %v7159_v9 }
 0x21d   :  { %v1080_v43 = vld [vmem:[#allocation1 + $0x1] ss:$2 sm:$0xff] }
 0x21e   :  { %1087 = vst.sshfl [vmem:[#allocation1] sm:$0xff pattern:$0x75643120] %v5176_v22 }
 0x220   :  { %v1135_v2 = vld.sshfl [vmem:[#allocation1 + $0x20] sm:$0xff pattern:$0x73625140] }
 0x221   :  { %v5416_v54 = vld [vmem:[#allocation1 + $0x11] ss:$2 sm:$0xff]  ;;  %1140 = vst [vmem:[#allocation1 + $0x20] ss:$4 sm:$0xff] %v5284_v60 }
 0x222   :  { %1097 = vst.sshfl [vmem:[#allocation1 + $0x10] sm:$0xff pattern:$0x75643120] %v7160_v33 }
 0x223   :  { %1141 = vst [vmem:[#allocation1 + $0x21] ss:$4 sm:$0xff] %v5278_v62 }
 0x224   :  { %1142 = vst [vmem:[#allocation1 + $0x22] ss:$4 sm:$0xff] %v5217_v47 }
 0x225   :  { %1143 = vst [vmem:[#allocation1 + $0x23] ss:$4 sm:$0xff] %v5205_v29  ;;  %v5424_v58 = vld [vmem:[#allocation1 + $0x1] ss:$2 sm:$0xff] }
 0x226   :  { %1223 = vst.msk [vmem:[#allocation2 + $0x1ba] sm:$0xff] %vm46_vm6, %v1135_v2 }
 0x227   :  { %1095 = vst.sshfl [vmem:[#allocation1] sm:$0xff pattern:$0x75643120] %v5101_v28  ;;  %v7162_v28 = vrot.slane %v5114_v52, 4 }
 0x229   :  { %v5428_v22 = vld [vmem:[#allocation1 + $0x11] ss:$2 sm:$0xff] }
 0x22a   :  { %1105 = vst.sshfl [vmem:[#allocation1 + $0x10] sm:$0xff pattern:$0x75643120] %v7161_v23 }
 0x22c   :  { %v1145_v60 = vld.sshfl [vmem:[#allocation1 + $0x20] sm:$0xff pattern:$0x73625140] }
 0x22d   :  { %1150 = vst [vmem:[#allocation1 + $0x20] ss:$4 sm:$0xff] %v5316_v32 }
 0x22e   :  { %v5433_v9 = vld [vmem:[#allocation1 + $0x1] ss:$2 sm:$0xff]  ;;  %1151 = vst [vmem:[#allocation1 + $0x21] ss:$4 sm:$0xff] %v5310_v11  ;;  %v7163_v11 = vld [vmem:[#allocation15_spill] sm:$0xff] }
 0x22f   :  { %1103 = vst.sshfl [vmem:[#allocation1] sm:$0xff pattern:$0x75643120] %v5202_v13 }
 0x230   :  { %1152 = vst [vmem:[#allocation1 + $0x22] ss:$4 sm:$0xff] %v5245_v5  ;;  %v7089_v5 = vmov 0.0  }
 0x231   :  { %v5438_v29 = vld [vmem:[#allocation1 + $0x11] ss:$2 sm:$0xff]  ;;  %1153 = vst [vmem:[#allocation1 + $0x23] ss:$4 sm:$0xff] %v5232_v57 }
 0x232   :  { %1113 = vst.sshfl [vmem:[#allocation1 + $0x10] sm:$0xff pattern:$0x75643120] %v7162_v28 }
 0x233   :  { %1225 = vst.msk [vmem:[#allocation2 + $0x1d2] sm:$0xff] %vm46_vm6, %v1145_v60 }
 0x234   :  { %47 = vst.msk [vmem:[#allocation2] sm:$0xff] %vm46_vm6, %v7089_v5 }
 0x235   :  { %48 = vst.msk [vmem:[#allocation2 + $0x8] sm:$0xff] %vm46_vm6, %v7089_v5 }
 0x236   :  { %v5444_v47 = vld [vmem:[#allocation1 + $0x1] ss:$2 sm:$0xff]  ;;  %50 = vst.msk [vmem:[#allocation2 + $0x10] sm:$0x3] %vm49_vm1, %v7089_v5 }
 0x237   :  { %1111 = vst.sshfl [vmem:[#allocation1] sm:$0xff pattern:$0x75643120] %v5114_v52 }
 0x238   :  { %1119 = vst [vmem:[#allocation1] ss:$4 sm:$0xff] %v5242_v3  ;;  %v5448_v62 = vld.sshfl [vmem:[#allocation1 + $0x20] sm:$0xff pattern:$0x73625140] }
 0x239   :  { %1123 = vst [vmem:[#allocation1 + $0x2] ss:$4 sm:$0xff] %v5166_v56  ;;  %v5457_v13 = vld [vmem:[#allocation1 + $0x11] ss:$2 sm:$0xff] }
 0x23a   :  { %1160 = vst [vmem:[#allocation1 + $0x20] ss:$4 sm:$0xff] %v5352_v30 }
 0x23b   :  { %1161 = vst [vmem:[#allocation1 + $0x21] ss:$4 sm:$0xff] %v5346_v7 }
 0x23c   :  { %1162 = vst [vmem:[#allocation1 + $0x22] ss:$4 sm:$0xff] %v5273_v8 }
 0x23d   :  { %1163 = vst [vmem:[#allocation1 + $0x23] ss:$4 sm:$0xff] %v5262_v49 }
 0x23e   :  { %v5455_v57 = vld [vmem:[#allocation1 + $0x1] ss:$2 sm:$0xff]  ;;  %51 = vst.msk [vmem:[#allocation2] sm:$0x3] %vm49_vm1, %v7089_v5 }
 0x23f   :  { %1121 = vst [vmem:[#allocation1 + $0x1] ss:$4 sm:$0xff] %v5237_v34  ;;  %v1706_v34 = vld [vmem:[#allocation2 + $0x2] sm:$0xff] }
 0x240   :  { %1125 = vst [vmem:[#allocation1 + $0x3] ss:$4 sm:$0xff] %v5149_v10  ;;  %v1707_v10 = vld [vmem:[#allocation2 + $0xa] sm:$0xff] }
 0x241   :  { %v4272_v3 = vpack.i.bf16 %v1707_v10, %v1706_v34  ;;  %52 = vst.msk [vmem:[#allocation2 + $0x18] sm:$0x3] %vm49_vm1, %v7089_v5 }
 0x242   :  { %53 = vst.msk [vmem:[#allocation2 + $0x30] sm:$0x3] %vm49_vm1, %v7089_v5 }
 0x243   :  { %4273 = vrot.lane.b32.xlu2 %v4272_v3, %s4553_s0  ;;  %54 = vst.msk [vmem:[#allocation2 + $0x48] sm:$0x3] %vm49_vm1, %v7089_v5 }
 0x244   :  { %v5467_v52 = vld.sshfl [vmem:[#allocation1 + $0x20] sm:$0xff pattern:$0x73625140]  ;;  %55 = vst.msk [vmem:[#allocation2 + $0x60] sm:$0x3] %vm49_vm1, %v7089_v5 }
 0x245   :  { %1170 = vst [vmem:[#allocation1 + $0x20] ss:$4 sm:$0xff] %v1064_v41 }
 0x246   :  { %1171 = vst [vmem:[#allocation1 + $0x21] ss:$4 sm:$0xff] %v5378_v45 }
 0x247   :  { %v5470_v56 = vld.sshfl [vmem:[#allocation1] sm:$0xff pattern:$0x73625140]  ;;  %1172 = vst [vmem:[#allocation1 + $0x22] ss:$4 sm:$0xff] %v5301_v44 }
 0x248   :  { %1136 = vst [vmem:[#allocation1] ss:$4 sm:$0xff] %v5270_v40 }
 0x249   :  { %1137 = vst [vmem:[#allocation1 + $0x1] ss:$4 sm:$0xff] %v5264_v4 }
 0x24a   :  { %1138 = vst [vmem:[#allocation1 + $0x2] ss:$4 sm:$0xff] %v5200_v20 }
 0x24b   :  { %1139 = vst [vmem:[#allocation1 + $0x3] ss:$4 sm:$0xff] %v5187_v21 }
 0x24c   :  { %1173 = vst [vmem:[#allocation1 + $0x23] ss:$4 sm:$0xff] %v5290_v37 }
 0x24d   :  { %56 = vst.msk [vmem:[#allocation2 + $0x78] sm:$0x3] %vm49_vm1, %v7089_v5 }
 0x24e   :  { %57 = vst.msk [vmem:[#allocation2 + $0x90] sm:$0x3] %vm49_vm1, %v7089_v5 }
 0x24f   :  { %58 = vst.msk [vmem:[#allocation2 + $0xa8] sm:$0x3] %vm49_vm1, %v7089_v5 }
 0x250   :  { %59 = vst.msk [vmem:[#allocation2 + $0xc0] sm:$0x3] %vm49_vm1, %v7089_v5 }
 0x251   :  { %61 = vst.msk [vmem:[#allocation2 + $0xd8] sm:$0xff] %vm46_vm6, %v7089_v5 }
 0x252   :  { %v5479_v49 = vld.sshfl [vmem:[#allocation1] sm:$0xff pattern:$0x73625140]  ;;  %62 = vst.msk [vmem:[#allocation2 + $0xe0] sm:$0xff] %vm46_vm6, %v7089_v5 }
 0x253   :  { %1146 = vst [vmem:[#allocation1] ss:$4 sm:$0xff] %v5298_v53  ;;  %v5483_v40 = vld.sshfl [vmem:[#allocation1 + $0x20] sm:$0xff pattern:$0x73625140] }
 0x254   :  { %1147 = vst [vmem:[#allocation1 + $0x1] ss:$4 sm:$0xff] %v5292_v24 }
 0x255   :  { %1148 = vst [vmem:[#allocation1 + $0x2] ss:$4 sm:$0xff] %v5229_v38 }
 0x256   :  { %1149 = vst [vmem:[#allocation1 + $0x3] ss:$4 sm:$0xff] %v5222_v48 }
 0x257   :  { %1180 = vst [vmem:[#allocation1 + $0x20] ss:$4 sm:$0xff] %v1080_v43  ;;  %v7165_v43 = vld [vmem:[#allocation23_spill] sm:$0xff] }
 0x258   :  { %1181 = vst [vmem:[#allocation1 + $0x21] ss:$4 sm:$0xff] %v5410_v42 }
 0x259   :  { %1182 = vst [vmem:[#allocation1 + $0x22] ss:$4 sm:$0xff] %v5337_v6 }
 0x25a   :  { %1183 = vst [vmem:[#allocation1 + $0x23] ss:$4 sm:$0xff] %v5325_v12 }
 0x25b   :  { %78 = vst.msk [vmem:[#allocation2 + $0x1b0] sm:$0x3] %vm49_vm1, %v7089_v5 }
 0x25c   :  { %79 = vst.msk [vmem:[#allocation2 + $0x1c8] sm:$0x3] %vm49_vm1, %v7089_v5 }
 0x25d   :  { %v5490_v4 = vld.sshfl [vmem:[#allocation1] sm:$0xff pattern:$0x73625140]  ;;  %80 = vst.msk [vmem:[#allocation2 + $0x1e0] sm:$0x3] %vm49_vm1, %v7089_v5 }
 0x25e   :  { %1156 = vst [vmem:[#allocation1] ss:$4 sm:$0xff] %v5334_v25  ;;  %v7164_v25 = vld [vmem:[#allocation16_spill] sm:$0xff] }
 0x25f   :  { %1157 = vst [vmem:[#allocation1 + $0x1] ss:$4 sm:$0xff] %v5328_v16 }
 0x260   :  { %1158 = vst [vmem:[#allocation1 + $0x2] ss:$4 sm:$0xff] %v5259_v26 }
 0x261   :  { %1159 = vst [vmem:[#allocation1 + $0x3] ss:$4 sm:$0xff] %v5247_v35 }
 0x262   :  { %81 = vst.msk [vmem:[#allocation2 + $0x1f8] sm:$0x3] %vm49_vm1, %v7089_v5 }
 0x263   :  { %82 = vst.msk [vmem:[#allocation2 + $0x210] sm:$0x3] %vm49_vm1, %v7089_v5 }
 0x264   :  { %83 = vst.msk [vmem:[#allocation2 + $0x228] sm:$0x3] %vm49_vm1, %v7089_v5 }
 0x265   :  { %84 = vst.msk [vmem:[#allocation2 + $0x240] sm:$0x3] %vm49_vm1, %v7089_v5 }
 0x266   :  { %85 = vst.msk [vmem:[#allocation2 + $0x258] sm:$0x3] %vm49_vm1, %v7089_v5  ;;  %v7185_v5 = vld [vmem:[#allocation21_spill] sm:$0xff] }
 0x267   :  { %1222 = vst.msk [vmem:[#allocation2 + $0x1b2] sm:$0xff] %vm46_vm6, %v5470_v56 }
 0x268   :  { %v5496_v53 = vld.sshfl [vmem:[#allocation1] sm:$0xff pattern:$0x73625140]  ;;  %1224 = vst.msk [vmem:[#allocation2 + $0x1ca] sm:$0xff] %vm46_vm6, %v5479_v49 }
 0x269   :  { %1166 = vst [vmem:[#allocation1] ss:$4 sm:$0xff] %v5370_v50  ;;  %v1185_v50 = vld.sshfl [vmem:[#allocation1 + $0x20] sm:$0xff pattern:$0x73625140] }
 0x26a   :  { %1167 = vst [vmem:[#allocation1 + $0x1] ss:$4 sm:$0xff] %v5364_v61 }
 0x26b   :  { %1168 = vst [vmem:[#allocation1 + $0x2] ss:$4 sm:$0xff] %v5287_v46 }
 0x26c   :  { %1169 = vst [vmem:[#allocation1 + $0x3] ss:$4 sm:$0xff] %v5276_v18 }
 0x26d   :  { %1226 = vst.msk [vmem:[#allocation2 + $0x1e2] sm:$0xff] %vm46_vm6, %v5490_v4 }
 0x26e   :  { %1227 = vst.msk [vmem:[#allocation2 + $0x1ea] sm:$0xff] %vm46_vm6, %v5448_v62  ;;  %v1723_v37 = vld [vmem:[#allocation2 + $0x1b8] sm:$0xff] }
 0x26f   :  { %1228 = vst.msk [vmem:[#allocation2 + $0x1fa] sm:$0xff] %vm46_vm6, %v5496_v53 }
 0x270   :  { %1229 = vst.msk [vmem:[#allocation2 + $0x202] sm:$0xff] %vm46_vm6, %v5467_v52 }
 0x271   :  { %1231 = vst.msk [vmem:[#allocation2 + $0x21a] sm:$0xff] %vm46_vm6, %v5483_v40 }
 0x272   :  { %1190 = vst [vmem:[#allocation1 + $0x20] ss:$4 sm:$0xff] %v5433_v9  ;;  %v7167_v9 = vld [vmem:[#allocation24_spill] sm:$0xff] }
 0x273   :  { %v5504_v6 = vld.sshfl [vmem:[#allocation1] sm:$0xff pattern:$0x73625140]  ;;  %1191 = vst [vmem:[#allocation1 + $0x21] ss:$4 sm:$0xff] %v5428_v22 }
 0x274   :  { %1176 = vst [vmem:[#allocation1] ss:$4 sm:$0xff] %v5402_v27 }
 0x275   :  { %1177 = vst [vmem:[#allocation1 + $0x1] ss:$4 sm:$0xff] %v5392_v1 }
 0x276   :  { %1178 = vst [vmem:[#allocation1 + $0x2] ss:$4 sm:$0xff] %v5319_v0 }
 0x277   :  { %1179 = vst [vmem:[#allocation1 + $0x3] ss:$4 sm:$0xff] %v5307_v19 }
 0x278   :  { %1230 = vst.msk [vmem:[#allocation2 + $0x212] sm:$0xff] %vm46_vm6, %v5504_v6  ;;  %v7169_v6 = vld [vmem:[#allocation5_spill] sm:$0xff] }
 0x279   :  { %1233 = vst.msk [vmem:[#allocation2 + $0x232] sm:$0xff] %vm46_vm6, %v1185_v50 }
 0x27e   :  { %v5524_v0 = vld.sshfl [vmem:[#allocation1] sm:$0xff pattern:$0x73625140] }
 0x27f   :  { %1186 = vst [vmem:[#allocation1] ss:$4 sm:$0xff] %v5424_v58  ;;  %v1762_v61 = vld [vmem:[#allocation2 + $0x212] sm:$0xff] }
 0x280   :  { %1187 = vst [vmem:[#allocation1 + $0x1] ss:$4 sm:$0xff] %v5416_v54  ;;  %v7166_v58 = vld [vmem:[#allocation28_spill] sm:$0xff]  ;;  %v528_v23 = vpop.f32.mrf.mxu1 }
 0x281   :  { %1188 = vst [vmem:[#allocation1 + $0x2] ss:$4 sm:$0xff] %v5355_v36  ;;  %v5545_v36 = vld [vmem:[%s7045_s2] ss:$0 sm:$0xff]  ;;  %s4554_s2 = smov 96  }
 0x282   :  { %1189 = vst [vmem:[#allocation1 + $0x3] ss:$4 sm:$0xff] %v5343_v39  ;;  %v433_v54 = vadd.f32 %v5545_v36, %v4808_v59  ;;  %v436_v21 = vadd.f32 %v5545_v36, %v4818_v63  ;;  %v457_v26 = vadd.f32 %v5545_v36, %v4926_v51  ;;  %v460_v18 = vadd.f32 %v5545_v36, %v4934_v55  ;;  %v1722_v55 = vld [vmem:[#allocation2 + $0x1b0] sm:$0xff] }
 0x283   :  { %v4277_v24 = vpack.i.bf16 %v1723_v37, %v1722_v55  ;;  %v481_v32 = vadd.f32 %v5545_v36, %v7163_v11  ;;  %v484_v39 = vadd.f32 %v5545_v36, %v7164_v25  ;;  %1232 = vst.msk [vmem:[#allocation2 + $0x22a] sm:$0xff] %vm46_vm6, %v5524_v0  ;;  %v505_v2 = vadd.f32 %v5545_v36, %v7165_v43  ;;  %v7172_v11 = vld [vmem:[#allocation12_spill] sm:$0xff]  ;;  %v7174_v43 = vld [vmem:[#allocation9_spill] sm:$0xff] }
 0x284   :  { %v680_v20 = vmul.f32 0.01, %v433_v54  ;;  %vm616_vm7 = vcmp.gt.f32.partialorder %v433_v54, 0.0  ;;  %v681_v59 = vmul.f32 0.01, %v436_v21  ;;  %vm617_vm8 = vcmp.gt.f32.partialorder %v436_v21, 0.0 }
 0x285   :  { %v688_v46 = vmul.f32 0.01, %v457_v26  ;;  %vm624_vm9 = vcmp.gt.f32.partialorder %v457_v26, 0.0  ;;  %v689_v51 = vmul.f32 0.01, %v460_v18  ;;  %vm625_vm10 = vcmp.gt.f32.partialorder %v460_v18, 0.0  ;;  %4278 = vrot.lane.b32.xlu2 %v4277_v24, %s4554_s2 }
 0x286   :  { %v5563_v63 = vsel %vm616_vm7, %v433_v54, %v680_v20  ;;  %v5567_v48 = vsel %vm617_vm8, %v436_v21, %v681_v59  ;;  %v696_v30 = vmul.f32 0.01, %v481_v32  ;;  %vm632_vm11 = vcmp.gt.f32.partialorder %v481_v32, 0.0  ;;  %1192 = vst [vmem:[#allocation1 + $0x22] ss:$4 sm:$0xff] %v7166_v58  ;;  %v7170_v54 = vld [vmem:[#allocation7_spill] sm:$0xff] }
 0x287   :  { %v1270_v38 = vrot.slane %v5563_v63, 4  ;;  %v1271_v8 = vrot.slane %v5567_v48, 4  ;;  %v5591_v44 = vsel %vm624_vm9, %v457_v26, %v688_v46  ;;  %v5595_v19 = vsel %vm625_vm10, %v460_v18, %v689_v51  ;;  %v7171_v51 = vld [vmem:[#allocation11_spill] sm:$0xff] }
 0x288   :  { %v1274_v16 = vrot.slane %v5591_v44, 4  ;;  %v1275_v7 = vrot.slane %v5595_v19, 4  ;;  %v697_v45 = vmul.f32 0.01, %v484_v39  ;;  %vm633_vm12 = vcmp.gt.f32.partialorder %v484_v39, 0.0  ;;  %v531_v3 = vpop.f32.mrf.mxu1 }
 0x289   :  { %v1194_v1 = vld.sshfl [vmem:[#allocation1] sm:$0xff pattern:$0x73625140]  ;;  %v5618_v41 = vsel %vm632_vm11, %v481_v32, %v696_v30  ;;  %v704_v22 = vmul.f32 0.01, %v505_v2  ;;  %vm640_vm13 = vcmp.gt.f32.partialorder %v505_v2, 0.0  ;;  %v529_v34 = vadd.f32 %v5545_v36, %v528_v23 }
 0x28a   :  { %1196 = vst [vmem:[#allocation1] ss:$4 sm:$0xff] %v5444_v47  ;;  %v5622_v27 = vsel %vm633_vm12, %v484_v39, %v697_v45  ;;  %v1278_v42 = vrot.slane %v5618_v41, 4  ;;  %v7168_v47 = vld [vmem:[#allocation27_spill] sm:$0xff]  ;;  %v532_v40 = vadd.f32 %v5545_v36, %v531_v3  ;;  %v439_v0 = vadd.f32 %v5545_v36, %v7169_v6 }
 0x28b   :  { %1197 = vst [vmem:[#allocation1 + $0x1] ss:$4 sm:$0xff] %v5438_v29  ;;  %v1279_v60 = vrot.slane %v5622_v27, 4  ;;  %v508_v29 = vadd.f32 %v5545_v36, %v7167_v9  ;;  %v5642_v62 = vsel %vm640_vm13, %v505_v2, %v704_v22  ;;  %v712_v53 = vmul.f32 0.01, %v529_v34  ;;  %v7176_v9 = vld [vmem:[#allocation10_spill] sm:$0xff] }
 0x28c   :  { %1198 = vst [vmem:[#allocation1 + $0x2] ss:$4 sm:$0xff] %v5389_v15  ;;  %v1282_v56 = vrot.slane %v5642_v62, 4  ;;  %vm648_vm15 = vcmp.gt.f32.partialorder %v529_v34, 0.0  ;;  %v713_v21 = vmul.f32 0.01, %v532_v40  ;;  %v463_v55 = vadd.f32 %v5545_v36, %v7171_v51 }
 0x28d   :  { %1199 = vst [vmem:[#allocation1 + $0x3] ss:$4 sm:$0xff] %v5376_v17  ;;  %v1763_v17 = vld [vmem:[#allocation2 + $0x21a] sm:$0xff]  ;;  %v705_v28 = vmul.f32 0.01, %v508_v29  ;;  %vm641_vm14 = vcmp.gt.f32.partialorder %v508_v29, 0.0  ;;  %v5663_v20 = vsel %vm648_vm15, %v529_v34, %v712_v53  ;;  %v466_v32 = vadd.f32 %v5545_v36, %v7172_v11 }
 0x28e   :  { %1234 = vst.msk [vmem:[#allocation2 + $0x242] sm:$0xff] %vm46_vm6, %v1194_v1  ;;  %v4252_v15 = vpack.i.bf16 %v1763_v17, %v1762_v61  ;;  %v442_v1 = vadd.f32 %v5545_v36, %v7170_v54  ;;  %vm649_vm0 = vcmp.gt.f32.partialorder %v532_v40, 0.0  ;;  %v682_v59 = vmul.f32 0.01, %v439_v0  ;;  %v7173_v61 = vld [vmem:[#allocation17_spill] sm:$0xff]  ;;  %v7179_v11 = vld [vmem:[#allocation6_spill] sm:$0xff] }
 0x28f   :  { %1193 = vst [vmem:[#allocation1 + $0x23] ss:$4 sm:$0xff] %v7168_v47  ;;  %v5644_v52 = vsel %vm641_vm14, %v508_v29, %v705_v28  ;;  %vm618_vm2 = vcmp.gt.f32.partialorder %v439_v0, 0.0  ;;  %v5669_v18 = vsel %vm649_vm0, %v532_v40, %v713_v21  ;;  %vm626_vm4 = vcmp.gt.f32.partialorder %v463_v55, 0.0  ;;  %v7177_v53 = vld [vmem:[#allocation25_spill] sm:$0xff]  ;;  %v7178_v21 = vld [vmem:[#allocation26_spill] sm:$0xff] }
 0x290   :  { %4253 = vrot.lane.b32.xlu0 %v4252_v15, %s4555_s17  ;;  %v1283_v49 = vrot.slane %v5644_v52, 4  ;;  %vm619_vm3 = vcmp.gt.f32.partialorder %v442_v1, 0.0  ;;  %v691_v25 = vmul.f32 0.01, %v466_v32  ;;  %vm627_vm5 = vcmp.gt.f32.partialorder %v466_v32, 0.0 }
 0x291   :  { %v487_v50 = vadd.f32 %v5545_v36, %v7173_v61  ;;  %v553_v2 = vadd.f32 %v5545_v36, %v7174_v43  ;;  %v556_v29 = vadd.f32 %v5545_v36, %v7176_v9  ;;  %v511_v6 = vadd.f32 %v5545_v36, %v7177_v53  ;;  %v7181_v43 = vld [vmem:[#allocation18_spill] sm:$0xff] }
 0x292   :  { %v5698_v30 = vsel %vm627_vm5, %v466_v32, %v691_v25  ;;  %v535_v32 = vadd.f32 %v5545_v36, %v7179_v11 }
 0x293   :  { %v1277_v15 = vrot.slane %v5698_v30, 4  ;;  %v698_v23 = vmul.f32 0.01, %v487_v50  ;;  %vm634_vm1 = vcmp.gt.f32.partialorder %v487_v50, 0.0  ;;  %v720_v22 = vmul.f32 0.01, %v553_v2 }
 0x294   :  { %v1204_v35 = vld.sshfl [vmem:[#allocation1] sm:$0xff pattern:$0x73625140]  ;;  %vm656_vm7 = vcmp.gt.f32.partialorder %v553_v2, 0.0  ;;  %v721_v34 = vmul.f32 0.01, %v556_v29 }
 0x295   :  { %1302 = vst [vmem:[#allocation1] ss:$4 sm:$0xff] %v5563_v63  ;;  %v5717_v47 = vsel %vm634_vm1, %v487_v50, %v698_v23  ;;  %v5719_v3 = vsel %vm656_vm7, %v553_v2, %v720_v22  ;;  %vm657_vm9 = vcmp.gt.f32.partialorder %v556_v29, 0.0  ;;  %vm642_vm10 = vcmp.gt.f32.partialorder %v511_v6, 0.0  ;;  %v7180_v50 = vld [vmem:[#allocation8_spill] sm:$0xff]  ;;  %v600_v23 = vpop.f32.mrf.mxu2 }
 0x296   :  { %1304 = vst [vmem:[#allocation1 + $0x1] ss:$4 sm:$0xff] %v1270_v38  ;;  %v1195_v4 = vld.sshfl [vmem:[#allocation1 + $0x20] sm:$0xff pattern:$0x73625140]  ;;  %v5729_v54 = vsel %vm657_vm9, %v556_v29, %v721_v34  ;;  %v577_v2 = vadd.f32 %v5545_v36, %v7181_v43  ;;  %vm650_vm12 = vcmp.gt.f32.partialorder %v535_v32, 0.0 }
 0x297   :  { %1306 = vst [vmem:[#allocation1 + $0x2] ss:$4 sm:$0xff] %v5567_v48  ;;  %v7093_v51 = vrot.slane %v5729_v54, 4  ;;  %v7182_v22 = vld [vmem:[#allocation20_spill] sm:$0xff]  ;;  %vm101_vm9 = vcmask 523264  }
 0x298   :  { %1308 = vst [vmem:[#allocation1 + $0x3] ss:$4 sm:$0xff] %v1271_v8  ;;  %v728_v29 = vmul.f32 0.01, %v577_v2  ;;  %vm664_vm14 = vcmp.gt.f32.partialorder %v577_v2, 0.0 }
 0x299   :  { %1236 = vst.msk [vmem:[#allocation2 + $0x25a] sm:$0xff] %vm46_vm6, %v1204_v35  ;;  %v683_v35 = vmul.f32 0.01, %v442_v1 }
 0x29a   :  { %1200 = vst [vmem:[#allocation1 + $0x20] ss:$4 sm:$0xff] %v5455_v57  ;;  %v1286_v57 = vrot.slane %v5663_v20, 4 }
 0x29b   :  { %1201 = vst [vmem:[#allocation1 + $0x21] ss:$4 sm:$0xff] %v5457_v13  ;;  %v5672_v13 = vsel %vm618_vm2, %v439_v0, %v682_v59  ;;  %v514_v59 = vadd.f32 %v5545_v36, %v7178_v21 }
 0x29c   :  { %1202 = vst [vmem:[#allocation1 + $0x22] ss:$4 sm:$0xff] %v5407_v31  ;;  %v5678_v31 = vsel %vm619_vm3, %v442_v1, %v683_v35  ;;  %v1272_v46 = vrot.slane %v5672_v13, 4  ;;  %v1290_v35 = vrot.slane %v5719_v3, 4 }
 0x29d   :  { %1203 = vst [vmem:[#allocation1 + $0x23] ss:$4 sm:$0xff] %v5404_v14  ;;  %v1287_v14 = vrot.slane %v5669_v18, 4  ;;  %v1273_v24 = vrot.slane %v5678_v31, 4  ;;  %vm643_vm11 = vcmp.gt.f32.partialorder %v514_v59, 0.0 }
 0x29e   :  { %1235 = vst.msk [vmem:[#allocation2 + $0x24a] sm:$0xff] %vm46_vm6, %v1195_v4  ;;  %v1280_v4 = vrot.slane %v5717_v47, 4 }
 0x29f   :  { %v1317_v12 = vld.sshfl [vmem:[#allocation1] sm:$0xff pattern:$0x73625140] }
 0x2a0   :  { %1321 = vst [vmem:[#allocation1 + $0x2] ss:$4 sm:$0xff] %v5595_v19 }
 0x2a1   :  { %1319 = vst [vmem:[#allocation1] ss:$4 sm:$0xff] %v5591_v44 }
 0x2a2   :  { %1320 = vst [vmem:[#allocation1 + $0x1] ss:$4 sm:$0xff] %v1274_v16 }
 0x2a3   :  { %1322 = vst [vmem:[#allocation1 + $0x3] ss:$4 sm:$0xff] %v1275_v7 }
 0x2a4   :  { %1406 = vst.msk [vmem:[#allocation2 + $0xf0] sm:$0xff] %vm46_vm6, %v1317_v12  ;;  %v1205_v37 = vld.sshfl [vmem:[#allocation1 + $0x20] sm:$0xff pattern:$0x73625140]  ;;  %v690_v12 = vmul.f32 0.01, %v463_v55 }
 0x2a5   :  { %1310 = vst [vmem:[#allocation1 + $0x20] ss:$4 sm:$0xff] %v5672_v13 }
 0x2a6   :  { %1312 = vst [vmem:[#allocation1 + $0x21] ss:$4 sm:$0xff] %v1272_v46  ;;  %v5696_v39 = vsel %vm626_vm4, %v463_v55, %v690_v12  ;;  %v707_v55 = vmul.f32 0.01, %v514_v59 }
 0x2a7   :  { %1314 = vst [vmem:[#allocation1 + $0x22] ss:$4 sm:$0xff] %v5678_v31  ;;  %v1276_v45 = vrot.slane %v5696_v39, 4 }
 0x2a8   :  { %1316 = vst [vmem:[#allocation1 + $0x23] ss:$4 sm:$0xff] %v1273_v24  ;;  %v5751_v12 = vsel %vm643_vm11, %v514_v59, %v707_v55 }
 0x2a9   :  { %1237 = vst.msk [vmem:[#allocation2 + $0x262] sm:$0xff] %vm46_vm6, %v1205_v37 }
 0x2aa   :  { %v1327_v33 = vld.sshfl [vmem:[#allocation1] sm:$0xff pattern:$0x73625140] }
 0x2ab   :  { %1329 = vst [vmem:[#allocation1] ss:$4 sm:$0xff] %v5618_v41 }
 0x2ac   :  { %1330 = vst [vmem:[#allocation1 + $0x1] ss:$4 sm:$0xff] %v1278_v42 }
 0x2ad   :  { %1331 = vst [vmem:[#allocation1 + $0x2] ss:$4 sm:$0xff] %v5622_v27 }
 0x2ae   :  { %1332 = vst [vmem:[#allocation1 + $0x3] ss:$4 sm:$0xff] %v1279_v60 }
 0x2af   :  { %1408 = vst.msk [vmem:[#allocation2 + $0x108] sm:$0xff] %vm46_vm6, %v1327_v33  ;;  %v1318_v17 = vld.sshfl [vmem:[#allocation1 + $0x20] sm:$0xff pattern:$0x73625140]  ;;  %v7175_v33 = vld [vmem:[#allocation19_spill] sm:$0xff] }
 0x2b0   :  { %1323 = vst [vmem:[#allocation1 + $0x20] ss:$4 sm:$0xff] %v5696_v39  ;;  %v490_v58 = vadd.f32 %v5545_v36, %v7175_v33  ;;  %v1285_v33 = vrot.slane %v5751_v12, 4 }
 0x2b1   :  { %1324 = vst [vmem:[#allocation1 + $0x21] ss:$4 sm:$0xff] %v1276_v45 }
 0x2b2   :  { %1325 = vst [vmem:[#allocation1 + $0x22] ss:$4 sm:$0xff] %v5698_v30  ;;  %v699_v28 = vmul.f32 0.01, %v490_v58  ;;  %vm635_vm8 = vcmp.gt.f32.partialorder %v490_v58, 0.0 }
 0x2b3   :  { %1326 = vst [vmem:[#allocation1 + $0x23] ss:$4 sm:$0xff] %v1277_v15 }
 0x2b4   :  { %1407 = vst.msk [vmem:[#allocation2 + $0xf8] sm:$0xff] %vm46_vm6, %v1318_v17  ;;  %v5721_v40 = vsel %vm635_vm8, %v490_v58, %v699_v28  ;;  %v538_v17 = vadd.f32 %v5545_v36, %v7180_v50  ;;  %v714_v58 = vmul.f32 0.01, %v535_v32  ;;  %v580_v28 = vadd.f32 %v5545_v36, %v7182_v22 }
 0x2b5   :  { %v1337_v10 = vld.sshfl [vmem:[#allocation1] sm:$0xff pattern:$0x73625140]  ;;  %v1281_v1 = vrot.slane %v5721_v40, 4 }
 0x2b6   :  { %1339 = vst [vmem:[#allocation1] ss:$4 sm:$0xff] %v5642_v62  ;;  %v715_v9 = vmul.f32 0.01, %v538_v17  ;;  %v5768_v34 = vsel %vm650_vm12, %v535_v32, %v714_v58  ;;  %vm651_vm13 = vcmp.gt.f32.partialorder %v538_v17, 0.0  ;;  %vm665_vm15 = vcmp.gt.f32.partialorder %v580_v28, 0.0  ;;  %v603_v32 = vpop.f32.mrf.mxu2 }
 0x2b7   :  { %1340 = vst [vmem:[#allocation1 + $0x1] ss:$4 sm:$0xff] %v1282_v56  ;;  %v1288_v53 = vrot.slane %v5768_v34, 4  ;;  %v729_v21 = vmul.f32 0.01, %v580_v28  ;;  %v604_v22 = vadd.f32 %v5545_v36, %v603_v32 }
 0x2b8   :  { %1341 = vst [vmem:[#allocation1 + $0x2] ss:$4 sm:$0xff] %v5644_v52 }
 0x2b9   :  { %1342 = vst [vmem:[#allocation1 + $0x3] ss:$4 sm:$0xff] %v1283_v49  ;;  %vm673_vm4 = vcmp.gt.f32.partialorder %v604_v22, 0.0 }
 0x2ba   :  { %1410 = vst.msk [vmem:[#allocation2 + $0x120] sm:$0xff] %vm46_vm6, %v1337_v10  ;;  %v1328_v0 = vld.sshfl [vmem:[#allocation1 + $0x20] sm:$0xff pattern:$0x73625140] }
 0x2bb   :  { %1333 = vst [vmem:[#allocation1 + $0x20] ss:$4 sm:$0xff] %v5717_v47 }
 0x2bc   :  { %1334 = vst [vmem:[#allocation1 + $0x21] ss:$4 sm:$0xff] %v1280_v4 }
 0x2bd   :  { %1335 = vst [vmem:[#allocation1 + $0x22] ss:$4 sm:$0xff] %v5721_v40 }
 0x2be   :  { %1336 = vst [vmem:[#allocation1 + $0x23] ss:$4 sm:$0xff] %v1281_v1 }
 0x2bf   :  { %1409 = vst.msk [vmem:[#allocation2 + $0x110] sm:$0xff] %vm46_vm6, %v1328_v0  ;;  %v5773_v0 = vsel %vm664_vm14, %v577_v2, %v728_v29 }
 0x2c0   :  { %v1347_v26 = vld.sshfl [vmem:[#allocation1] sm:$0xff pattern:$0x73625140]  ;;  %v7091_v43 = vrot.slane %v5773_v0, 4 }
 0x2c1   :  { %1349 = vst [vmem:[#allocation1] ss:$4 sm:$0xff] %v5663_v20 }
 0x2c2   :  { %1350 = vst [vmem:[#allocation1 + $0x1] ss:$4 sm:$0xff] %v1286_v57 }
 0x2c3   :  { %1412 = vst.msk [vmem:[#allocation2 + $0x138] sm:$0xff] %vm46_vm6, %v1347_v26  ;;  %v706_v26 = vmul.f32 0.01, %v511_v6 }
 0x2c4   :  { %1351 = vst [vmem:[#allocation1 + $0x2] ss:$4 sm:$0xff] %v5669_v18 }
 0x2c5   :  { %1352 = vst [vmem:[#allocation1 + $0x3] ss:$4 sm:$0xff] %v1287_v14  ;;  %v5746_v37 = vsel %vm642_vm10, %v511_v6, %v706_v26  ;;  %v1338_v61 = vld.sshfl [vmem:[#allocation1 + $0x20] sm:$0xff pattern:$0x73625140]  ;;  %v5771_v6 = vsel %vm651_vm13, %v538_v17, %v715_v9  ;;  %v7183_v26 = vld [vmem:[#allocation13_spill] sm:$0xff]  ;;  %v5785_v17 = vsel %vm665_vm15, %v580_v28, %v729_v21  ;;  %v601_v9 = vadd.f32 %v5545_v36, %v600_v23 }
 0x2c6   :  { %v1284_v25 = vrot.slane %v5746_v37, 4  ;;  %1343 = vst [vmem:[#allocation1 + $0x20] ss:$4 sm:$0xff] %v5746_v37  ;;  %v559_v55 = vadd.f32 %v5545_v36, %v7183_v26  ;;  %v7097_v11 = vrot.slane %v5771_v6, 4  ;;  %v7092_v58 = vrot.slane %v5785_v17, 4 }
 0x2c7   :  { %1345 = vst [vmem:[#allocation1 + $0x22] ss:$4 sm:$0xff] %v5751_v12  ;;  %vm672_vm3 = vcmp.gt.f32.partialorder %v601_v9, 0.0  ;;  %v737_v26 = vmul.f32 0.01, %v604_v22  ;;  %vm2234_vm10 = vcmask 785408  }
 0x2c8   :  { %1344 = vst [vmem:[#allocation1 + $0x21] ss:$4 sm:$0xff] %v1284_v25  ;;  %v722_v2 = vmul.f32 0.01, %v559_v55  ;;  %vm658_vm0 = vcmp.gt.f32.partialorder %v559_v55, 0.0 }
 0x2c9   :  { %1346 = vst [vmem:[#allocation1 + $0x23] ss:$4 sm:$0xff] %v1285_v33 }
 0x2ca   :  { %1411 = vst.msk [vmem:[#allocation2 + $0x128] sm:$0xff] %vm46_vm6, %v1338_v61  ;;  %v7184_v61 = vld [vmem:[#allocation14_spill] sm:$0xff]  ;;  %v5800_v28 = vsel %vm658_vm0, %v559_v55, %v722_v2 }
 0x2cb   :  { %v562_v50 = vadd.f32 %v5545_v36, %v7184_v61  ;;  %v7095_v23 = vrot.slane %v5800_v28, 4  ;;  %v606_v61 = vpop.f32.mrf.mxu2 }
 0x2cc   :  { %v1357_v10 = vld.sshfl [vmem:[#allocation1] sm:$0xff pattern:$0x73625140] }
 0x2cd   :  { %1414 = vst.msk [vmem:[#allocation2 + $0x150] sm:$0xff] %vm46_vm6, %v1357_v10  ;;  %v723_v29 = vmul.f32 0.01, %v562_v50  ;;  %vm659_vm2 = vcmp.gt.f32.partialorder %v562_v50, 0.0 }
 0x2ce   :  { %1359 = vst [vmem:[#allocation1] ss:$4 sm:$0xff] %v5719_v3 }
 0x2cf   :  { %1360 = vst [vmem:[#allocation1 + $0x1] ss:$4 sm:$0xff] %v1290_v35  ;;  %v5802_v21 = vsel %vm659_vm2, %v562_v50, %v723_v29  ;;  %v7186_v50 = vld [vmem:[#allocation22_spill] sm:$0xff] }
 0x2d0   :  { %1361 = vst [vmem:[#allocation1 + $0x2] ss:$4 sm:$0xff] %v5729_v54  ;;  %v1348_v59 = vld.sshfl [vmem:[#allocation1 + $0x20] sm:$0xff pattern:$0x73625140]  ;;  %v7094_v55 = vrot.slane %v5802_v21, 4  ;;  %v586_v2 = vadd.f32 %v5545_v36, %v7186_v50 }
 0x2d1   :  { %1362 = vst [vmem:[#allocation1 + $0x3] ss:$4 sm:$0xff] %v7093_v51 }
 0x2d2   :  { %1353 = vst [vmem:[#allocation1 + $0x20] ss:$4 sm:$0xff] %v5768_v34  ;;  %vm667_vm1 = vcmp.gt.f32.partialorder %v586_v2, 0.0 }
 0x2d3   :  { %1354 = vst [vmem:[#allocation1 + $0x21] ss:$4 sm:$0xff] %v1288_v53 }
 0x2d4   :  { %1355 = vst [vmem:[#allocation1 + $0x22] ss:$4 sm:$0xff] %v5771_v6  ;;  %v1794_v51 = vld [vmem:[#allocation2 + $0x150] sm:$0xff] }
 0x2d5   :  { %1356 = vst [vmem:[#allocation1 + $0x23] ss:$4 sm:$0xff] %v7097_v11  ;;  %v1691_v11 = vld [vmem:[#allocation2 + $0xe0] sm:$0xff] }
 0x2d6   :  { %1413 = vst.msk [vmem:[#allocation2 + $0x140] sm:$0xff] %vm46_vm6, %v1348_v59 }
 0x2d8   :  { %v1367_v10 = vld.sshfl [vmem:[#allocation1] sm:$0xff pattern:$0x73625140] }
 0x2d9   :  { %1416 = vst.msk [vmem:[#allocation2 + $0x168] sm:$0xff] %vm46_vm6, %v1367_v10  ;;  %v736_v10 = vmul.f32 0.01, %v601_v9 }
 0x2da   :  { %1369 = vst [vmem:[#allocation1] ss:$4 sm:$0xff] %v5773_v0 }
 0x2db   :  { %1370 = vst [vmem:[#allocation1 + $0x1] ss:$4 sm:$0xff] %v7091_v43  ;;  %v583_v43 = vadd.f32 %v5545_v36, %v7185_v5  ;;  %v5810_v32 = vsel %vm672_vm3, %v601_v9, %v736_v10  ;;  %v731_v9 = vmul.f32 0.01, %v586_v2 }
 0x2dc   :  { %1371 = vst [vmem:[#allocation1 + $0x2] ss:$4 sm:$0xff] %v5785_v17  ;;  %v1358_v59 = vld.sshfl [vmem:[#allocation1 + $0x20] sm:$0xff pattern:$0x73625140] }
 0x2dd   :  { %1372 = vst [vmem:[#allocation1 + $0x3] ss:$4 sm:$0xff] %v7092_v58  ;;  %v730_v5 = vmul.f32 0.01, %v583_v43  ;;  %v7096_v58 = vrot.slane %v5810_v32, 4  ;;  %vm666_vm5 = vcmp.gt.f32.partialorder %v583_v43, 0.0 }
 0x2de   :  { %1415 = vst.msk [vmem:[#allocation2 + $0x158] sm:$0xff] %vm46_vm6, %v1358_v59  ;;  %v5817_v59 = vsel %vm673_vm4, %v604_v22, %v737_v26 }
 0x2df   :  { %1363 = vst [vmem:[#allocation1 + $0x20] ss:$4 sm:$0xff] %v5800_v28  ;;  %v7098_v10 = vrot.slane %v5817_v59, 4  ;;  %v5828_v26 = vsel %vm666_vm5, %v583_v43, %v730_v5 }
 0x2e0   :  { %1364 = vst [vmem:[#allocation1 + $0x21] ss:$4 sm:$0xff] %v7095_v23  ;;  %v607_v23 = vadd.f32 %v5545_v36, %v606_v61 }
 0x2e1   :  { %1365 = vst [vmem:[#allocation1 + $0x22] ss:$4 sm:$0xff] %v5802_v21 }
 0x2e2   :  { %1366 = vst [vmem:[#allocation1 + $0x23] ss:$4 sm:$0xff] %v7094_v55  ;;  %v5835_v55 = vsel %vm667_vm1, %v586_v2, %v731_v9  ;;  %vm674_vm7 = vcmp.gt.f32.partialorder %v607_v23, 0.0  ;;  %v1796_v9 = vld [vmem:[#allocation2 + $0x168] sm:$0xff] }
 0x2e3   :  { %v7101_v5 = vrot.slane %v5835_v55, 4 }
 0x2e4   :  { %v1377_v29 = vld.sshfl [vmem:[#allocation1] sm:$0xff pattern:$0x73625140] }
 0x2e5   :  { %1418 = vst.msk [vmem:[#allocation2 + $0x180] sm:$0xff] %vm46_vm6, %v1377_v29  ;;  %v1795_v50 = vld [vmem:[#allocation2 + $0x158] sm:$0xff]  ;;  %v609_v29 = vpop.f32.mrf.mxu2 }
 0x2e6   :  { %1379 = vst [vmem:[#allocation1] ss:$4 sm:$0xff] %v5810_v32  ;;  %v4262_v22 = vpack.i.bf16 %v1795_v50, %v1794_v51  ;;  %v1296_v50 = vrot.slane %v5828_v26, 4  ;;  %v610_v43 = vadd.f32 %v5545_v36, %v609_v29 }
 0x2e7   :  { %1380 = vst [vmem:[#allocation1 + $0x1] ss:$4 sm:$0xff] %v7096_v58  ;;  %v1690_v58 = vld [vmem:[#allocation2 + $0xd8] sm:$0xff] }
 0x2e8   :  { %1381 = vst [vmem:[#allocation1 + $0x2] ss:$4 sm:$0xff] %v5817_v59  ;;  %4263 = vrot.lane.b32.xlu1 %v4262_v22, %s4554_s2  ;;  %v4267_v22 = vpack.i.bf16 %v1691_v11, %v1690_v58  ;;  %v739_v2 = vmul.f32 0.01, %v610_v43  ;;  %vm675_vm8 = vcmp.gt.f32.partialorder %v610_v43, 0.0 }
 0x2e9   :  { %1382 = vst [vmem:[#allocation1 + $0x3] ss:$4 sm:$0xff] %v7098_v10  ;;  %v1368_v51 = vld.sshfl [vmem:[#allocation1 + $0x20] sm:$0xff pattern:$0x73625140] }
 0x2ea   :  { %1425 = vst.sshfl [vmem:[#allocation1 + $0x10] sm:$0xff pattern:$0x75643120] %v1270_v38  ;;  %v738_v38 = vmul.f32 0.01, %v607_v23 }
 0x2eb   :  { %1417 = vst.msk [vmem:[#allocation2 + $0x170] sm:$0xff] %vm46_vm6, %v1368_v51  ;;  %v5859_v51 = vsel %vm675_vm8, %v610_v43, %v739_v2 }
 0x2ec   :  { %1373 = vst [vmem:[#allocation1 + $0x20] ss:$4 sm:$0xff] %v5828_v26  ;;  %v5853_v11 = vsel %vm674_vm7, %v607_v23, %v738_v38  ;;  %v1725_v23 = vld [vmem:[#allocation2 + $0x1d0] sm:$0xff]  ;;  %v1798_v2 = vld [vmem:[#allocation2 + $0x180] sm:$0xff]  ;;  %vm103_vm7 = vcmask 517120  }
 0x2ed   :  { %1374 = vst [vmem:[#allocation1 + $0x21] ss:$4 sm:$0xff] %v1296_v50  ;;  %v7100_v10 = vrot.slane %v5853_v11, 4 }
 0x2ee   :  { %1375 = vst [vmem:[#allocation1 + $0x22] ss:$4 sm:$0xff] %v5835_v55 }
 0x2ef   :  { %1376 = vst [vmem:[#allocation1 + $0x23] ss:$4 sm:$0xff] %v7101_v5 }
 0x2f0   :  { %v1387_v61 = vld.sshfl [vmem:[#allocation1] sm:$0xff pattern:$0x73625140]  ;;  %4268 = vrot.lane.b32.xlu1 %v4267_v22, %s4555_s17  ;;  %v7099_v22 = vrot.slane %v5859_v51, 4 }
 0x2f1   :  { %1420 = vst.msk [vmem:[#allocation2 + $0x198] sm:$0xff] %vm46_vm6, %v1387_v61  ;;  %v5849_v36 = vld [vmem:[#allocation1 + $0x11] ss:$2 sm:$0xff] }
 0x2f2   :  { %1422 = vst.sshfl [vmem:[#allocation1] sm:$0xff pattern:$0x75643120] %v5563_v63  ;;  %v1797_v58 = vld [vmem:[#allocation2 + $0x170] sm:$0xff]  ;;  %v1724_v63 = vld [vmem:[#allocation2 + $0x1c8] sm:$0xff] }
 0x2f3   :  { %1436 = vst.sshfl [vmem:[#allocation1 + $0x10] sm:$0xff pattern:$0x75643120] %v1272_v46  ;;  %v5857_v29 = vpack.i.bf16 %v1797_v58, %v1796_v9  ;;  %v4307_v43 = vpack.i.bf16 %v1725_v23, %v1724_v63 }
 0x2f5   :  { %7187 = vst [vmem:[#allocation15_spill] sm:$0xff] %v5857_v29  ;;  %4288 = vrot.lane.b32.xlu2 %v5857_v29, %s4554_s2 }
 0x2f6   :  { %v1378_v61 = vld.sshfl [vmem:[#allocation1 + $0x20] sm:$0xff pattern:$0x73625140] }
 0x2f7   :  { %1419 = vst.msk [vmem:[#allocation2 + $0x188] sm:$0xff] %vm46_vm6, %v1378_v61 }
 0x2f8   :  { %1383 = vst [vmem:[#allocation1 + $0x20] ss:$4 sm:$0xff] %v5853_v11 }
 0x2f9   :  { %1384 = vst [vmem:[#allocation1 + $0x21] ss:$4 sm:$0xff] %v7100_v10  ;;  %v5870_v46 = vld [vmem:[#allocation1 + $0x1] ss:$2 sm:$0xff] }
 0x2fa   :  { %1385 = vst [vmem:[#allocation1 + $0x22] ss:$4 sm:$0xff] %v5859_v51  ;;  %v5874_v38 = vld [vmem:[#allocation1 + $0x11] ss:$2 sm:$0xff] }
 0x2fb   :  { %1386 = vst [vmem:[#allocation1 + $0x23] ss:$4 sm:$0xff] %v7099_v22 }
 0x2fc   :  { %1431 = vst.sshfl [vmem:[#allocation1 + $0x30] sm:$0xff pattern:$0x75643120] %v1271_v8 }
 0x2fd   :  { %4308 = vrot.lane.b32.xlu2 %v4307_v43, %s4554_s2  ;;  %1434 = vst.sshfl [vmem:[#allocation1] sm:$0xff pattern:$0x75643120] %v5672_v13  ;;  %v1727_v13 = vld [vmem:[#allocation2 + $0x1e8] sm:$0xff] }
 0x2fe   :  { %1444 = vst.sshfl [vmem:[#allocation1 + $0x10] sm:$0xff pattern:$0x75643120] %v1274_v16  ;;  %v1799_v9 = vld [vmem:[#allocation2 + $0x188] sm:$0xff]  ;;  %v1726_v16 = vld [vmem:[#allocation2 + $0x1e0] sm:$0xff] }
 0x2ff   :  { %v5882_v61 = vpack.i.bf16 %v1799_v9, %v1798_v2  ;;  %v4337_v43 = vpack.i.bf16 %v1727_v13, %v1726_v16 }
 0x301   :  { %7188 = vst [vmem:[#allocation16_spill] sm:$0xff] %v5882_v61 }
 0x302   :  { %v1388_v58 = vld.sshfl [vmem:[#allocation1 + $0x20] sm:$0xff pattern:$0x73625140] }
 0x303   :  { %1421 = vst.msk [vmem:[#allocation2 + $0x1a0] sm:$0xff] %vm46_vm6, %v1388_v58  ;;  %v5885_v63 = vld [vmem:[#allocation1 + $0x31] ss:$2 sm:$0xff] }
 0x304   :  { %1428 = vst.sshfl [vmem:[#allocation1 + $0x20] sm:$0xff pattern:$0x75643120] %v5567_v48  ;;  %v5888_v23 = vld [vmem:[#allocation1 + $0x1] ss:$2 sm:$0xff] }
 0x305   :  { %4318 = vrot.lane.b32.xlu2 %v5882_v61, %s4554_s2  ;;  %1440 = vst.sshfl [vmem:[#allocation1 + $0x30] sm:$0xff pattern:$0x75643120] %v1273_v24  ;;  %v5894_v8 = vld [vmem:[#allocation1 + $0x11] ss:$2 sm:$0xff] }
 0x306   :  { %1442 = vst.sshfl [vmem:[#allocation1] sm:$0xff pattern:$0x75643120] %v5591_v44  ;;  %v1761_v61 = vld [vmem:[#allocation2 + $0x202] sm:$0xff] }
 0x307   :  { %1452 = vst.sshfl [vmem:[#allocation1 + $0x10] sm:$0xff pattern:$0x75643120] %v1276_v45 }
 0x30b   :  { %v5899_v2 = vld [vmem:[#allocation1 + $0x21] ss:$2 sm:$0xff] }
 0x30c   :  { %1438 = vst.sshfl [vmem:[#allocation1 + $0x20] sm:$0xff pattern:$0x75643120] %v5678_v31  ;;  %v5902_v48 = vld [vmem:[#allocation1 + $0x31] ss:$2 sm:$0xff] }
 0x30d   :  { %4338 = vrot.lane.b32.xlu2 %v4337_v43, %s4554_s2  ;;  %v5905_v9 = vld [vmem:[#allocation1 + $0x1] ss:$2 sm:$0xff]  ;;  %1448 = vst.sshfl [vmem:[#allocation1 + $0x30] sm:$0xff pattern:$0x75643120] %v1275_v7 }
 0x30e   :  { %1450 = vst.sshfl [vmem:[#allocation1] sm:$0xff pattern:$0x75643120] %v5696_v39  ;;  %v5910_v44 = vld [vmem:[#allocation1 + $0x11] ss:$2 sm:$0xff] }
 0x30f   :  { %1460 = vst.sshfl [vmem:[#allocation1 + $0x10] sm:$0xff pattern:$0x75643120] %v1278_v42 }
 0x313   :  { %v5914_v24 = vld [vmem:[#allocation1 + $0x21] ss:$2 sm:$0xff] }
 0x314   :  { %1446 = vst.sshfl [vmem:[#allocation1 + $0x20] sm:$0xff pattern:$0x75643120] %v5595_v19  ;;  %v5917_v31 = vld [vmem:[#allocation1 + $0x31] ss:$2 sm:$0xff] }
 0x315   :  { %v5919_v45 = vld [vmem:[#allocation1 + $0x1] ss:$2 sm:$0xff]  ;;  %1456 = vst.sshfl [vmem:[#allocation1 + $0x30] sm:$0xff pattern:$0x75643120] %v1277_v15 }
 0x316   :  { %1458 = vst.sshfl [vmem:[#allocation1] sm:$0xff pattern:$0x75643120] %v5618_v41  ;;  %v5924_v7 = vld [vmem:[#allocation1 + $0x11] ss:$2 sm:$0xff]  ;;  %v1800_v41 = vld [vmem:[#allocation2 + $0x198] sm:$0xff] }
 0x317   :  { %1468 = vst.sshfl [vmem:[#allocation1 + $0x10] sm:$0xff pattern:$0x75643120] %v1280_v4  ;;  %v1801_v4 = vld [vmem:[#allocation2 + $0x1a0] sm:$0xff] }
 0x318   :  { %v4352_v58 = vpack.i.bf16 %v1801_v4, %v1800_v41 }
 0x31a   :  { %4353 = vrot.lane.b32.xlu2 %v4352_v58, %s4554_s2 }
 0x31b   :  { %v5928_v39 = vld [vmem:[#allocation1 + $0x21] ss:$2 sm:$0xff] }
 0x31c   :  { %1454 = vst.sshfl [vmem:[#allocation1 + $0x20] sm:$0xff pattern:$0x75643120] %v5698_v30  ;;  %v5931_v42 = vld [vmem:[#allocation1 + $0x31] ss:$2 sm:$0xff] }
 0x31d   :  { %v5933_v19 = vld [vmem:[#allocation1 + $0x1] ss:$2 sm:$0xff]  ;;  %1464 = vst.sshfl [vmem:[#allocation1 + $0x30] sm:$0xff pattern:$0x75643120] %v1279_v60 }
 0x31e   :  { %1466 = vst.sshfl [vmem:[#allocation1] sm:$0xff pattern:$0x75643120] %v5717_v47  ;;  %v5938_v15 = vld [vmem:[#allocation1 + $0x11] ss:$2 sm:$0xff]  ;;  %v1729_v47 = vld [vmem:[#allocation2 + $0x200] sm:$0xff] }
 0x31f   :  { %1476 = vst.sshfl [vmem:[#allocation1 + $0x10] sm:$0xff pattern:$0x75643120] %v1282_v56  ;;  %v1728_v56 = vld [vmem:[#allocation2 + $0x1f8] sm:$0xff] }
 0x320   :  { %v4367_v43 = vpack.i.bf16 %v1729_v47, %v1728_v56 }
 0x322   :  { %4368 = vrot.lane.b32.xlu2 %v4367_v43, %s4554_s2 }
 0x323   :  { %v5942_v16 = vld [vmem:[#allocation1 + $0x21] ss:$2 sm:$0xff] }
 0x324   :  { %1462 = vst.sshfl [vmem:[#allocation1 + $0x20] sm:$0xff pattern:$0x75643120] %v5622_v27  ;;  %v5945_v30 = vld [vmem:[#allocation1 + $0x31] ss:$2 sm:$0xff] }
 0x325   :  { %v5948_v13 = vld [vmem:[#allocation1 + $0x1] ss:$2 sm:$0xff]  ;;  %1472 = vst.sshfl [vmem:[#allocation1 + $0x30] sm:$0xff pattern:$0x75643120] %v1281_v1  ;;  %v1730_v1 = vld [vmem:[#allocation2 + $0x210] sm:$0xff] }
 0x326   :  { %1474 = vst.sshfl [vmem:[#allocation1] sm:$0xff pattern:$0x75643120] %v5642_v62  ;;  %v5953_v60 = vld [vmem:[#allocation1 + $0x11] ss:$2 sm:$0xff] }
 0x327   :  { %1484 = vst.sshfl [vmem:[#allocation1 + $0x10] sm:$0xff pattern:$0x75643120] %v1284_v25  ;;  %v1731_v25 = vld [vmem:[#allocation2 + $0x218] sm:$0xff] }
 0x328   :  { %v4382_v58 = vpack.i.bf16 %v1731_v25, %v1730_v1 }
 0x32a   :  { %4383 = vrot.lane.b32.xlu2 %v4382_v58, %s4554_s2 }
 0x32b   :  { %v5957_v27 = vld [vmem:[#allocation1 + $0x21] ss:$2 sm:$0xff] }
 0x32c   :  { %1470 = vst.sshfl [vmem:[#allocation1 + $0x20] sm:$0xff pattern:$0x75643120] %v5721_v40  ;;  %v5960_v41 = vld [vmem:[#allocation1 + $0x31] ss:$2 sm:$0xff] }
 0x32d   :  { %v5963_v4 = vld [vmem:[#allocation1 + $0x1] ss:$2 sm:$0xff]  ;;  %1480 = vst.sshfl [vmem:[#allocation1 + $0x30] sm:$0xff pattern:$0x75643120] %v1283_v49 }
 0x32e   :  { %1482 = vst.sshfl [vmem:[#allocation1] sm:$0xff pattern:$0x75643120] %v5746_v37  ;;  %v5968_v62 = vld [vmem:[#allocation1 + $0x11] ss:$2 sm:$0xff] }
 0x32f   :  { %1492 = vst.sshfl [vmem:[#allocation1 + $0x10] sm:$0xff pattern:$0x75643120] %v1286_v57  ;;  %v1732_v57 = vld [vmem:[#allocation2 + $0x228] sm:$0xff]  ;;  %v1733_v37 = vld [vmem:[#allocation2 + $0x230] sm:$0xff] }
 0x330   :  { %v4397_v43 = vpack.i.bf16 %v1733_v37, %v1732_v57 }
 0x332   :  { %4398 = vrot.lane.b32.xlu2 %v4397_v43, %s4554_s2  ;;  %v1736_v43 = vld [vmem:[#allocation2 + $0x258] sm:$0xff] }
 0x333   :  { %v5972_v40 = vld [vmem:[#allocation1 + $0x21] ss:$2 sm:$0xff] }
 0x334   :  { %1478 = vst.sshfl [vmem:[#allocation1 + $0x20] sm:$0xff pattern:$0x75643120] %v5644_v52  ;;  %v5975_v56 = vld [vmem:[#allocation1 + $0x31] ss:$2 sm:$0xff] }
 0x335   :  { %v5978_v47 = vld [vmem:[#allocation1 + $0x1] ss:$2 sm:$0xff]  ;;  %1488 = vst.sshfl [vmem:[#allocation1 + $0x30] sm:$0xff pattern:$0x75643120] %v1285_v33 }
 0x336   :  { %1490 = vst.sshfl [vmem:[#allocation1] sm:$0xff pattern:$0x75643120] %v5663_v20  ;;  %v5983_v49 = vld [vmem:[#allocation1 + $0x11] ss:$2 sm:$0xff]  ;;  %v1734_v33 = vld [vmem:[#allocation2 + $0x240] sm:$0xff] }
 0x337   :  { %1500 = vst.sshfl [vmem:[#allocation1 + $0x10] sm:$0xff pattern:$0x75643120] %v1288_v53  ;;  %v1735_v53 = vld [vmem:[#allocation2 + $0x248] sm:$0xff] }
 0x338   :  { %v4412_v58 = vpack.i.bf16 %v1735_v53, %v1734_v33  ;;  %v1737_v33 = vld [vmem:[#allocation2 + $0x260] sm:$0xff] }
 0x339   :  { %v4427_v53 = vpack.i.bf16 %v1737_v33, %v1736_v43  ;;  %v1758_v43 = vld [vmem:[#allocation2 + $0x1e2] sm:$0xff]  ;;  %v1759_v33 = vld [vmem:[#allocation2 + $0x1ea] sm:$0xff] }
 0x33a   :  { %4413 = vrot.lane.b32.xlu2 %v4412_v58, %s4554_s2  ;;  %v4442_v10 = vpack.i.bf16 %v1759_v33, %v1758_v43  ;;  %v1791_v43 = vld [vmem:[#allocation2 + $0x128] sm:$0xff] }
 0x33b   :  { %v5987_v52 = vld [vmem:[#allocation1 + $0x21] ss:$2 sm:$0xff] }
 0x33c   :  { %1486 = vst.sshfl [vmem:[#allocation1 + $0x20] sm:$0xff pattern:$0x75643120] %v5751_v12  ;;  %v5990_v1 = vld [vmem:[#allocation1 + $0x31] ss:$2 sm:$0xff] }
 0x33d   :  { %v5993_v25 = vld [vmem:[#allocation1 + $0x1] ss:$2 sm:$0xff]  ;;  %1496 = vst.sshfl [vmem:[#allocation1 + $0x30] sm:$0xff pattern:$0x75643120] %v1287_v14  ;;  %v7189_v14 = vrot.slane %v5771_v6, 4 }
 0x33e   :  { %1498 = vst.sshfl [vmem:[#allocation1] sm:$0xff pattern:$0x75643120] %v5768_v34  ;;  %v5998_v20 = vld [vmem:[#allocation1 + $0x11] ss:$2 sm:$0xff] }
 0x33f   :  { %1508 = vst.sshfl [vmem:[#allocation1 + $0x10] sm:$0xff pattern:$0x75643120] %v1290_v35  ;;  %v7190_v35 = vrot.slane %v5800_v28, 4 }
 0x342   :  { %4428 = vrot.lane.b32.xlu2 %v4427_v53, %s4554_s2 }
 0x343   :  { %v6002_v12 = vld [vmem:[#allocation1 + $0x21] ss:$2 sm:$0xff] }
 0x344   :  { %1494 = vst.sshfl [vmem:[#allocation1 + $0x20] sm:$0xff pattern:$0x75643120] %v5669_v18  ;;  %v6005_v57 = vld [vmem:[#allocation1 + $0x31] ss:$2 sm:$0xff] }
 0x345   :  { %v6008_v37 = vld [vmem:[#allocation1 + $0x1] ss:$2 sm:$0xff]  ;;  %1504 = vst.sshfl [vmem:[#allocation1 + $0x30] sm:$0xff pattern:$0x75643120] %v7189_v14 }
 0x346   :  { %1506 = vst.sshfl [vmem:[#allocation1] sm:$0xff pattern:$0x75643120] %v5719_v3  ;;  %v6013_v34 = vld [vmem:[#allocation1 + $0x11] ss:$2 sm:$0xff]  ;;  %v7191_v3 = vrot.slane %v5729_v54, 4 }
 0x347   :  { %1516 = vst.sshfl [vmem:[#allocation1 + $0x10] sm:$0xff pattern:$0x75643120] %v7190_v35  ;;  %v7192_v35 = vrot.slane %v5773_v0, 4 }
 0x34a   :  { %4443 = vrot.lane.b32.xlu2 %v4442_v10, %s4555_s17 }
 0x34b   :  { %v6017_v18 = vld [vmem:[#allocation1 + $0x21] ss:$2 sm:$0xff] }
 0x34c   :  { %1502 = vst.sshfl [vmem:[#allocation1 + $0x20] sm:$0xff pattern:$0x75643120] %v5771_v6  ;;  %v6020_v58 = vld [vmem:[#allocation1 + $0x31] ss:$2 sm:$0xff] }
 0x34d   :  { %v6023_v22 = vld [vmem:[#allocation1 + $0x1] ss:$2 sm:$0xff]  ;;  %1512 = vst.sshfl [vmem:[#allocation1 + $0x30] sm:$0xff pattern:$0x75643120] %v7191_v3 }
 0x34e   :  { %1514 = vst.sshfl [vmem:[#allocation1] sm:$0xff pattern:$0x75643120] %v5800_v28  ;;  %v6028_v14 = vld [vmem:[#allocation1 + $0x11] ss:$2 sm:$0xff]  ;;  %v7193_v28 = vrot.slane %v5802_v21, 4 }
 0x34f   :  { %1524 = vst.sshfl [vmem:[#allocation1 + $0x10] sm:$0xff pattern:$0x75643120] %v7192_v35  ;;  %v1790_v35 = vld [vmem:[#allocation2 + $0x120] sm:$0xff] }
 0x350   :  { %v6047_v33 = vpack.i.bf16 %v1791_v43, %v1790_v35  ;;  %v7198_v35 = vrot.slane %v5810_v32, 4  ;;  %v1760_v43 = vld [vmem:[#allocation2 + $0x1fa] sm:$0xff] }
 0x352   :  { %7195 = vst [vmem:[#allocation28_spill] sm:$0xff] %v6047_v33  ;;  %4458 = vrot.lane.b32.xlu2 %v6047_v33, %s4554_s2 }
 0x353   :  { %v6032_v6 = vld [vmem:[#allocation1 + $0x21] ss:$2 sm:$0xff] }
 0x354   :  { %1510 = vst.sshfl [vmem:[#allocation1 + $0x20] sm:$0xff pattern:$0x75643120] %v5729_v54  ;;  %v6035_v53 = vld [vmem:[#allocation1 + $0x31] ss:$2 sm:$0xff] }
 0x355   :  { %v6038_v5 = vld [vmem:[#allocation1 + $0x1] ss:$2 sm:$0xff]  ;;  %1520 = vst.sshfl [vmem:[#allocation1 + $0x30] sm:$0xff pattern:$0x75643120] %v7193_v28 }
 0x356   :  { %1522 = vst.sshfl [vmem:[#allocation1] sm:$0xff pattern:$0x75643120] %v5773_v0  ;;  %v6043_v3 = vld [vmem:[#allocation1 + $0x11] ss:$2 sm:$0xff]  ;;  %v7196_v0 = vrot.slane %v5785_v17, 4 }
 0x357   :  { %7194 = vst [vmem:[#allocation23_spill] sm:$0xff] %v6043_v3 }
 0x358   :  { %1532 = vst.sshfl [vmem:[#allocation1 + $0x10] sm:$0xff pattern:$0x75643120] %v1296_v50 }
 0x35b   :  { %v6049_v54 = vld [vmem:[#allocation1 + $0x21] ss:$2 sm:$0xff] }
 0x35c   :  { %1518 = vst.sshfl [vmem:[#allocation1 + $0x20] sm:$0xff pattern:$0x75643120] %v5802_v21  ;;  %v6052_v10 = vld [vmem:[#allocation1 + $0x31] ss:$2 sm:$0xff]  ;;  %v4472_v21 = vpack.i.bf16 %v1761_v61, %v1760_v43  ;;  %v1792_v61 = vld [vmem:[#allocation2 + $0x138] sm:$0xff] }
 0x35d   :  { %v6056_v28 = vld [vmem:[#allocation1 + $0x1] ss:$2 sm:$0xff]  ;;  %1528 = vst.sshfl [vmem:[#allocation1 + $0x30] sm:$0xff pattern:$0x75643120] %v7196_v0 }
 0x35e   :  { %1530 = vst.sshfl [vmem:[#allocation1] sm:$0xff pattern:$0x75643120] %v5828_v26  ;;  %4473 = vrot.lane.b32.xlu2 %v4472_v21, %s4555_s17  ;;  %v7199_v26 = vrot.slane %v5835_v55, 4  ;;  %v1793_v43 = vld [vmem:[#allocation2 + $0x140] sm:$0xff] }
 0x35f   :  { %v6061_v50 = vld [vmem:[#allocation1 + $0x11] ss:$2 sm:$0xff] }
 0x360   :  { %7197 = vst [vmem:[#allocation24_spill] sm:$0xff] %v6061_v50  ;;  %v6080_v50 = vpack.i.bf16 %v1793_v43, %v1792_v61 }
 0x361   :  { %1540 = vst.sshfl [vmem:[#allocation1 + $0x10] sm:$0xff pattern:$0x75643120] %v7198_v35  ;;  %v7200_v35 = vrot.slane %v5853_v11, 4 }
 0x362   :  { %7201 = vst [vmem:[#allocation27_spill] sm:$0xff] %v6080_v50 }
 0x363   :  { %v6065_v29 = vld [vmem:[#allocation1 + $0x21] ss:$2 sm:$0xff] }
 0x364   :  { %1526 = vst.sshfl [vmem:[#allocation1 + $0x20] sm:$0xff pattern:$0x75643120] %v5785_v17  ;;  %v6068_v33 = vld [vmem:[#allocation1 + $0x31] ss:$2 sm:$0xff] }
 0x365   :  { %v6071_v3 = vld [vmem:[#allocation1 + $0x1] ss:$2 sm:$0xff]  ;;  %1536 = vst.sshfl [vmem:[#allocation1 + $0x30] sm:$0xff pattern:$0x75643120] %v7199_v26 }
 0x366   :  { %1538 = vst.sshfl [vmem:[#allocation1] sm:$0xff pattern:$0x75643120] %v5810_v32  ;;  %4488 = vrot.lane.b32.xlu2 %v6080_v50, %s4554_s2  ;;  %v7202_v32 = vrot.slane %v5817_v59, 4 }
 0x368   :  { %v6076_v0 = vld [vmem:[#allocation1 + $0x11] ss:$2 sm:$0xff] }
 0x369   :  { %1548 = vst.sshfl [vmem:[#allocation1 + $0x10] sm:$0xff pattern:$0x75643120] %v7200_v35 }
 0x36b   :  { %v6082_v17 = vld [vmem:[#allocation1 + $0x21] ss:$2 sm:$0xff] }
 0x36c   :  { %1534 = vst.sshfl [vmem:[#allocation1 + $0x20] sm:$0xff pattern:$0x75643120] %v5835_v55  ;;  %v6085_v21 = vld [vmem:[#allocation1 + $0x31] ss:$2 sm:$0xff] }
 0x36d   :  { %v6089_v26 = vld [vmem:[#allocation1 + $0x1] ss:$2 sm:$0xff]  ;;  %1544 = vst.sshfl [vmem:[#allocation1 + $0x30] sm:$0xff pattern:$0x75643120] %v7202_v32  ;;  %v4171_v55 = vld [vmem:[%s7046_s3 + $0x38] sm:$0xff] }
 0x36e   :  { %1546 = vst.sshfl [vmem:[#allocation1] sm:$0xff pattern:$0x75643120] %v5853_v11  ;;  %2495 = vmatpush.bf16.msrb.mxu1 %v4171_v55  ;;  %v7203_v11 = vrot.slane %v5859_v51, 4  ;;  %v4168_v55 = vld [vmem:[%s7046_s3 + $0x20] sm:$0xff] }
 0x36f   :  { %1554 = vst [vmem:[#allocation1] ss:$4 sm:$0xff] %v5870_v46  ;;  %v4170_v46 = vld [vmem:[%s7046_s3 + $0x30] sm:$0xff] }
 0x370   :  { %1558 = vst [vmem:[#allocation1 + $0x2] ss:$4 sm:$0xff] %v5899_v2  ;;  %v6101_v61 = vld [vmem:[#allocation1 + $0x11] ss:$2 sm:$0xff] }
 0x372   :  { %2496 = vmatpush.bf16.msrb.mxu1 %v4170_v46 }
 0x373   :  { %v6099_v35 = vld [vmem:[#allocation1 + $0x21] ss:$2 sm:$0xff] }
 0x374   :  { %1542 = vst.sshfl [vmem:[#allocation1 + $0x20] sm:$0xff pattern:$0x75643120] %v5817_v59  ;;  %v6104_v43 = vld [vmem:[#allocation1 + $0x31] ss:$2 sm:$0xff]  ;;  %v4169_v59 = vld [vmem:[%s7046_s3 + $0x28] sm:$0xff] }
 0x375   :  { %v6106_v32 = vld [vmem:[#allocation1 + $0x1] ss:$2 sm:$0xff]  ;;  %1552 = vst.sshfl [vmem:[#allocation1 + $0x30] sm:$0xff pattern:$0x75643120] %v7203_v11 }
 0x376   :  { %1556 = vst [vmem:[#allocation1 + $0x1] ss:$4 sm:$0xff] %v5849_v36  ;;  %2497 = vmatpush.bf16.msrb.mxu1 %v4169_v59 }
 0x377   :  { %1560 = vst [vmem:[#allocation1 + $0x3] ss:$4 sm:$0xff] %v5885_v63  ;;  %v4274_v63 = vpop.permute.xlu2 %4273 }
 0x37a   :  { %2498 = vmatpush.bf16.msrb.mxu1 %v4168_v55  ;;  %v4276_v55 = vunpack.i.h.bf16 %v4274_v63 }
 0x37b   :  { %v6118_v2 = vld [vmem:[#allocation1 + $0x21] ss:$2 sm:$0xff] }
 0x37c   :  { %1550 = vst.sshfl [vmem:[#allocation1 + $0x20] sm:$0xff pattern:$0x75643120] %v5859_v51  ;;  %v4167_v51 = vld [vmem:[%s7046_s3 + $0x18] sm:$0xff] }
 0x37d   :  { %1562 = vst [vmem:[#allocation1 + $0x20] ss:$4 sm:$0xff] %v5888_v23  ;;  %v6133_v23 = vpop.permute.xlu1 %4263 }
 0x37e   :  { %1566 = vst [vmem:[#allocation1 + $0x22] ss:$4 sm:$0xff] %v5914_v24  ;;  %v1569_v36 = vld.sshfl [vmem:[#allocation1] sm:$0xff pattern:$0x73625140]  ;;  %2499 = vmatpush.bf16.msrb.mxu1 %v4167_v51  ;;  %v1674_v51 = vld [vmem:[#allocation2] sm:$0xff] }
 0x37f   :  { %1571 = vst [vmem:[#allocation1] ss:$4 sm:$0xff] %v5905_v9  ;;  %v6137_v24 = vld [vmem:[#allocation1 + $0x31] ss:$2 sm:$0xff]  ;;  %v4279_v46 = vpop.permute.xlu2 %4278 }
 0x380   :  { %1572 = vst [vmem:[#allocation1 + $0x1] ss:$4 sm:$0xff] %v5894_v8  ;;  %v4166_v8 = vld [vmem:[%s7046_s3 + $0x10] sm:$0xff] }
 0x381   :  { %1573 = vst [vmem:[#allocation1 + $0x2] ss:$4 sm:$0xff] %v5928_v39  ;;  %v4275_v39 = vunpack.i.l.bf16 %v4274_v63  ;;  %v4281_v63 = vunpack.i.h.bf16 %v4279_v46 }
 0x382   :  { %1574 = vst [vmem:[#allocation1 + $0x3] ss:$4 sm:$0xff] %v5917_v31  ;;  %2500 = vmatpush.bf16.msrb.mxu1 %v4166_v8  ;;  %v4165_v31 = vld [vmem:[%s7046_s3 + $0x8] sm:$0xff]  ;;  %v4280_v8 = vunpack.i.l.bf16 %v4279_v46 }
 0x383   :  { %7204 = vst [vmem:[#allocation5_spill] sm:$0xff] %v6133_v23  ;;  %v6135_v11 = vld [vmem:[#allocation1 + $0x21] ss:$2 sm:$0xff]  ;;  %v1675_v23 = vld [vmem:[#allocation2 + $0x8] sm:$0xff] }
 0x384   :  { %1658 = vst.msk [vmem:[#allocation2 + $0x1a] sm:$0xff] %vm46_vm6, %v1569_v36 }
 0x385   :  { %1564 = vst [vmem:[#allocation1 + $0x21] ss:$4 sm:$0xff] %v5874_v38  ;;  %v4269_v59 = vpop.permute.xlu1 %4268 }
 0x386   :  { %1568 = vst [vmem:[#allocation1 + $0x23] ss:$4 sm:$0xff] %v5902_v48  ;;  %v4271_v38 = vunpack.i.h.bf16 %v4269_v59  ;;  %v4270_v48 = vunpack.i.l.bf16 %v4269_v59  ;;  %2501 = vmatpush.bf16.msrb.mxu1 %v4165_v31 }
 0x388   :  { %v2202_v50 = vsel %vm46_vm6, %v1674_v51, %v4270_v48  ;;  %v1694_v51 = vld [vmem:[#allocation2 + $0x108] sm:$0xff] }
 0x389   :  { %v1579_v9 = vld.sshfl [vmem:[#allocation1] sm:$0xff pattern:$0x73625140]  ;;  %v2218_v31 = vsel %vm101_vm9, %v2202_v50, %v4275_v39  ;;  %v1692_v50 = vld [vmem:[#allocation2 + $0xf0] sm:$0xff] }
 0x38a   :  { %1581 = vst [vmem:[#allocation1] ss:$4 sm:$0xff] %v5933_v19  ;;  %v4164_v19 = vld [vmem:[%s7046_s3] sm:$0xff] }
 0x38b   :  { %1582 = vst [vmem:[#allocation1 + $0x1] ss:$4 sm:$0xff] %v5924_v7  ;;  %v2203_v7 = vsel %vm46_vm6, %v1675_v23, %v4271_v38  ;;  %2502 = vmatpush.bf16.msrb.mxu1 %v4164_v19 }
 0x38c   :  { %1583 = vst [vmem:[#allocation1 + $0x2] ss:$4 sm:$0xff] %v5957_v27  ;;  %v2235_v27 = vsel %vm2234_vm10, %v2218_v31, %v4280_v8 }
 0x38d   :  { %v1570_v36 = vld.sshfl [vmem:[#allocation1 + $0x20] sm:$0xff pattern:$0x73625140]  ;;  %1584 = vst [vmem:[#allocation1 + $0x3] ss:$4 sm:$0xff] %v5945_v30 }
 0x38e   :  { %1575 = vst [vmem:[#allocation1 + $0x20] ss:$4 sm:$0xff] %v5919_v45  ;;  %v2219_v45 = vsel %vm101_vm9, %v2203_v7, %v4276_v55  ;;  %v1767_v55 = vld [vmem:[#allocation2 + $0x24a] sm:$0xff] }
 0x38f   :  { %1576 = vst [vmem:[#allocation1 + $0x21] ss:$4 sm:$0xff] %v5910_v44  ;;  %v2236_v59 = vsel %vm2234_vm10, %v2219_v45, %v4281_v63  ;;  %v7205_v44 = vmov 0.0   ;;  %v1695_v63 = vld [vmem:[#allocation2 + $0x110] sm:$0xff] }
 0x390   :  { %1577 = vst [vmem:[#allocation1 + $0x22] ss:$4 sm:$0xff] %v5942_v16  ;;  %v2299_v46 = vpack.c.bf16 %v2236_v59, %v2235_v27  ;;  %v6305_v45 = vpack.i.bf16 %v1695_v63, %v1694_v51  ;;  %v4181_v51 = vld [vmem:[%s7046_s3 + $0x88] sm:$0xff] }
 0x391   :  { %1578 = vst [vmem:[#allocation1 + $0x23] ss:$4 sm:$0xff] %v5931_v42 }
 0x392   :  { %1659 = vst.msk [vmem:[#allocation2 + $0x22] sm:$0xff] %vm46_vm6, %v1570_v36  ;;  %2503 = vmatmul.bf16.vlgmr.msrb.gmra.mxu1 %v2299_v46  ;;  %v1768_v46 = vld [vmem:[#allocation2 + $0x25a] sm:$0xff] }
 0x393   :  { %1660 = vst.msk [vmem:[#allocation2 + $0x32] sm:$0xff] %vm46_vm6, %v1579_v9 }
 0x394   :  { %102 = vst.msk [vmem:[#allocation3] sm:$0xff] %vm101_vm9, %v7205_v44  ;;  %v1589_v42 = vld.sshfl [vmem:[#allocation1] sm:$0xff pattern:$0x73625140] }
 0x395   :  { %111 = vst.msk [vmem:[#allocation3 + $0x50] sm:$0xff] %vm101_vm9, %v7205_v44 }
 0x396   :  { %1591 = vst [vmem:[#allocation1] ss:$4 sm:$0xff] %v5963_v4 }
 0x397   :  { %1592 = vst [vmem:[#allocation1 + $0x1] ss:$4 sm:$0xff] %v5953_v60 }
 0x398   :  { %v1580_v16 = vld.sshfl [vmem:[#allocation1 + $0x20] sm:$0xff pattern:$0x73625140]  ;;  %1593 = vst [vmem:[#allocation1 + $0x2] ss:$4 sm:$0xff] %v5987_v52 }
 0x399   :  { %1585 = vst [vmem:[#allocation1 + $0x20] ss:$4 sm:$0xff] %v5948_v13  ;;  %v6199_v4 = vld [vmem:[#allocation2 + $0x22] sm:$0xff] }
 0x39a   :  { %1586 = vst [vmem:[#allocation1 + $0x21] ss:$4 sm:$0xff] %v5938_v15 }
 0x39b   :  { %1587 = vst [vmem:[#allocation1 + $0x22] ss:$4 sm:$0xff] %v5972_v40 }
 0x39c   :  { %1588 = vst [vmem:[#allocation1 + $0x23] ss:$4 sm:$0xff] %v5960_v41  ;;  %v6195_v41 = vld [vmem:[#allocation2 + $0x1a] sm:$0xff] }
 0x39d   :  { %1594 = vst [vmem:[#allocation1 + $0x3] ss:$4 sm:$0xff] %v5975_v56 }
 0x39e   :  { %1661 = vst.msk [vmem:[#allocation2 + $0x3a] sm:$0xff] %vm46_vm6, %v1580_v16 }
 0x39f   :  { %1662 = vst.msk [vmem:[#allocation2 + $0x4a] sm:$0xff] %vm46_vm6, %v1589_v42  ;;  %v1769_v42 = vld [vmem:[#allocation2 + $0x262] sm:$0xff] }
 0x3a0   :  { %122 = vst.msk [vmem:[#allocation3 + $0xa0] sm:$0x3] %vm103_vm7, %v7205_v44 }
 0x3a1   :  { %123 = vst.msk [vmem:[#allocation3 + $0xb0] sm:$0x3] %vm103_vm7, %v7205_v44 }
 0x3a2   :  { %104 = vst.msk [vmem:[#allocation3 + $0x8] sm:$0x3] %vm103_vm7, %v7205_v44 }
 0x3a3   :  { %v1590_v30 = vld.sshfl [vmem:[#allocation1 + $0x20] sm:$0xff pattern:$0x73625140]  ;;  %105 = vst.msk [vmem:[#allocation3] sm:$0x3] %vm103_vm7, %v7205_v44 }
 0x3a4   :  { %1595 = vst [vmem:[#allocation1 + $0x20] ss:$4 sm:$0xff] %v5978_v47  ;;  %v1599_v15 = vld.sshfl [vmem:[#allocation1] sm:$0xff pattern:$0x73625140] }
 0x3a5   :  { %1596 = vst [vmem:[#allocation1 + $0x21] ss:$4 sm:$0xff] %v5968_v62  ;;  %v2301_v62 = vpack.c.bf16 %v6199_v4, %v6195_v41  ;;  %v6212_v56 = vld [vmem:[#allocation2 + $0x3a] sm:$0xff] }
 0x3a6   :  { %1597 = vst [vmem:[#allocation1 + $0x22] ss:$4 sm:$0xff] %v6002_v12  ;;  %v6368_v63 = vld [vmem:[#allocation2 + $0x48] sm:$0xff] }
 0x3a7   :  { %1598 = vst [vmem:[#allocation1 + $0x23] ss:$4 sm:$0xff] %v5990_v1  ;;  %v6225_v1 = vld [vmem:[#allocation2 + $0x4a] sm:$0xff] }
 0x3a8   :  { %1601 = vst [vmem:[#allocation1] ss:$4 sm:$0xff] %v5993_v25 }
 0x3a9   :  { %1602 = vst [vmem:[#allocation1 + $0x1] ss:$4 sm:$0xff] %v5983_v49 }
 0x3aa   :  { %1603 = vst [vmem:[#allocation1 + $0x2] ss:$4 sm:$0xff] %v6017_v18 }
 0x3ab   :  { %1604 = vst [vmem:[#allocation1 + $0x3] ss:$4 sm:$0xff] %v6005_v57 }
 0x3ac   :  { %1663 = vst.msk [vmem:[#allocation2 + $0x52] sm:$0xff] %vm46_vm6, %v1590_v30  ;;  %v4342_v30 = vpack.i.bf16 %v1769_v42, %v1768_v46  ;;  %v6377_v46 = vld [vmem:[#allocation2 + $0x30] sm:$0xff] }
 0x3ad   :  { %1664 = vst.msk [vmem:[#allocation2 + $0x62] sm:$0xff] %vm46_vm6, %v1599_v15  ;;  %v1756_v42 = vld [vmem:[#allocation2 + $0x1ca] sm:$0xff] }
 0x3ae   :  { %v1600_v13 = vld.sshfl [vmem:[#allocation1 + $0x20] sm:$0xff pattern:$0x73625140]  ;;  %106 = vst.msk [vmem:[#allocation3 + $0x10] sm:$0x3] %vm103_vm7, %v7205_v44 }
 0x3af   :  { %1605 = vst [vmem:[#allocation1 + $0x20] ss:$4 sm:$0xff] %v6008_v37  ;;  %v7207_v37 = vld [vmem:[#allocation24_spill] sm:$0xff] }
 0x3b0   :  { %1606 = vst [vmem:[#allocation1 + $0x21] ss:$4 sm:$0xff] %v5998_v20 }
 0x3b1   :  { %1607 = vst [vmem:[#allocation1 + $0x22] ss:$4 sm:$0xff] %v6032_v6 }
 0x3b2   :  { %1608 = vst [vmem:[#allocation1 + $0x23] ss:$4 sm:$0xff] %v6020_v58  ;;  %v1609_v60 = vld.sshfl [vmem:[#allocation1] sm:$0xff pattern:$0x73625140]  ;;  %v1764_v58 = vld [vmem:[#allocation2 + $0x22a] sm:$0xff] }
 0x3b3   :  { %1611 = vst [vmem:[#allocation1] ss:$4 sm:$0xff] %v6023_v22  ;;  %v6210_v22 = vld [vmem:[#allocation2 + $0x32] sm:$0xff] }
 0x3b4   :  { %1613 = vst [vmem:[#allocation1 + $0x2] ss:$4 sm:$0xff] %v6049_v54  ;;  %v2304_v49 = vpack.c.bf16 %v6212_v56, %v6210_v22  ;;  %v6227_v25 = vld [vmem:[#allocation2 + $0x52] sm:$0xff]  ;;  %v6247_v6 = vld [vmem:[#allocation2 + $0x62] sm:$0xff]  ;;  %v4332_v7 = vpack.i.bf16 %v6212_v56, %v6210_v22 }
 0x3b5   :  { %1612 = vst [vmem:[#allocation1 + $0x1] ss:$4 sm:$0xff] %v6013_v34  ;;  %v2307_v12 = vpack.c.bf16 %v6227_v25, %v6225_v1  ;;  %v4362_v15 = vpack.i.bf16 %v6227_v25, %v6225_v1 }
 0x3b6   :  { %1614 = vst [vmem:[#allocation1 + $0x3] ss:$4 sm:$0xff] %v6035_v53 }
 0x3b7   :  { %1665 = vst.msk [vmem:[#allocation2 + $0x6a] sm:$0xff] %vm46_vm6, %v1600_v13  ;;  %v7208_v13 = vld [vmem:[#allocation28_spill] sm:$0xff] }
 0x3b8   :  { %1666 = vst.msk [vmem:[#allocation2 + $0x7a] sm:$0xff] %vm46_vm6, %v1609_v60  ;;  %v4178_v60 = vld [vmem:[%s7046_s3 + $0x70] sm:$0xff] }
 0x3b9   :  { %v1610_v40 = vld.sshfl [vmem:[#allocation1 + $0x20] sm:$0xff pattern:$0x73625140]  ;;  %107 = vst.msk [vmem:[#allocation3 + $0x20] sm:$0x3] %vm103_vm7, %v7205_v44 }
 0x3ba   :  { %1615 = vst [vmem:[#allocation1 + $0x20] ss:$4 sm:$0xff] %v6038_v5  ;;  %v7206_v5 = vld [vmem:[#allocation23_spill] sm:$0xff] }
 0x3bb   :  { %1617 = vst [vmem:[#allocation1 + $0x22] ss:$4 sm:$0xff] %v6065_v29 }
 0x3bc   :  { %1616 = vst [vmem:[#allocation1 + $0x21] ss:$4 sm:$0xff] %v6028_v14 }
 0x3bd   :  { %1618 = vst [vmem:[#allocation1 + $0x23] ss:$4 sm:$0xff] %v6052_v10  ;;  %v1619_v47 = vld.sshfl [vmem:[#allocation1] sm:$0xff pattern:$0x73625140] }
 0x3be   :  { %1667 = vst.msk [vmem:[#allocation2 + $0x82] sm:$0xff] %vm46_vm6, %v1610_v40  ;;  %v6249_v53 = vld [vmem:[#allocation2 + $0x6a] sm:$0xff] }
 0x3bf   :  { %1668 = vst.msk [vmem:[#allocation2 + $0x92] sm:$0xff] %vm46_vm6, %v1619_v47  ;;  %v6222_v29 = vld [vmem:[#allocation2 + $0x78] sm:$0xff]  ;;  %v2310_v54 = vpack.c.bf16 %v6249_v53, %v6247_v6  ;;  %v4377_v40 = vpack.i.bf16 %v6249_v53, %v6247_v6  ;;  %v7209_v47 = vld [vmem:[#allocation27_spill] sm:$0xff] }
 0x3c0   :  { %1621 = vst [vmem:[#allocation1] ss:$4 sm:$0xff] %v6056_v28 }
 0x3c1   :  { %1622 = vst [vmem:[#allocation1 + $0x1] ss:$4 sm:$0xff] %v7206_v5  ;;  %v1700_v5 = vld [vmem:[#allocation2 + $0x150] sm:$0xff] }
 0x3c2   :  { %1623 = vst [vmem:[#allocation1 + $0x2] ss:$4 sm:$0xff] %v6082_v17 }
 0x3c3   :  { %1624 = vst [vmem:[#allocation1 + $0x3] ss:$4 sm:$0xff] %v6068_v33 }
 0x3c4   :  { %v1620_v52 = vld.sshfl [vmem:[#allocation1 + $0x20] sm:$0xff pattern:$0x73625140]  ;;  %108 = vst.msk [vmem:[#allocation3 + $0x30] sm:$0x3] %vm103_vm7, %v7205_v44 }
 0x3c5   :  { %v6229_v20 = vld [vmem:[#allocation2 + $0x80] sm:$0xff]  ;;  %1669 = vst.msk [vmem:[#allocation2 + $0x9a] sm:$0xff] %vm46_vm6, %v1620_v52 }
 0x3c6   :  { %v4257_v57 = vpack.i.bf16 %v6229_v20, %v6222_v29  ;;  %1625 = vst [vmem:[#allocation1 + $0x20] ss:$4 sm:$0xff] %v6071_v3  ;;  %v6241_v34 = vld [vmem:[#allocation2 + $0x90] sm:$0xff]  ;;  %v6266_v17 = vld [vmem:[#allocation2 + $0x82] sm:$0xff] }
 0x3c7   :  { %1626 = vst [vmem:[#allocation1 + $0x21] ss:$4 sm:$0xff] %v7207_v37  ;;  %v1765_v3 = vld [vmem:[#allocation2 + $0x232] sm:$0xff] }
 0x3c8   :  { %4258 = vrot.lane.b32.xlu0 %v4257_v57, %s4553_s0  ;;  %1627 = vst [vmem:[#allocation1 + $0x22] ss:$4 sm:$0xff] %v6099_v35  ;;  %v4282_v10 = vpack.i.bf16 %v1765_v3, %v1764_v58  ;;  %v6286_v9 = vld [vmem:[#allocation2 + $0x92] sm:$0xff] }
 0x3c9   :  { %1628 = vst [vmem:[#allocation1 + $0x23] ss:$4 sm:$0xff] %v6085_v21  ;;  %v1693_v21 = vld [vmem:[#allocation2 + $0xf8] sm:$0xff] }
 0x3ca   :  { %v1629_v18 = vld.sshfl [vmem:[#allocation1] sm:$0xff pattern:$0x73625140]  ;;  %109 = vst.msk [vmem:[#allocation3 + $0x40] sm:$0x3] %vm103_vm7, %v7205_v44 }
 0x3cb   :  { %1670 = vst.msk [vmem:[#allocation2 + $0xaa] sm:$0xff] %vm46_vm6, %v1629_v18  ;;  %v1701_v57 = vld [vmem:[#allocation2 + $0x158] sm:$0xff]  ;;  %v4177_v18 = vld [vmem:[%s7046_s3 + $0x68] sm:$0xff] }
 0x3cc   :  { %v6244_v14 = vld [vmem:[#allocation2 + $0x98] sm:$0xff]  ;;  %1631 = vst [vmem:[#allocation1] ss:$4 sm:$0xff] %v6089_v26  ;;  %v4302_v26 = vpack.i.bf16 %v6199_v4, %v6195_v41  ;;  %v4387_v37 = vpack.i.bf16 %v1701_v57, %v1700_v5  ;;  %v6387_v5 = vld [vmem:[#allocation2 + $0x68] sm:$0xff] }
 0x3cd   :  { %v4297_v33 = vpack.i.bf16 %v6244_v14, %v6241_v34  ;;  %1632 = vst [vmem:[#allocation1 + $0x1] ss:$4 sm:$0xff] %v6076_v0  ;;  %v6264_v0 = vld [vmem:[#allocation2 + $0x7a] sm:$0xff] }
 0x3ce   :  { %1633 = vst [vmem:[#allocation1 + $0x2] ss:$4 sm:$0xff] %v6118_v2  ;;  %v2313_v35 = vpack.c.bf16 %v6266_v17, %v6264_v0  ;;  %v6288_v39 = vld [vmem:[#allocation2 + $0x9a] sm:$0xff]  ;;  %v4392_v52 = vpack.i.bf16 %v6266_v17, %v6264_v0 }
 0x3cf   :  { %4298 = vrot.lane.b32.xlu1 %v4297_v33, %s4553_s0  ;;  %1634 = vst [vmem:[#allocation1 + $0x3] ss:$4 sm:$0xff] %v6104_v43  ;;  %v6273_v43 = vpack.i.bf16 %v1693_v21, %v1692_v50  ;;  %v2316_v48 = vpack.c.bf16 %v6288_v39, %v6286_v9  ;;  %v4176_v58 = vld [vmem:[%s7046_s3 + $0x60] sm:$0xff]  ;;  %v4407_v3 = vpack.i.bf16 %v6288_v39, %v6286_v9  ;;  %v7210_v33 = vld [vmem:[#allocation15_spill] sm:$0xff] }
 0x3d0   :  { %4283 = vrot.lane.b32.xlu0 %v4282_v10, %s4555_s17  ;;  %v1630_v28 = vld.sshfl [vmem:[#allocation1 + $0x20] sm:$0xff pattern:$0x73625140]  ;;  %v4175_v10 = vld [vmem:[%s7046_s3 + $0x58] sm:$0xff]  ;;  %124 = vst.msk [vmem:[#allocation3 + $0xc0] sm:$0x3] %vm103_vm7, %v7205_v44 }
 0x3d1   :  { %1671 = vst.msk [vmem:[#allocation2 + $0xb2] sm:$0xff] %vm46_vm6, %v1630_v28  ;;  %v4174_v28 = vld [vmem:[%s7046_s3 + $0x50] sm:$0xff]  ;;  %v7211_v21 = vld [vmem:[#allocation16_spill] sm:$0xff] }
 0x3d2   :  { %1635 = vst [vmem:[#allocation1 + $0x20] ss:$4 sm:$0xff] %v6106_v32  ;;  %v6282_v2 = vld [vmem:[#allocation2 + $0xa8] sm:$0xff] }
 0x3d3   :  { %1636 = vst [vmem:[#allocation1 + $0x21] ss:$4 sm:$0xff] %v6101_v61  ;;  %v4179_v61 = vld [vmem:[%s7046_s3 + $0x78] sm:$0xff] }
 0x3d4   :  { %1637 = vst [vmem:[#allocation1 + $0x22] ss:$4 sm:$0xff] %v6135_v11  ;;  %4222 = vmatpush.bf16.msrb.mxu2 %v4179_v61  ;;  %4223 = vmatpush.bf16.msra.mxu3 %v4179_v61  ;;  %v1766_v11 = vld [vmem:[#allocation2 + $0x242] sm:$0xff]  ;;  %v6297_v8 = vld [vmem:[#allocation2 + $0xaa] sm:$0xff] }
 0x3d5   :  { %1638 = vst [vmem:[#allocation1 + $0x23] ss:$4 sm:$0xff] %v6137_v24  ;;  %2544 = vmatpush.bf16.msra.mxu1 %v4179_v61  ;;  %v4312_v36 = vpack.i.bf16 %v1767_v55, %v1766_v11  ;;  %v6356_v61 = vld [vmem:[#allocation2 + $0x20] sm:$0xff]  ;;  %v1754_v11 = vld [vmem:[#allocation2 + $0x1b2] sm:$0xff] }
 0x3d6   :  { %v1639_v32 = vld.sshfl [vmem:[#allocation1] sm:$0xff pattern:$0x73625140]  ;;  %125 = vst.msk [vmem:[#allocation3 + $0xd0] sm:$0x3] %vm103_vm7, %v7205_v44 }
 0x3d7   :  { %4303 = vrot.lane.b32.xlu1 %v4302_v26, %s4553_s0  ;;  %1672 = vst.msk [vmem:[#allocation2 + $0xc2] sm:$0xff] %vm46_vm6, %v1639_v32  ;;  %v4173_v26 = vld [vmem:[%s7046_s3 + $0x48] sm:$0xff]  ;;  %v6354_v32 = vld [vmem:[#allocation2 + $0x18] sm:$0xff] }
 0x3d8   :  { %4293 = vrot.lane.b32.xlu0 %v6273_v43, %s4555_s17  ;;  %v6284_v23 = vld [vmem:[#allocation2 + $0xb0] sm:$0xff]  ;;  %4224 = vmatpush.bf16.msrb.mxu2 %v4178_v60  ;;  %v4437_v55 = vpack.i.bf16 %v6356_v61, %v6354_v32  ;;  %v4194_v44 = vld [vmem:[%s7050_s7 + $0x60] sm:$0xff] }
 0x3d9   :  { %v4327_v38 = vpack.i.bf16 %v6284_v23, %v6282_v2  ;;  %v6299_v19 = vld [vmem:[#allocation2 + $0xb2] sm:$0xff]  ;;  %4225 = vmatpush.bf16.msra.mxu3 %v4178_v60  ;;  %2545 = vmatpush.bf16.msra.mxu1 %v4178_v60 }
 0x3da   :  { %v2319_v31 = vpack.c.bf16 %v6299_v19, %v6297_v8  ;;  %v4422_v50 = vpack.i.bf16 %v6299_v19, %v6297_v8 }
 0x3dc   :  { %v1640_v24 = vld.sshfl [vmem:[#allocation1 + $0x20] sm:$0xff pattern:$0x73625140]  ;;  %4226 = vmatpush.bf16.msrb.mxu2 %v4177_v18 }
 0x3dd   :  { %1673 = vst.msk [vmem:[#allocation2 + $0xca] sm:$0xff] %vm46_vm6, %v1640_v24  ;;  %4227 = vmatpush.bf16.msra.mxu3 %v4177_v18  ;;  %2546 = vmatpush.bf16.msra.mxu1 %v4177_v18  ;;  %v4172_v24 = vld [vmem:[%s7046_s3 + $0x40] sm:$0xff] }
 0x3de   :  { %v1784_v27 = vld [vmem:[#allocation2 + $0xc0] sm:$0xff] }
 0x3df   :  { %4328 = vrot.lane.b32.xlu1 %v4327_v38, %s4553_s0  ;;  %v1755_v38 = vld [vmem:[#allocation2 + $0x1ba] sm:$0xff]  ;;  %v1816_v9 = vld [vmem:[#allocation2 + $0xc2] sm:$0xff] }
 0x3e0   :  { %4313 = vrot.lane.b32.xlu0 %v4312_v36, %s4555_s17  ;;  %4228 = vmatpush.bf16.msrb.mxu2 %v4176_v58  ;;  %v4432_v36 = vpack.i.bf16 %v1755_v38, %v1754_v11 }
 0x3e1   :  { %4229 = vmatpush.bf16.msra.mxu3 %v4176_v58  ;;  %2547 = vmatpush.bf16.msra.mxu1 %v4176_v58  ;;  %v1746_v58 = vld [vmem:[#allocation2 + $0x2e8] sm:$0xff] }
 0x3e4   :  { %v1785_v59 = vld [vmem:[#allocation2 + $0xc8] sm:$0xff]  ;;  %4230 = vmatpush.bf16.msrb.mxu2 %v4175_v10 }
 0x3e5   :  { %v4347_v16 = vpack.i.bf16 %v1785_v59, %v1784_v27  ;;  %4231 = vmatpush.bf16.msra.mxu3 %v4175_v10  ;;  %2548 = vmatpush.bf16.msra.mxu1 %v4175_v10  ;;  %v4289_v59 = vpop.permute.xlu2 %4288  ;;  %v1817_v39 = vld [vmem:[#allocation2 + $0xca] sm:$0xff] }
 0x3e7   :  { %4333 = vrot.lane.b32.xlu1 %v4332_v7, %s4553_s0  ;;  %v6370_v7 = vld [vmem:[#allocation2 + $0x50] sm:$0xff] }
 0x3e8   :  { %4323 = vrot.lane.b32.xlu0 %v6305_v45, %s4555_s17  ;;  %4232 = vmatpush.bf16.msrb.mxu2 %v4174_v28  ;;  %v4452_v27 = vpack.i.bf16 %v6370_v7, %v6368_v63 }
 0x3e9   :  { %4233 = vmatpush.bf16.msra.mxu3 %v4174_v28  ;;  %2549 = vmatpush.bf16.msra.mxu1 %v4174_v28 }
 0x3ec   :  { %4234 = vmatpush.bf16.msrb.mxu2 %v4173_v26 }
 0x3ed   :  { %4235 = vmatpush.bf16.msra.mxu3 %v4173_v26  ;;  %2550 = vmatpush.bf16.msra.mxu1 %v4173_v26  ;;  %v4309_v60 = vpop.permute.xlu2 %4308 }
 0x3ef   :  { %4348 = vrot.lane.b32.xlu1 %v4347_v16, %s4553_s0  ;;  %v6379_v16 = vld [vmem:[#allocation2 + $0x38] sm:$0xff] }
 0x3f0   :  { %4343 = vrot.lane.b32.xlu0 %v4342_v30, %s4555_s17  ;;  %4236 = vmatpush.bf16.msrb.mxu2 %v4172_v24  ;;  %v4467_v30 = vpack.i.bf16 %v6379_v16, %v6377_v46 }
 0x3f1   :  { %4237 = vmatpush.bf16.msra.mxu3 %v4172_v24  ;;  %2551 = vmatpush.bf16.msra.mxu1 %v4172_v24 }
 0x3f5   :  { %2599 = vmatpush.bf16.msrb.mxu3 %v4181_v51 }
 0x3f7   :  { %4363 = vrot.lane.b32.xlu1 %v4362_v15, %s4553_s0  ;;  %v1757_v15 = vld [vmem:[#allocation2 + $0x1d2] sm:$0xff] }
 0x3f8   :  { %4358 = vrot.lane.b32.xlu0 %v7208_v13, %s4555_s17  ;;  %v4462_v13 = vpack.i.bf16 %v1757_v15, %v1756_v42 }
 0x3ff   :  { %4378 = vrot.lane.b32.xlu1 %v4377_v40, %s4553_s0  ;;  %v4254_v40 = vpop.permute.xlu0 %4253 }
 0x400   :  { %4373 = vrot.lane.b32.xlu0 %v7209_v47, %s4555_s17  ;;  %v6385_v47 = vld [vmem:[#allocation2 + $0x60] sm:$0xff]  ;;  %v4255_v57 = vunpack.i.l.bf16 %v4254_v40 }
 0x407   :  { %4393 = vrot.lane.b32.xlu1 %v4392_v52, %s4553_s0  ;;  %v4256_v52 = vunpack.i.h.bf16 %v4254_v40  ;;  %v1748_v40 = vld [vmem:[#allocation2 + $0x300] sm:$0xff] }
 0x408   :  { %4388 = vrot.lane.b32.xlu0 %v4387_v37, %s4555_s17  ;;  %v6394_v37 = vpop.permute.xlu2 %4318 }
 0x40f   :  { %4408 = vrot.lane.b32.xlu1 %v4407_v3, %s4553_s0  ;;  %v1747_v3 = vld [vmem:[#allocation2 + $0x2f0] sm:$0xff] }
 0x410   :  { %4403 = vrot.lane.b32.xlu0 %v7210_v33, %s4555_s17  ;;  %v2260_v28 = vsel %vm46_vm6, %v1747_v3, %v4256_v52 }
 0x417   :  { %4423 = vrot.lane.b32.xlu1 %v4422_v50, %s4553_s0  ;;  %v2259_v50 = vsel %vm46_vm6, %v1746_v58, %v4255_v57 }
 0x418   :  { %4418 = vrot.lane.b32.xlu0 %v7211_v21, %s4555_s17  ;;  %v7212_v21 = vld [vmem:[#allocation5_spill] sm:$0xff] }
 0x419   :  { %v4266_v26 = vunpack.i.h.bf16 %v7212_v21  ;;  %v4265_v11 = vunpack.i.l.bf16 %v7212_v21 }
 0x41f   :  { %4438 = vrot.lane.b32.xlu1 %v4437_v55, %s4553_s0 }
 0x420   :  { %4433 = vrot.lane.b32.xlu0 %v4432_v36, %s4555_s17 }
 0x427   :  { %4453 = vrot.lane.b32.xlu1 %v4452_v27, %s4553_s0  ;;  %v4180_v27 = vld [vmem:[%s7046_s3 + $0x80] sm:$0xff] }
 0x428   :  { %4448 = vrot.lane.b32.xlu0 %v6273_v43, %s4554_s2  ;;  %v4482_v43 = vpack.i.bf16 %v6387_v5, %v6385_v47  ;;  %2600 = vmatpush.bf16.msrb.mxu3 %v4180_v27 }
 0x42f   :  { %4468 = vrot.lane.b32.xlu1 %v4467_v30, %s4553_s0 }
 0x430   :  { %4463 = vrot.lane.b32.xlu0 %v4462_v13, %s4555_s17  ;;  %v6407_v13 = vpop.permute.xlu2 %4338 }
 0x437   :  { %4483 = vrot.lane.b32.xlu1 %v4482_v43, %s4553_s0  ;;  %v1749_v43 = vld [vmem:[#allocation2 + $0x308] sm:$0xff] }
 0x438   :  { %4478 = vrot.lane.b32.xlu0 %v6305_v45, %s4554_s2 }
 0x43a   :  { %v4259_v18 = vpop.permute.xlu0 %4258 }
 0x43b   :  { %v4261_v33 = vunpack.i.h.bf16 %v4259_v18  ;;  %v4260_v10 = vunpack.i.l.bf16 %v4259_v18 }
 0x43d   :  { %v2275_v24 = vsel %vm101_vm9, %v2259_v50, %v4260_v10  ;;  %v2276_v55 = vsel %vm101_vm9, %v2260_v28, %v4261_v33  ;;  %v4291_v28 = vunpack.i.h.bf16 %v4289_v59  ;;  %v4290_v50 = vunpack.i.l.bf16 %v4289_v59 }
 0x43e   :  { %v2291_v45 = vsel %vm2234_vm10, %v2275_v24, %v4265_v11  ;;  %v2292_v38 = vsel %vm2234_vm10, %v2276_v55, %v4266_v26 }
 0x43f   :  { %v2312_v36 = vpack.c.bf16 %v2292_v38, %v2291_v45 }
 0x441   :  { %2572 = vmatmul.bf16.vlgmr.msra.gmra.mxu3 %v2312_v36  ;;  %v4299_v51 = vpop.permute.xlu1 %4298  ;;  %v4311_v36 = vunpack.i.h.bf16 %v4309_v60 }
 0x442   :  { %v4284_v42 = vpop.permute.xlu0 %4283  ;;  %v4301_v52 = vunpack.i.h.bf16 %v4299_v51  ;;  %v4300_v57 = vunpack.i.l.bf16 %v4299_v51  ;;  %v4310_v51 = vunpack.i.l.bf16 %v4309_v60 }
 0x443   :  { %v4286_v30 = vunpack.i.h.bf16 %v4284_v42  ;;  %v4285_v15 = vunpack.i.l.bf16 %v4284_v42 }
 0x445   :  { %v2262_v18 = vsel %vm46_vm6, %v1749_v43, %v4286_v30  ;;  %v2261_v58 = vsel %vm46_vm6, %v1748_v40, %v4285_v15  ;;  %v6419_v30 = vpop.permute.xlu2 %4353 }
 0x446   :  { %v2277_v33 = vsel %vm101_vm9, %v2261_v58, %v4300_v57  ;;  %v2278_v10 = vsel %vm101_vm9, %v2262_v18, %v4301_v52 }
 0x447   :  { %v2293_v45 = vsel %vm2234_vm10, %v2277_v33, %v4290_v50  ;;  %v2294_v38 = vsel %vm2234_vm10, %v2278_v10, %v4291_v28 }
 0x448   :  { %v2315_v40 = vpack.c.bf16 %v2294_v38, %v2293_v45  ;;  %v4320_v45 = vunpack.i.l.bf16 %v6394_v37 }
 0x449   :  { %v4304_v3 = vpop.permute.xlu1 %4303 }
 0x44a   :  { %v4294_v21 = vpop.permute.xlu0 %4293  ;;  %v4306_v26 = vunpack.i.h.bf16 %v4304_v3  ;;  %v4305_v11 = vunpack.i.l.bf16 %v4304_v3  ;;  %v1750_v3 = vld [vmem:[#allocation2 + $0x318] sm:$0xff] }
 0x44b   :  { %v4296_v24 = vunpack.i.h.bf16 %v4294_v21  ;;  %v4295_v55 = vunpack.i.l.bf16 %v4294_v21 }
 0x44d   :  { %v2205_v27 = vsel %vm46_vm6, %v6356_v61, %v4296_v24  ;;  %v2204_v42 = vsel %vm46_vm6, %v6354_v32, %v4295_v55  ;;  %v1751_v32 = vld [vmem:[#allocation2 + $0x320] sm:$0xff]  ;;  %v4369_v21 = vpop.permute.xlu2 %4368  ;;  %v4321_v55 = vunpack.i.h.bf16 %v6394_v37 }
 0x44e   :  { %v2220_v59 = vsel %vm101_vm9, %v2204_v42, %v4305_v11  ;;  %v2221_v15 = vsel %vm101_vm9, %v2205_v27, %v4306_v26 }
 0x44f   :  { %v2237_v43 = vsel %vm2234_vm10, %v2220_v59, %v4310_v51  ;;  %v2238_v52 = vsel %vm2234_vm10, %v2221_v15, %v4311_v36 }
 0x450   :  { %v2302_v57 = vpack.c.bf16 %v2238_v52, %v2237_v43  ;;  %v4340_v43 = vunpack.i.l.bf16 %v6407_v13 }
 0x451   :  { %2577 = vmatmul.bf16.gmra.mxu3 %v2315_v40  ;;  %v4329_v60 = vpop.permute.xlu1 %4328  ;;  %v4341_v40 = vunpack.i.h.bf16 %v6407_v13 }
 0x452   :  { %v4314_v18 = vpop.permute.xlu0 %4313  ;;  %2508 = vmatmul.bf16.gmra.mxu1 %v2302_v57  ;;  %v4331_v33 = vunpack.i.h.bf16 %v4329_v60  ;;  %v4330_v10 = vunpack.i.l.bf16 %v4329_v60 }
 0x453   :  { %v4316_v61 = vunpack.i.h.bf16 %v4314_v18  ;;  %v4315_v58 = vunpack.i.l.bf16 %v4314_v18 }
 0x455   :  { %v2264_v28 = vsel %vm46_vm6, %v1751_v32, %v4316_v61  ;;  %v2263_v50 = vsel %vm46_vm6, %v1750_v3, %v4315_v58 }
 0x456   :  { %v2279_v11 = vsel %vm101_vm9, %v2263_v50, %v4330_v10  ;;  %v2280_v24 = vsel %vm101_vm9, %v2264_v28, %v4331_v33  ;;  %v4384_v33 = vpop.permute.xlu2 %4383 }
 0x457   :  { %v2295_v59 = vsel %vm2234_vm10, %v2279_v11, %v4320_v45  ;;  %v2296_v15 = vsel %vm2234_vm10, %v2280_v24, %v4321_v55 }
 0x458   :  { %v2318_v18 = vpack.c.bf16 %v2296_v15, %v2295_v59 }
 0x459   :  { %v4334_v26 = vpop.permute.xlu1 %4333 }
 0x45a   :  { %v4324_v38 = vpop.permute.xlu0 %4323  ;;  %v4336_v36 = vunpack.i.h.bf16 %v4334_v26  ;;  %v4335_v51 = vunpack.i.l.bf16 %v4334_v26  ;;  %v1752_v26 = vld [vmem:[#allocation2 + $0x330] sm:$0xff] }
 0x45b   :  { %v4326_v27 = vunpack.i.h.bf16 %v4324_v38  ;;  %v4325_v42 = vunpack.i.l.bf16 %v4324_v38 }
 0x45d   :  { %v2207_v52 = vsel %vm46_vm6, %v6379_v16, %v4326_v27  ;;  %v2206_v57 = vsel %vm46_vm6, %v6377_v46, %v4325_v42  ;;  %v1753_v46 = vld [vmem:[#allocation2 + $0x338] sm:$0xff] }
 0x45e   :  { %v2222_v37 = vsel %vm101_vm9, %v2206_v57, %v4335_v51  ;;  %v2223_v60 = vsel %vm101_vm9, %v2207_v52, %v4336_v36  ;;  %v4356_v36 = vunpack.i.h.bf16 %v6419_v30  ;;  %v4355_v51 = vunpack.i.l.bf16 %v6419_v30 }
 0x45f   :  { %v2239_v61 = vsel %vm2234_vm10, %v2222_v37, %v4340_v43  ;;  %v2240_v58 = vsel %vm2234_vm10, %v2223_v60, %v4341_v40  ;;  %v4399_v43 = vpop.permute.xlu2 %4398  ;;  %v4371_v37 = vunpack.i.h.bf16 %v4369_v21  ;;  %v4370_v60 = vunpack.i.l.bf16 %v4369_v21 }
 0x460   :  { %v2305_v3 = vpack.c.bf16 %v2240_v58, %v2239_v61  ;;  %v4401_v4 = vunpack.i.h.bf16 %v4399_v43 }
 0x461   :  { %2582 = vmatmul.bf16.gmra.mxu3 %v2318_v18  ;;  %v4349_v32 = vpop.permute.xlu1 %4348 }
 0x462   :  { %2513 = vmatmul.bf16.gmra.mxu1 %v2305_v3  ;;  %v4344_v13 = vpop.permute.xlu0 %4343  ;;  %v4351_v28 = vunpack.i.h.bf16 %v4349_v32  ;;  %v4350_v50 = vunpack.i.l.bf16 %v4349_v32 }
 0x463   :  { %v4346_v10 = vunpack.i.h.bf16 %v4344_v13  ;;  %v4345_v16 = vunpack.i.l.bf16 %v4344_v13 }
 0x465   :  { %v2266_v11 = vsel %vm46_vm6, %v1753_v46, %v4346_v10  ;;  %v2265_v24 = vsel %vm46_vm6, %v1752_v26, %v4345_v16 }
 0x466   :  { %v2281_v45 = vsel %vm101_vm9, %v2265_v24, %v4350_v50  ;;  %v2282_v38 = vsel %vm101_vm9, %v2266_v11, %v4351_v28 }
 0x467   :  { %v2297_v52 = vsel %vm2234_vm10, %v2281_v45, %v4355_v51  ;;  %v2298_v57 = vsel %vm2234_vm10, %v2282_v38, %v4356_v36  ;;  %v4386_v38 = vunpack.i.h.bf16 %v4384_v33  ;;  %v4385_v36 = vunpack.i.l.bf16 %v4384_v33 }
 0x468   :  { %v2321_v3 = vpack.c.bf16 %v2298_v57, %v2297_v52 }
 0x469   :  { %v4364_v55 = vpop.permute.xlu1 %4363 }
 0x46a   :  { %v4366_v27 = vunpack.i.h.bf16 %v4364_v55  ;;  %v4365_v42 = vunpack.i.l.bf16 %v4364_v55  ;;  %v4359_v59 = vpop.permute.xlu0 %4358 }
 0x46b   :  { %v4361_v15 = vunpack.i.h.bf16 %v4359_v59  ;;  %v4360_v40 = vunpack.i.l.bf16 %v4359_v59 }
 0x46d   :  { %v2209_v18 = vsel %vm46_vm6, %v6370_v7, %v4361_v15  ;;  %v2208_v61 = vsel %vm46_vm6, %v6368_v63, %v4360_v40  ;;  %v6459_v7 = vpop.permute.xlu2 %4413 }
 0x46e   :  { %v2224_v30 = vsel %vm101_vm9, %v2208_v61, %v4365_v42  ;;  %v2225_v58 = vsel %vm101_vm9, %v2209_v18, %v4366_v27  ;;  %v4416_v22 = vunpack.i.h.bf16 %v6459_v7  ;;  %v4415_v56 = vunpack.i.l.bf16 %v6459_v7 }
 0x46f   :  { %v2241_v32 = vsel %vm2234_vm10, %v2224_v30, %v4370_v60  ;;  %v2242_v13 = vsel %vm2234_vm10, %v2225_v58, %v4371_v37 }
 0x470   :  { %v2308_v10 = vpack.c.bf16 %v2242_v13, %v2241_v32 }
 0x471   :  { %2587 = vmatmul.bf16.gmra.mxu3 %v2321_v3  ;;  %v4379_v16 = vpop.permute.xlu1 %4378 }
 0x472   :  { %v4374_v28 = vpop.permute.xlu0 %4373  ;;  %2518 = vmatmul.bf16.gmra.mxu1 %v2308_v10  ;;  %v4381_v46 = vunpack.i.h.bf16 %v4379_v16  ;;  %v4380_v63 = vunpack.i.l.bf16 %v4379_v16 }
 0x473   :  { %v4376_v21 = vunpack.i.h.bf16 %v4374_v28  ;;  %v4375_v50 = vunpack.i.l.bf16 %v4374_v28 }
 0x475   :  { %v2211_v26 = vsel %vm46_vm6, %v6387_v5, %v4376_v21  ;;  %v2210_v11 = vsel %vm46_vm6, %v6385_v47, %v4375_v50  ;;  %v6469_v42 = vpop.permute.xlu2 %4428 }
 0x476   :  { %v2226_v55 = vsel %vm101_vm9, %v2210_v11, %v4380_v63  ;;  %v2227_v45 = vsel %vm101_vm9, %v2211_v26, %v4381_v46  ;;  %v1742_v63 = vld [vmem:[#allocation2 + $0x2b8] sm:$0xff]  ;;  %v1743_v26 = vld [vmem:[#allocation2 + $0x2c0] sm:$0xff] }
 0x477   :  { %v2243_v51 = vsel %vm2234_vm10, %v2226_v55, %v4385_v36  ;;  %v2244_v27 = vsel %vm2234_vm10, %v2227_v45, %v4386_v38 }
 0x478   :  { %v2311_v15 = vpack.c.bf16 %v2244_v27, %v2243_v51 }
 0x479   :  { %v4394_v24 = vpop.permute.xlu1 %4393 }
 0x47a   :  { %v4389_v59 = vpop.permute.xlu0 %4388  ;;  %v4396_v52 = vunpack.i.h.bf16 %v4394_v24  ;;  %v4395_v57 = vunpack.i.l.bf16 %v4394_v24 }
 0x47b   :  { %v4391_v5 = vunpack.i.h.bf16 %v4389_v59  ;;  %v4390_v40 = vunpack.i.l.bf16 %v4389_v59 }
 0x47d   :  { %v2213_v33 = vsel %vm46_vm6, %v6229_v20, %v4391_v5  ;;  %v2212_v37 = vsel %vm46_vm6, %v6222_v29, %v4390_v40  ;;  %v4444_v18 = vpop.permute.xlu2 %4443 }
 0x47e   :  { %v2228_v61 = vsel %vm101_vm9, %v2212_v37, %v4395_v57  ;;  %v2229_v41 = vsel %vm101_vm9, %v2213_v33, %v4396_v52  ;;  %v4445_v21 = vunpack.i.l.bf16 %v4444_v18 }
 0x47f   :  { %v2246_v58 = vsel %vm2234_vm10, %v2229_v41, %v4401_v4 }
 0x481   :  { %4009 = vmatmul.msk.bf16.vlgmr.msrb.gmra.mxu3 %vm46_vm6, %v2301_v62  ;;  %v4409_v47 = vpop.permute.xlu1 %4408  ;;  %v4400_v62 = vunpack.i.l.bf16 %v4399_v43  ;;  %v4446_v43 = vunpack.i.h.bf16 %v4444_v18 }
 0x482   :  { %2523 = vmatmul.bf16.gmra.mxu1 %v2311_v15  ;;  %v4404_v3 = vpop.permute.xlu0 %4403  ;;  %v4411_v16 = vunpack.i.h.bf16 %v4409_v47  ;;  %v4410_v28 = vunpack.i.l.bf16 %v4409_v47 }
 0x483   :  { %v2245_v30 = vsel %vm2234_vm10, %v2228_v61, %v4400_v62  ;;  %v4406_v20 = vunpack.i.h.bf16 %v4404_v3  ;;  %v4405_v13 = vunpack.i.l.bf16 %v4404_v3  ;;  %v2256_v38 = vsel %vm46_vm6, %v1743_v26, %v4446_v43 }
 0x484   :  { %v2314_v32 = vpack.c.bf16 %v2246_v58, %v2245_v30  ;;  %v4430_v3 = vunpack.i.l.bf16 %v6469_v42 }
 0x485   :  { %v4459_v10 = vpop.permute.xlu2 %4458  ;;  %v2215_v50 = vsel %vm46_vm6, %v6244_v14, %v4406_v20  ;;  %v2214_v46 = vsel %vm46_vm6, %v6241_v34, %v4405_v13  ;;  %v2255_v14 = vsel %vm46_vm6, %v1742_v63, %v4445_v21  ;;  %v1744_v20 = vld [vmem:[#allocation2 + $0x2d0] sm:$0xff]  ;;  %v1745_v13 = vld [vmem:[#allocation2 + $0x2d8] sm:$0xff] }
 0x486   :  { %v2230_v55 = vsel %vm101_vm9, %v2214_v46, %v4410_v28  ;;  %v2231_v45 = vsel %vm101_vm9, %v2215_v50, %v4411_v16  ;;  %v4461_v36 = vunpack.i.h.bf16 %v4459_v10  ;;  %v4460_v51 = vunpack.i.l.bf16 %v4459_v10 }
 0x487   :  { %v2247_v15 = vsel %vm2234_vm10, %v2230_v55, %v4415_v56  ;;  %v2248_v47 = vsel %vm2234_vm10, %v2231_v45, %v4416_v22 }
 0x488   :  { %v2317_v57 = vpack.c.bf16 %v2248_v47, %v2247_v15 }
 0x489   :  { %v6479_v60 = vpop.permute.xlu1 %4423 }
 0x48a   :  { %v4419_v40 = vpop.permute.xlu0 %4418  ;;  %v4426_v61 = vunpack.i.h.bf16 %v6479_v60  ;;  %v4425_v41 = vunpack.i.l.bf16 %v6479_v60 }
 0x48b   :  { %v4421_v37 = vunpack.i.h.bf16 %v4419_v40  ;;  %v4420_v18 = vunpack.i.l.bf16 %v4419_v40 }
 0x48d   :  { %v4474_v5 = vpop.permute.xlu2 %4473  ;;  %v2217_v30 = vsel %vm46_vm6, %v6284_v23, %v4421_v37  ;;  %v2216_v58 = vsel %vm46_vm6, %v6282_v2, %v4420_v18 }
 0x48e   :  { %v4476_v4 = vunpack.i.h.bf16 %v4474_v5  ;;  %v4475_v62 = vunpack.i.l.bf16 %v4474_v5  ;;  %v2232_v60 = vsel %vm101_vm9, %v2216_v58, %v4425_v41  ;;  %v2233_v28 = vsel %vm101_vm9, %v2217_v30, %v4426_v61  ;;  %v1740_v41 = vld [vmem:[#allocation2 + $0x2a0] sm:$0xff] }
 0x48f   :  { %v2249_v56 = vsel %vm2234_vm10, %v2232_v60, %v4430_v3 }
 0x490   :  { %v2258_v23 = vsel %vm46_vm6, %v1745_v13, %v4476_v4  ;;  %v2257_v43 = vsel %vm46_vm6, %v1744_v20, %v4475_v62  ;;  %v1741_v4 = vld [vmem:[#allocation2 + $0x2a8] sm:$0xff] }
 0x491   :  { %4010 = vmatmul.msk.bf16.gmra.mxu3 %vm46_vm6, %v2304_v49  ;;  %v6489_v29 = vpop.permute.xlu1 %4438 }
 0x492   :  { %2528 = vmatmul.bf16.gmra.mxu1 %v2314_v32  ;;  %v4434_v25 = vpop.permute.xlu0 %4433  ;;  %v4441_v45 = vunpack.i.h.bf16 %v6489_v29 }
 0x493   :  { %v4435_v55 = vunpack.i.l.bf16 %v4434_v25 }
 0x495   :  { %v4489_v1 = vpop.permute.xlu2 %4488 }
 0x496   :  { %v4491_v2 = vunpack.i.h.bf16 %v4489_v1  ;;  %v4490_v21 = vunpack.i.l.bf16 %v4489_v1 }
 0x499   :  { %v4454_v49 = vpop.permute.xlu1 %4453 }
 0x49a   :  { %v4456_v11 = vunpack.i.h.bf16 %v4454_v49  ;;  %v4455_v24 = vunpack.i.l.bf16 %v4454_v49 }
 0x49c   :  { %v2271_v34 = vsel %vm101_vm9, %v2255_v14, %v4455_v24  ;;  %v2272_v27 = vsel %vm101_vm9, %v2256_v38, %v4456_v11  ;;  %v4449_v11 = vpop.permute.xlu0 %4448  ;;  %v4436_v24 = vunpack.i.h.bf16 %v4434_v25  ;;  %v4440_v38 = vunpack.i.l.bf16 %v6489_v29  ;;  %v1738_v14 = vld [vmem:[#allocation2 + $0x288] sm:$0xff] }
 0x49d   :  { %v2287_v7 = vsel %vm2234_vm10, %v2271_v34, %v4460_v51  ;;  %v2288_v59 = vsel %vm2234_vm10, %v2272_v27, %v4461_v36  ;;  %v1739_v36 = vld [vmem:[#allocation2 + $0x290] sm:$0xff]  ;;  %v2251_v34 = vsel %vm46_vm6, %v1738_v14, %v4435_v55  ;;  %v4451_v27 = vunpack.i.h.bf16 %v4449_v11 }
 0x49e   :  { %v2306_v52 = vpack.c.bf16 %v2288_v59, %v2287_v7  ;;  %v2252_v51 = vsel %vm46_vm6, %v1739_v36, %v4436_v24  ;;  %v4450_v7 = vunpack.i.l.bf16 %v4449_v11  ;;  %v2267_v6 = vsel %vm101_vm9, %v2251_v34, %v4440_v38  ;;  %v6541_v59 = vpop.f32.mrf.mxu1 }
 0x49f   :  { %v2268_v53 = vsel %vm101_vm9, %v2252_v51, %v4441_v45 }
 0x4a0   :  { %2562 = vmatmul.bf16.vlgmr.msrb.gmra.mxu2 %v2306_v52  ;;  %v2283_v15 = vsel %vm2234_vm10, %v2267_v6, %v4450_v7  ;;  %v2284_v47 = vsel %vm2234_vm10, %v2268_v53, %v4451_v27 }
 0x4a1   :  { %4011 = vmatmul.msk.bf16.gmra.mxu3 %vm46_vm6, %v2307_v12  ;;  %v6511_v33 = vpop.permute.xlu1 %4468  ;;  %v4431_v12 = vunpack.i.h.bf16 %v6469_v42  ;;  %v2300_v29 = vpack.c.bf16 %v2284_v47, %v2283_v15 }
 0x4a2   :  { %2533 = vmatmul.bf16.gmra.mxu1 %v2317_v57  ;;  %v4471_v18 = vunpack.i.h.bf16 %v6511_v33  ;;  %v4470_v61 = vunpack.i.l.bf16 %v6511_v33 }
 0x4a3   :  { %v2250_v49 = vsel %vm2234_vm10, %v2233_v28, %v4431_v12 }
 0x4a4   :  { %v2320_v26 = vpack.c.bf16 %v2250_v49, %v2249_v56 }
 0x4a6   :  { %v6551_v37 = vpop.f32.mrf.mxu1 }
 0x4a9   :  { %v4484_v32 = vpop.permute.xlu1 %4483 }
 0x4aa   :  { %v4486_v10 = vunpack.i.h.bf16 %v4484_v32  ;;  %v4485_v16 = vunpack.i.l.bf16 %v4484_v32 }
 0x4ac   :  { %v2273_v50 = vsel %vm101_vm9, %v2257_v43, %v4485_v16  ;;  %v2274_v46 = vsel %vm101_vm9, %v2258_v23, %v4486_v10  ;;  %v2322_v23 = vpack.c.bf16 %v1817_v39, %v1816_v9 }
 0x4ad   :  { %v2289_v42 = vsel %vm2234_vm10, %v2273_v50, %v4490_v21  ;;  %v2290_v22 = vsel %vm2234_vm10, %v2274_v46, %v4491_v2 }
 0x4ae   :  { %v2309_v63 = vpack.c.bf16 %v2290_v22, %v2289_v42 }
 0x4b0   :  { %2567 = vmatmul.bf16.gmra.mxu2 %v2309_v63  ;;  %v6589_v63 = vld [vmem:[%s7047_s4] ss:$0 sm:$0xff] }
 0x4b1   :  { %4012 = vmatmul.msk.bf16.gmra.mxu3 %vm46_vm6, %v2310_v54  ;;  %v4464_v54 = vpop.permute.xlu0 %4463  ;;  %v2505_v7 = vadd.f32 %v6589_v63, %v6541_v59 }
 0x4b2   :  { %2538 = vmatmul.bf16.gmra.mxu1 %v2320_v26  ;;  %v4466_v40 = vunpack.i.h.bf16 %v4464_v54  ;;  %v4465_v52 = vunpack.i.l.bf16 %v4464_v54 }
 0x4b4   :  { %v2254_v62 = vsel %vm46_vm6, %v1741_v4, %v4466_v40  ;;  %v2253_v0 = vsel %vm46_vm6, %v1740_v41, %v4465_v52 }
 0x4b5   :  { %v2269_v58 = vsel %vm101_vm9, %v2253_v0, %v4470_v61  ;;  %v2270_v1 = vsel %vm101_vm9, %v2254_v62, %v4471_v18 }
 0x4b9   :  { %v4479_v57 = vpop.permute.xlu0 %4478 }
 0x4ba   :  { %v4481_v17 = vunpack.i.h.bf16 %v4479_v57 }
 0x4bc   :  { %v2286_v12 = vsel %vm2234_vm10, %v2270_v1, %v4481_v17 }
 0x4c1   :  { %4013 = vmatmul.msk.bf16.gmra.mxu3 %vm46_vm6, %v2313_v35  ;;  %v4480_v35 = vunpack.i.l.bf16 %v4479_v57 }
 0x4c2   :  { %2552 = vmatmul.bf16.vlgmr.msra.gmra.mxu1 %v2300_v29  ;;  %v2507_v29 = vadd.f32 %v6589_v63, %v6551_v37 }
 0x4c3   :  { %v2285_v25 = vsel %vm2234_vm10, %v2269_v58, %v4480_v35 }
 0x4c4   :  { %v6549_v5 = vpop.f32.mrf.mxu3  ;;  %v2303_v33 = vpack.c.bf16 %v2286_v12, %v2285_v25 }
 0x4cc   :  { %v6557_v30 = vpop.f32.mrf.mxu3 }
 0x4cf   :  { %v2509_v3 = vpop.f32.mrf.mxu1 }
 0x4d0   :  { %v2510_v4 = vadd.f32 %v6589_v63, %v2509_v3 }
 0x4d1   :  { %4014 = vmatmul.msk.bf16.gmra.mxu3 %vm46_vm6, %v2316_v48 }
 0x4d2   :  { %2557 = vmatmul.bf16.gmra.mxu1 %v2303_v33 }
 0x4d4   :  { %v6567_v32 = vpop.f32.mrf.mxu3 }
 0x4d7   :  { %v2511_v20 = vpop.f32.mrf.mxu1 }
 0x4d8   :  { %v2512_v25 = vadd.f32 %v6589_v63, %v2511_v20 }
 0x4dc   :  { %v6569_v13 = vpop.f32.mrf.mxu3 }
 0x4df   :  { %v2514_v10 = vpop.f32.mrf.mxu1 }
 0x4e0   :  { %v2515_v26 = vadd.f32 %v6589_v63, %v2514_v10 }
 0x4e1   :  { %4015 = vmatmul.msk.bf16.gmra.mxu3 %vm46_vm6, %v2319_v31 }
 0x4e4   :  { %v6575_v16 = vpop.f32.mrf.mxu3 }
 0x4e7   :  { %v2516_v60 = vpop.f32.mrf.mxu1 }
 0x4e8   :  { %v2517_v12 = vadd.f32 %v6589_v63, %v2516_v60 }
 0x4ec   :  { %v6577_v28 = vpop.f32.mrf.mxu3 }
 0x4ef   :  { %v2519_v48 = vpop.f32.mrf.mxu1 }
 0x4f0   :  { %v2520_v10 = vadd.f32 %v6589_v63, %v2519_v48 }
 0x4f1   :  { %4016 = vmatmul.msk.bf16.gmra.mxu3 %vm46_vm6, %v2322_v23 }
 0x4f4   :  { %v6580_v43 = vpop.f32.mrf.mxu3 }
 0x4f7   :  { %v2521_v2 = vpop.f32.mrf.mxu1 }
 0x4f8   :  { %v2522_v23 = vadd.f32 %v6589_v63, %v2521_v2 }
 0x4fc   :  { %v6582_v21 = vpop.f32.mrf.mxu3 }
 0x4ff   :  { %v2524_v50 = vpop.f32.mrf.mxu1 }
 0x504   :  { %v2602_v8 = vpop.f32.mrf.mxu3 }
 0x507   :  { %v2526_v19 = vpop.f32.mrf.mxu1 }
 0x508   :  { %v2527_v48 = vadd.f32 %v6589_v63, %v2526_v19 }
 0x50c   :  { %v2604_v31 = vpop.f32.mrf.mxu3 }
 0x50f   :  { %v2529_v46 = vpop.f32.mrf.mxu1 }
 0x514   :  { %v2607_v42 = vpop.f32.mrf.mxu3 }
 0x517   :  { %v2531_v22 = vpop.f32.mrf.mxu1 }
 0x51c   :  { %v2609_v56 = vpop.f32.mrf.mxu3 }
 0x51f   :  { %v6584_v49 = vpop.f32.mrf.mxu1 }
 0x523   :  { %v2563_v11 = vpop.f32.mrf.mxu2 }
 0x524   :  { %v2564_v24 = vadd.f32 %v2563_v11, %v2515_v26  ;;  %v2612_v55 = vpop.f32.mrf.mxu3 }
 0x526   :  { %v6592_v45 = vadd.f32 %v2612_v55, %v2564_v24 }
 0x527   :  { %v6594_v38 = vpop.f32.mrf.mxu1 }
 0x528   :  { %v2651_v55 = vsel %vm101_vm9, %v6592_v45, 0.0 }
 0x52b   :  { %v2565_v47 = vpop.f32.mrf.mxu2 }
 0x52c   :  { %v2614_v14 = vpop.f32.mrf.mxu3  ;;  %v2566_v9 = vadd.f32 %v2565_v47, %v2517_v12  ;;  %v2532_v47 = vadd.f32 %v6589_v63, %v2531_v22 }
 0x52e   :  { %v6624_v26 = vadd.f32 %v2614_v14, %v2566_v9 }
 0x52f   :  { %v6596_v36 = vpop.f32.mrf.mxu1 }
 0x533   :  { %v2568_v62 = vpop.f32.mrf.mxu2 }
 0x534   :  { %v2617_v51 = vpop.f32.mrf.mxu3 }
 0x537   :  { %v6598_v34 = vpop.f32.mrf.mxu1 }
 0x53b   :  { %v2570_v3 = vpop.f32.mrf.mxu2 }
 0x53c   :  { %v2619_v27 = vpop.f32.mrf.mxu3  ;;  %v2571_v11 = vadd.f32 %v2570_v3, %v2522_v23 }
 0x53e   :  { %v6636_v14 = vadd.f32 %v2619_v27, %v2571_v11 }
 0x53f   :  { %v2553_v6 = vpop.f32.mrf.mxu1 }
 0x540   :  { %v2554_v53 = vadd.f32 %v2553_v6, %v2505_v7  ;;  %v2657_v27 = vsel %vm101_vm9, %v6636_v14, 0.0 }
 0x542   :  { %v6602_v54 = vadd.f32 %v2602_v8, %v2554_v53  ;;  %v2569_v8 = vadd.f32 %v2568_v62, %v2520_v10 }
 0x544   :  { %v2622_v15 = vpop.f32.mrf.mxu3  ;;  %v2644_v18 = vsel %vm101_vm9, %v6602_v54, 0.0  ;;  %v6631_v7 = vadd.f32 %v2617_v51, %v2569_v8  ;;  %v2576_v51 = vadd.f32 %v6557_v30, %v2527_v48  ;;  %v2537_v30 = vadd.f32 %v6589_v63, %v6594_v38 }
 0x546   :  { %v2655_v19 = vsel %vm101_vm9, %v6631_v7, 0.0 }
 0x547   :  { %v2555_v40 = vpop.f32.mrf.mxu1 }
 0x548   :  { %v2556_v52 = vadd.f32 %v2555_v40, %v2507_v29 }
 0x54a   :  { %v6606_v57 = vadd.f32 %v2604_v31, %v2556_v52 }
 0x54c   :  { %v2645_v61 = vsel %vm101_vm9, %v6606_v57, 0.0  ;;  %v2624_v59 = vpop.f32.mrf.mxu3 }
 0x54d   :  { %v2646_v41 = vadd.f32 %v2645_v61, %v2644_v18  ;;  %v2625_v52 = vadd.f32 %v2624_v59, %v2576_v51 }
 0x54f   :  { %v2558_v0 = vpop.f32.mrf.mxu1 }
 0x550   :  { %v2559_v17 = vadd.f32 %v2558_v0, %v2510_v4 }
 0x552   :  { %v6613_v35 = vadd.f32 %v2607_v42, %v2559_v17  ;;  %v2525_v42 = vadd.f32 %v6589_v63, %v2524_v50  ;;  %v2653_v50 = vsel %vm101_vm9, %v6624_v26, 0.0 }
 0x554   :  { %v2647_v37 = vsel %vm101_vm9, %v6613_v35, 0.0  ;;  %v2627_v58 = vpop.f32.mrf.mxu3  ;;  %v2574_v6 = vadd.f32 %v6549_v5, %v2525_v42 }
 0x555   :  { %v2648_v1 = vadd.f32 %v2647_v37, %v2646_v41 }
 0x556   :  { %v6642_v29 = vadd.f32 %v2622_v15, %v2574_v6  ;;  %v2581_v15 = vadd.f32 %v6569_v13, %v2532_v47 }
 0x557   :  { %v2560_v33 = vpop.f32.mrf.mxu1 }
 0x558   :  { %v2561_v39 = vadd.f32 %v2560_v33, %v2512_v25  ;;  %v2659_v22 = vsel %vm101_vm9, %v6642_v29, 0.0 }
 0x55a   :  { %v6621_v31 = vadd.f32 %v2609_v56, %v2561_v39  ;;  %v2530_v56 = vadd.f32 %v6589_v63, %v2529_v46  ;;  %v2535_v46 = vadd.f32 %v6589_v63, %v6584_v49  ;;  %v2661_v49 = vsel %vm101_vm9, %v2625_v52, 0.0 }
 0x55b   :  { %v4556_v39 = vmov 128.0  }
 0x55c   :  { %v2649_v20 = vsel %vm101_vm9, %v6621_v31, 0.0  ;;  %v2629_v60 = vpop.f32.mrf.mxu3  ;;  %v2579_v5 = vadd.f32 %v6567_v32, %v2530_v56  ;;  %v2584_v0 = vadd.f32 %v6575_v16, %v2535_v46  ;;  %v2540_v16 = vadd.f32 %v6589_v63, %v6596_v36 }
 0x55d   :  { %v2650_v24 = vadd.f32 %v2649_v20, %v2648_v1  ;;  %v2630_v62 = vadd.f32 %v2629_v60, %v2581_v15  ;;  %v2586_v1 = vadd.f32 %v6577_v28, %v2537_v30  ;;  %4539 = vrcp.f32 %v4556_v39 }
 0x55e   :  { %v2628_v41 = vadd.f32 %v2627_v58, %v2579_v5  ;;  %v2589_v23 = vadd.f32 %v6580_v43, %v2540_v16  ;;  %v2542_v28 = vadd.f32 %v6589_v63, %v6598_v34 }
 0x55f   :  { %v2652_v2 = vadd.f32 %v2651_v55, %v2650_v24  ;;  %v2665_v58 = vsel %vm101_vm9, %v2630_v62, 0.0 }
 0x560   :  { %v2663_v32 = vsel %vm101_vm9, %v2628_v41, 0.0  ;;  %v2591_v20 = vadd.f32 %v6582_v21, %v2542_v28 }
 0x561   :  { %v2654_v53 = vadd.f32 %v2653_v50, %v2652_v2 }
 0x563   :  { %v2656_v40 = vadd.f32 %v2655_v19, %v2654_v53  ;;  %v4540_v42 = vpop.eup %4539 }
 0x564   :  { %v2632_v18 = vpop.f32.mrf.mxu3  ;;  %v2682_v60 = vmul.f32 128.0, %v4540_v42  ;;  %vm2686_vm6 = vweird.f32 %v4540_v42 }
 0x565   :  { %v2658_v61 = vadd.f32 %v2657_v27, %v2656_v40  ;;  %v2633_v17 = vadd.f32 %v2632_v18, %v2584_v0 }
 0x566   :  { %v2683_v43 = vsub.f32 1.0, %v2682_v60 }
 0x567   :  { %v2660_v4 = vadd.f32 %v2659_v22, %v2658_v61  ;;  %v2667_v38 = vsel %vm101_vm9, %v2633_v17, 0.0 }
 0x568   :  { %v2684_v63 = vmul.f32 %v4540_v42, %v2683_v43 }
 0x569   :  { %v2662_v59 = vadd.f32 %v2661_v49, %v2660_v4 }
 0x56a   :  { %v2685_v6 = vadd.f32 %v4540_v42, %v2684_v63 }
 0x56b   :  { %v2664_v37 = vadd.f32 %v2663_v32, %v2662_v59 }
 0x56c   :  { %v2634_v25 = vpop.f32.mrf.mxu3  ;;  %v6676_v19 = vsel %vm2686_vm6, %v4540_v42, %v2685_v6 }
 0x56d   :  { %v2666_v13 = vadd.f32 %v2665_v58, %v2664_v37  ;;  %v2635_v12 = vadd.f32 %v2634_v25, %v2586_v1 }
 0x56f   :  { %v2668_v33 = vadd.f32 %v2667_v38, %v2666_v13  ;;  %v2669_v10 = vsel %vm101_vm9, %v2635_v12, 0.0 }
 0x571   :  { %v2670_v9 = vadd.f32 %v2669_v10, %v2668_v33 }
 0x574   :  { %v2637_v3 = vpop.f32.mrf.mxu3 }
 0x575   :  { %v6667_v8 = vadd.f32 %v2637_v3, %v2589_v23 }
 0x577   :  { %v2671_v11 = vsel %vm101_vm9, %v6667_v8, 0.0 }
 0x578   :  { %v2672_v48 = vadd.f32 %v2671_v11, %v2670_v9 }
 0x57c   :  { %v2639_v24 = vpop.f32.mrf.mxu3 }
 0x57d   :  { %v6672_v36 = vadd.f32 %v2639_v24, %v2591_v20 }
 0x57f   :  { %v2673_v55 = vsel %vm101_vm9, %v6672_v36, 0.0 }
 0x580   :  { %v2674_v2 = vadd.f32 %v2673_v55, %v2672_v48 }
 0x582   :  { %v2675_v56 = vrot.slane %v2674_v2, 4 }
 0x584   :  { %v2676_v34 = vadd.f32 %v2675_v56, %v2674_v2 }
 0x586   :  { %v2677_v50 = vrot.slane %v2676_v34, 2 }
 0x588   :  { %v2678_v53 = vadd.f32 %v2677_v50, %v2676_v34 }
 0x58a   :  { %v2679_v47 = vrot.slane %v2678_v53, 1 }
 0x58c   :  { %v2680_v21 = vadd.f32 %v2679_v47, %v2678_v53 }
 0x58e   :  { %v2688_v51 = vmul.f32 %v6676_v19, %v2680_v21 }
 0x590   :  { %v6680_v40 = vsub.f32 %v6602_v54, %v2688_v51  ;;  %v6683_v46 = vsub.f32 %v6606_v57, %v2688_v51  ;;  %v6686_v27 = vsub.f32 %v6613_v35, %v2688_v51  ;;  %v6689_v5 = vsub.f32 %v6621_v31, %v2688_v51 }
 0x591   :  { %v6692_v18 = vsub.f32 %v6592_v45, %v2688_v51  ;;  %v6695_v61 = vsub.f32 %v6631_v7, %v2688_v51  ;;  %v6698_v22 = vsub.f32 %v6636_v14, %v2688_v51  ;;  %v6701_v54 = vsub.f32 %v6642_v29, %v2688_v51 }
 0x592   :  { %v6703_v57 = vsub.f32 %v2625_v52, %v2688_v51  ;;  %v6705_v15 = vsub.f32 %v2628_v41, %v2688_v51  ;;  %v6707_v35 = vsub.f32 %v2630_v62, %v2688_v51  ;;  %v6709_v31 = vsub.f32 %v2633_v17, %v2688_v51 }
 0x593   :  { %v6711_v30 = vsub.f32 %v2635_v12, %v2688_v51  ;;  %v2705_v45 = vmul.f32 %v6680_v40, %v6680_v40  ;;  %v2706_v7 = vmul.f32 %v6683_v46, %v6683_v46  ;;  %v2707_v14 = vmul.f32 %v6686_v27, %v6686_v27 }
 0x594   :  { %v6720_v29 = vsub.f32 %v6624_v26, %v2688_v51  ;;  %v2708_v52 = vmul.f32 %v6689_v5, %v6689_v5  ;;  %v2709_v62 = vmul.f32 %v6692_v18, %v6692_v18  ;;  %v2711_v37 = vmul.f32 %v6695_v61, %v6695_v61 }
 0x595   :  { %v2721_v41 = vsel %vm101_vm9, %v2705_v45, 0.0  ;;  %v2722_v4 = vsel %vm101_vm9, %v2706_v7, 0.0  ;;  %v2724_v0 = vsel %vm101_vm9, %v2707_v14, 0.0  ;;  %v2712_v25 = vmul.f32 %v6698_v22, %v6698_v22 }
 0x596   :  { %v2723_v49 = vadd.f32 %v2722_v4, %v2721_v41  ;;  %v2710_v32 = vmul.f32 %v6720_v29, %v6720_v29  ;;  %v2726_v26 = vsel %vm101_vm9, %v2708_v52, 0.0  ;;  %v2728_v1 = vsel %vm101_vm9, %v2709_v62, 0.0 }
 0x597   :  { %v2713_v38 = vmul.f32 %v6701_v54, %v6701_v54  ;;  %v2732_v33 = vsel %vm101_vm9, %v2711_v37, 0.0  ;;  %v2714_v16 = vmul.f32 %v6703_v57, %v6703_v57  ;;  %v2734_v9 = vsel %vm101_vm9, %v2712_v25, 0.0 }
 0x598   :  { %v2725_v59 = vadd.f32 %v2724_v0, %v2723_v49  ;;  %v2730_v13 = vsel %vm101_vm9, %v2710_v32, 0.0  ;;  %v2715_v3 = vmul.f32 %v6705_v15, %v6705_v15  ;;  %v2716_v42 = vmul.f32 %v6707_v35, %v6707_v35 }
 0x599   :  { %v2736_v23 = vsel %vm101_vm9, %v2713_v38, 0.0  ;;  %v2738_v11 = vsel %vm101_vm9, %v2714_v16, 0.0  ;;  %v2703_v60 = vsub.f32 %v6667_v8, %v2688_v51  ;;  %v2717_v24 = vmul.f32 %v6709_v31, %v6709_v31 }
 0x59a   :  { %v2727_v17 = vadd.f32 %v2726_v26, %v2725_v59  ;;  %v2740_v48 = vsel %vm101_vm9, %v2715_v3, 0.0  ;;  %v2704_v43 = vsub.f32 %v6672_v36, %v2688_v51  ;;  %v2718_v2 = vmul.f32 %v6711_v30, %v6711_v30 }
 0x59b   :  { %v2742_v56 = vsel %vm101_vm9, %v2716_v42, 0.0  ;;  %v2719_v34 = vmul.f32 %v2703_v60, %v2703_v60  ;;  %v2744_v50 = vsel %vm101_vm9, %v2717_v24, 0.0 }
 0x59c   :  { %v2729_v58 = vadd.f32 %v2728_v1, %v2727_v17  ;;  %v2720_v53 = vmul.f32 %v2704_v43, %v2704_v43  ;;  %v2746_v8 = vsel %vm101_vm9, %v2718_v2, 0.0 }
 0x59d   :  { %v2748_v21 = vsel %vm101_vm9, %v2719_v34, 0.0 }
 0x59e   :  { %v2731_v12 = vadd.f32 %v2730_v13, %v2729_v58  ;;  %v2750_v7 = vsel %vm101_vm9, %v2720_v53, 0.0 }
 0x5a0   :  { %v2733_v10 = vadd.f32 %v2732_v33, %v2731_v12 }
 0x5a2   :  { %v2735_v39 = vadd.f32 %v2734_v9, %v2733_v10 }
 0x5a4   :  { %v2737_v28 = vadd.f32 %v2736_v23, %v2735_v39 }
 0x5a6   :  { %v2739_v20 = vadd.f32 %v2738_v11, %v2737_v28 }
 0x5a8   :  { %v2741_v55 = vadd.f32 %v2740_v48, %v2739_v20 }
 0x5aa   :  { %v2743_v63 = vadd.f32 %v2742_v56, %v2741_v55 }
 0x5ac   :  { %v2745_v6 = vadd.f32 %v2744_v50, %v2743_v63 }
 0x5ae   :  { %v2747_v47 = vadd.f32 %v2746_v8, %v2745_v6 }
 0x5b0   :  { %v2749_v45 = vadd.f32 %v2748_v21, %v2747_v47 }
 0x5b2   :  { %v2751_v36 = vadd.f32 %v2750_v7, %v2749_v45 }
 0x5b4   :  { %v2752_v51 = vrot.slane %v2751_v36, 4 }
 0x5b6   :  { %v2753_v14 = vadd.f32 %v2752_v51, %v2751_v36 }
 0x5b8   :  { %v2754_v52 = vrot.slane %v2753_v14, 2 }
 0x5ba   :  { %v2755_v41 = vadd.f32 %v2754_v52, %v2753_v14 }
 0x5bc   :  { %v2756_v4 = vrot.slane %v2755_v41, 1 }
 0x5be   :  { %v2757_v49 = vadd.f32 %v2756_v4, %v2755_v41 }
 0x5c0   :  { %v2758_v62 = vmul.f32 %v2757_v49, %v6676_v19  ;;  %v4534_v19 = vld [vmem:[%s7048_s5] ss:$0 sm:$0xff] }
 0x5c2   :  { %v2759_v0 = vadd.f32 1e-05, %v2758_v62 }
 0x5c4   :  { %4541 = vrsqrt.f32 %v2759_v0  ;;  %vm2766_vm12 = vweird.f32 %v2759_v0 }
 0x5ca   :  { %v4542_v59 = vpop.eup %4541 }
 0x5cb   :  { %v2761_v32 = vmul.f32 %v4542_v59, %v2759_v0  ;;  %vm2767_vm11 = vweird.f32 %v4542_v59 }
 0x5cc   :  { %vm2768_vm13 = vmor %vm2766_vm12, %vm2767_vm11 }
 0x5cd   :  { %v2762_v26 = vmul.f32 %v4542_v59, %v2761_v32 }
 0x5cf   :  { %v2763_v17 = vmul.f32 0.5, %v2762_v26 }
 0x5d1   :  { %v2764_v37 = vsub.f32 1.5, %v2763_v17 }
 0x5d3   :  { %v2765_v1 = vmul.f32 %v4542_v59, %v2764_v37 }
 0x5d5   :  { %v2769_v58 = vsel %vm2768_vm13, %v4542_v59, %v2765_v1 }
 0x5d6   :  { %v2772_v25 = vmul.f32 %v2769_v58, %v6686_v27  ;;  %v2773_v13 = vmul.f32 %v2769_v58, %v6689_v5  ;;  %v2774_v12 = vmul.f32 %v2769_v58, %v6692_v18  ;;  %v2775_v38 = vmul.f32 %v2769_v58, %v6720_v29 }
 0x5d7   :  { %v2776_v33 = vmul.f32 %v2769_v58, %v6695_v61  ;;  %v2777_v10 = vmul.f32 %v2769_v58, %v6698_v22  ;;  %v2770_v16 = vmul.f32 %v2769_v58, %v6680_v40  ;;  %v2780_v9 = vmul.f32 %v2769_v58, %v6705_v15  ;;  %v4535_v61 = vld [vmem:[%s7049_s6] ss:$0 sm:$0xff] }
 0x5d8   :  { %v2781_v27 = vmul.f32 %v2769_v58, %v6707_v35  ;;  %v2782_v5 = vmul.f32 %v2769_v58, %v6709_v31  ;;  %v2783_v39 = vmul.f32 %v2769_v58, %v6711_v30  ;;  %v2784_v3 = vmul.f32 %v2769_v58, %v2703_v60 }
 0x5d9   :  { %v2785_v23 = vmul.f32 %v2769_v58, %v2704_v43  ;;  %v2771_v18 = vmul.f32 %v2769_v58, %v6683_v46  ;;  %v2791_v28 = vmul.f32 %v4534_v19, %v2772_v25  ;;  %v2792_v29 = vmul.f32 %v4534_v19, %v2773_v13 }
 0x5da   :  { %v2795_v22 = vmul.f32 %v4534_v19, %v2776_v33  ;;  %v2796_v40 = vmul.f32 %v4534_v19, %v2777_v10  ;;  %v2799_v42 = vmul.f32 %v4534_v19, %v2780_v9  ;;  %v2800_v15 = vmul.f32 %v4534_v19, %v2781_v27 }
 0x5db   :  { %v2789_v11 = vmul.f32 %v4534_v19, %v2770_v16  ;;  %v2803_v35 = vmul.f32 %v4534_v19, %v2784_v3  ;;  %v2804_v20 = vmul.f32 %v4534_v19, %v2785_v23  ;;  %v2790_v31 = vmul.f32 %v4534_v19, %v2771_v18 }
 0x5dc   :  { %v6781_v24 = vadd.f32 %v4535_v61, %v2791_v28  ;;  %v6783_v30 = vadd.f32 %v4535_v61, %v2792_v29  ;;  %v2793_v60 = vmul.f32 %v4534_v19, %v2774_v12  ;;  %v2794_v46 = vmul.f32 %v4534_v19, %v2775_v38 }
 0x5dd   :  { %v6785_v48 = vadd.f32 %v4535_v61, %v2795_v22  ;;  %v6787_v55 = vadd.f32 %v4535_v61, %v2796_v40  ;;  %v6789_v43 = vadd.f32 %v4535_v61, %v2799_v42  ;;  %v6791_v2 = vadd.f32 %v4535_v61, %v2800_v15 }
 0x5de   :  { %v2808_v56 = vadd.f32 %v4535_v61, %v2789_v11  ;;  %v6793_v63 = vadd.f32 %v4535_v61, %v2803_v35  ;;  %v6795_v34 = vadd.f32 %v4535_v61, %v2804_v20  ;;  %v2809_v50 = vadd.f32 %v4535_v61, %v2790_v31 }
 0x5df   :  { %v2812_v6 = vadd.f32 %v4535_v61, %v2793_v60  ;;  %v2813_v53 = vadd.f32 %v4535_v61, %v2794_v46  ;;  %v2778_v8 = vmul.f32 %v2769_v58, %v6701_v54  ;;  %v2779_v45 = vmul.f32 %v2769_v58, %v6703_v57 }
 0x5e0   :  { %vm2824_vm14 = vcmp.gt.f32.partialorder %v2808_v56, 0.0  ;;  %vm2825_vm15 = vcmp.gt.f32.partialorder %v2809_v50, 0.0  ;;  %v2840_v47 = vmul.f32 0.01, %v2808_v56  ;;  %v2841_v21 = vmul.f32 0.01, %v2809_v50 }
 0x5e1   :  { %v2844_v7 = vmul.f32 0.01, %v2812_v6  ;;  %v2845_v36 = vmul.f32 0.01, %v2813_v53  ;;  %vm2828_vm0 = vcmp.gt.f32.partialorder %v2812_v6, 0.0  ;;  %vm2829_vm2 = vcmp.gt.f32.partialorder %v2813_v53, 0.0 }
 0x5e2   :  { %v2856_v51 = vsel %vm2824_vm14, %v2808_v56, %v2840_v47  ;;  %v2797_v14 = vmul.f32 %v4534_v19, %v2778_v8  ;;  %v2857_v52 = vsel %vm2825_vm15, %v2809_v50, %v2841_v21  ;;  %v2798_v41 = vmul.f32 %v4534_v19, %v2779_v45 }
 0x5e3   :  { %v2860_v4 = vsel %vm2828_vm0, %v2812_v6, %v2844_v7  ;;  %v2861_v49 = vsel %vm2829_vm2, %v2813_v53, %v2845_v36  ;;  %2888 = vst [vmem:[#allocation1] ss:$4 sm:$0xff] %v2856_v51  ;;  %v2801_v62 = vmul.f32 %v4534_v19, %v2782_v5  ;;  %v2880_v0 = vrot.slane %v2856_v51, 4 }
 0x5e4   :  { %2892 = vst [vmem:[#allocation1 + $0x2] ss:$4 sm:$0xff] %v2857_v52  ;;  %v2816_v54 = vadd.f32 %v4535_v61, %v2797_v14  ;;  %v2881_v59 = vrot.slane %v2857_v52, 4  ;;  %v2802_v32 = vmul.f32 %v4534_v19, %v2783_v39  ;;  %v2817_v57 = vadd.f32 %v4535_v61, %v2798_v41 }
 0x5e5   :  { %2897 = vst [vmem:[#allocation1 + $0x20] ss:$4 sm:$0xff] %v2860_v4  ;;  %v2882_v26 = vrot.slane %v2860_v4, 4  ;;  %v2883_v17 = vrot.slane %v2861_v49, 4  ;;  %v2820_v37 = vadd.f32 %v4535_v61, %v2801_v62  ;;  %v2842_v8 = vmul.f32 0.01, %v6781_v24 }
 0x5e6   :  { %2901 = vst [vmem:[#allocation1 + $0x22] ss:$4 sm:$0xff] %v2861_v49  ;;  %v2848_v1 = vmul.f32 0.01, %v2816_v54  ;;  %vm2832_vm3 = vcmp.gt.f32.partialorder %v2816_v54, 0.0  ;;  %v2821_v58 = vadd.f32 %v4535_v61, %v2802_v32  ;;  %vm2833_vm4 = vcmp.gt.f32.partialorder %v2817_v57, 0.0 }
 0x5e7   :  { %2890 = vst [vmem:[#allocation1 + $0x1] ss:$4 sm:$0xff] %v2880_v0  ;;  %v2849_v25 = vmul.f32 0.01, %v2817_v57  ;;  %v2852_v13 = vmul.f32 0.01, %v2820_v37 }
 0x5e8   :  { %2894 = vst [vmem:[#allocation1 + $0x3] ss:$4 sm:$0xff] %v2881_v59  ;;  %v2864_v12 = vsel %vm2832_vm3, %v2816_v54, %v2848_v1  ;;  %vm2836_vm5 = vcmp.gt.f32.partialorder %v2820_v37, 0.0  ;;  %v2853_v38 = vmul.f32 0.01, %v2821_v58  ;;  %vm2837_vm1 = vcmp.gt.f32.partialorder %v2821_v58, 0.0 }
 0x5e9   :  { %2899 = vst [vmem:[#allocation1 + $0x21] ss:$4 sm:$0xff] %v2882_v26  ;;  %v2865_v33 = vsel %vm2833_vm4, %v2817_v57, %v2849_v25  ;;  %v2884_v19 = vrot.slane %v2864_v12, 4  ;;  %v2868_v16 = vsel %vm2836_vm5, %v2820_v37, %v2852_v13  ;;  %vm2826_vm8 = vcmp.gt.f32.partialorder %v6781_v24, 0.0 }
 0x5ea   :  { %2903 = vst [vmem:[#allocation1 + $0x23] ss:$4 sm:$0xff] %v2883_v17  ;;  %v2885_v9 = vrot.slane %v2865_v33, 4  ;;  %v2869_v5 = vsel %vm2837_vm1, %v2821_v58, %v2853_v38  ;;  %v2886_v39 = vrot.slane %v2868_v16, 4  ;;  %v2843_v21 = vmul.f32 0.01, %v6783_v30 }
 0x5eb   :  { %v2887_v3 = vrot.slane %v2869_v5, 4  ;;  %vm2827_vm10 = vcmp.gt.f32.partialorder %v6783_v30, 0.0  ;;  %v2846_v45 = vmul.f32 0.01, %v6785_v48  ;;  %v2858_v7 = vsel %vm2826_vm8, %v6781_v24, %v2842_v8  ;;  %v4188_v8 = vld [vmem:[%s7050_s7 + $0x30] sm:$0xff] }
 0x5ec   :  { %vm2830_vm6 = vcmp.gt.f32.partialorder %v6785_v48, 0.0  ;;  %vm2831_vm11 = vcmp.gt.f32.partialorder %v6787_v55, 0.0  ;;  %v2847_v36 = vmul.f32 0.01, %v6787_v55  ;;  %v2850_v24 = vmul.f32 0.01, %v6789_v43 }
 0x5ed   :  { %v2862_v41 = vsel %vm2830_vm6, %v6785_v48, %v2846_v45  ;;  %vm2834_vm12 = vcmp.gt.f32.partialorder %v6789_v43, 0.0  ;;  %vm2835_vm13 = vcmp.gt.f32.partialorder %v6791_v2, 0.0  ;;  %v2854_v48 = vmul.f32 0.01, %v6793_v63  ;;  %v4196_v45 = vld [vmem:[%s7050_s7 + $0x70] sm:$0xff] }
 0x5ee   :  { %v3004_v54 = vrot.slane %v2862_v41, 4  ;;  %vm2838_vm14 = vcmp.gt.f32.partialorder %v6793_v63, 0.0  ;;  %vm2839_vm15 = vcmp.gt.f32.partialorder %v6795_v34, 0.0  ;;  %vm3809_vm1 = vcmask 1041408  }
 0x5ef   :  { %v2895_v10 = vld.sshfl [vmem:[#allocation1] sm:$0xff pattern:$0x73625140] }
 0x5f0   :  { %2905 = vst [vmem:[#allocation1] ss:$4 sm:$0xff] %v2864_v12 }
 0x5f1   :  { %v2904_v27 = vld.sshfl [vmem:[#allocation1 + $0x20] sm:$0xff pattern:$0x73625140]  ;;  %2906 = vst [vmem:[#allocation1 + $0x1] ss:$4 sm:$0xff] %v2884_v19 }
 0x5f2   :  { %2907 = vst [vmem:[#allocation1 + $0x2] ss:$4 sm:$0xff] %v2865_v33 }
 0x5f3   :  { %2908 = vst [vmem:[#allocation1 + $0x3] ss:$4 sm:$0xff] %v2885_v9 }
 0x5f4   :  { %2910 = vst [vmem:[#allocation1 + $0x20] ss:$4 sm:$0xff] %v2868_v16 }
 0x5f5   :  { %2911 = vst [vmem:[#allocation1 + $0x21] ss:$4 sm:$0xff] %v2886_v39 }
 0x5f6   :  { %2912 = vst [vmem:[#allocation1 + $0x22] ss:$4 sm:$0xff] %v2869_v5 }
 0x5f7   :  { %2913 = vst [vmem:[#allocation1 + $0x23] ss:$4 sm:$0xff] %v2887_v3 }
 0x5f8   :  { %2926 = vst.sshfl [vmem:[#allocation1 + $0x10] sm:$0xff pattern:$0x75643120] %v2880_v0 }
 0x5f9   :  { %2932 = vst.sshfl [vmem:[#allocation1 + $0x30] sm:$0xff pattern:$0x75643120] %v2881_v59  ;;  %v2866_v59 = vsel %vm2834_vm12, %v6789_v43, %v2850_v24  ;;  %v4184_v24 = vld [vmem:[%s7050_s7 + $0x10] sm:$0xff] }
 0x5fa   :  { %v2909_v23 = vld.sshfl [vmem:[#allocation1] sm:$0xff pattern:$0x73625140]  ;;  %2919 = vst.msk [vmem:[#allocation3 + $0xf0] sm:$0xff] %vm101_vm9, %v2895_v10  ;;  %v3006_v57 = vrot.slane %v2866_v59, 4 }
 0x5fb   :  { %2923 = vst.sshfl [vmem:[#allocation1] sm:$0xff pattern:$0x75643120] %v2856_v51  ;;  %v2859_v51 = vsel %vm2827_vm10, %v6783_v30, %v2843_v21  ;;  %v2851_v30 = vmul.f32 0.01, %v6791_v2  ;;  %v4187_v21 = vld [vmem:[%s7050_s7 + $0x28] sm:$0xff] }
 0x5fc   :  { %2920 = vst.msk [vmem:[#allocation3 + $0x100] sm:$0xff] %vm101_vm9, %v2904_v27 }
 0x5fd   :  { %2921 = vst.msk [vmem:[#allocation3 + $0x110] sm:$0xff] %vm101_vm9, %v2909_v23  ;;  %v2867_v32 = vsel %vm2835_vm13, %v6791_v2, %v2851_v30 }
 0x5fe   :  { %v2914_v18 = vld.sshfl [vmem:[#allocation1 + $0x20] sm:$0xff pattern:$0x73625140]  ;;  %v3007_v37 = vrot.slane %v2867_v32, 4 }
 0x5ff   :  { %v2928_v28 = vld [vmem:[#allocation1 + $0x11] ss:$2 sm:$0xff]  ;;  %2929 = vst.sshfl [vmem:[#allocation1 + $0x20] sm:$0xff pattern:$0x75643120] %v2857_v52  ;;  %v3002_v52 = vrot.slane %v2858_v7, 4 }
 0x600   :  { %v2934_v29 = vld [vmem:[#allocation1 + $0x31] ss:$2 sm:$0xff]  ;;  %2937 = vst.sshfl [vmem:[#allocation1 + $0x10] sm:$0xff pattern:$0x75643120] %v2882_v26 }
 0x601   :  { %2941 = vst.sshfl [vmem:[#allocation1 + $0x30] sm:$0xff pattern:$0x75643120] %v2883_v17  ;;  %v2870_v17 = vsel %vm2838_vm14, %v6793_v63, %v2854_v48 }
 0x602   :  { %v2925_v61 = vld [vmem:[#allocation1 + $0x1] ss:$2 sm:$0xff]  ;;  %2922 = vst.msk [vmem:[#allocation3 + $0x120] sm:$0xff] %vm101_vm9, %v2914_v18  ;;  %v3008_v1 = vrot.slane %v2870_v17, 4 }
 0x603   :  { %2935 = vst.sshfl [vmem:[#allocation1] sm:$0xff pattern:$0x75643120] %v2860_v4  ;;  %v3003_v4 = vrot.slane %v2859_v51, 4 }
 0x606   :  { %v2931_v22 = vld [vmem:[#allocation1 + $0x21] ss:$2 sm:$0xff] }
 0x607   :  { %v2938_v40 = vld [vmem:[#allocation1 + $0x11] ss:$2 sm:$0xff]  ;;  %2939 = vst.sshfl [vmem:[#allocation1 + $0x20] sm:$0xff pattern:$0x75643120] %v2861_v49  ;;  %v2863_v49 = vsel %vm2831_vm11, %v6787_v55, %v2847_v36  ;;  %v4186_v36 = vld [vmem:[%s7050_s7 + $0x20] sm:$0xff] }
 0x608   :  { %v2942_v42 = vld [vmem:[#allocation1 + $0x31] ss:$2 sm:$0xff]  ;;  %2945 = vst.sshfl [vmem:[#allocation1 + $0x10] sm:$0xff pattern:$0x75643120] %v2884_v19  ;;  %v3005_v0 = vrot.slane %v2863_v49, 4 }
 0x609   :  { %2949 = vst.sshfl [vmem:[#allocation1 + $0x30] sm:$0xff pattern:$0x75643120] %v2885_v9  ;;  %v2855_v55 = vmul.f32 0.01, %v6795_v34  ;;  %vm3866_vm11 = vcmask 1024  }
 0x60a   :  { %v2936_v15 = vld [vmem:[#allocation1 + $0x1] ss:$2 sm:$0xff] }
 0x60b   :  { %2943 = vst.sshfl [vmem:[#allocation1] sm:$0xff pattern:$0x75643120] %v2864_v12  ;;  %v2871_v43 = vsel %vm2839_vm15, %v6795_v34, %v2855_v55 }
 0x60c   :  { %v3009_v25 = vrot.slane %v2871_v43, 4 }
 0x60e   :  { %v2940_v11 = vld [vmem:[#allocation1 + $0x21] ss:$2 sm:$0xff] }
 0x60f   :  { %v2946_v35 = vld [vmem:[#allocation1 + $0x11] ss:$2 sm:$0xff]  ;;  %2947 = vst.sshfl [vmem:[#allocation1 + $0x20] sm:$0xff pattern:$0x75643120] %v2865_v33 }
 0x610   :  { %v2950_v20 = vld [vmem:[#allocation1 + $0x31] ss:$2 sm:$0xff]  ;;  %2953 = vst.sshfl [vmem:[#allocation1 + $0x10] sm:$0xff pattern:$0x75643120] %v2886_v39 }
 0x611   :  { %2957 = vst.sshfl [vmem:[#allocation1 + $0x30] sm:$0xff pattern:$0x75643120] %v2887_v3 }
 0x612   :  { %v2944_v31 = vld [vmem:[#allocation1 + $0x1] ss:$2 sm:$0xff] }
 0x613   :  { %2951 = vst.sshfl [vmem:[#allocation1] sm:$0xff pattern:$0x75643120] %v2868_v16 }
 0x614   :  { %2959 = vst [vmem:[#allocation1] ss:$4 sm:$0xff] %v2925_v61 }
 0x615   :  { %2963 = vst [vmem:[#allocation1 + $0x2] ss:$4 sm:$0xff] %v2931_v22  ;;  %v3122_v22 = vld [vmem:[#allocation3 + $0x50] sm:$0xff] }
 0x616   :  { %v2948_v60 = vld [vmem:[#allocation1 + $0x21] ss:$2 sm:$0xff] }
 0x617   :  { %2955 = vst.sshfl [vmem:[#allocation1 + $0x20] sm:$0xff pattern:$0x75643120] %v2869_v5  ;;  %v2954_v56 = vld [vmem:[#allocation1 + $0x11] ss:$2 sm:$0xff] }
 0x618   :  { %2968 = vst [vmem:[#allocation1 + $0x20] ss:$4 sm:$0xff] %v2936_v15  ;;  %v2958_v6 = vld [vmem:[#allocation1 + $0x31] ss:$2 sm:$0xff] }
 0x619   :  { %2972 = vst [vmem:[#allocation1 + $0x22] ss:$4 sm:$0xff] %v2940_v11 }
 0x61a   :  { %v2952_v46 = vld [vmem:[#allocation1 + $0x1] ss:$2 sm:$0xff] }
 0x61b   :  { %2961 = vst [vmem:[#allocation1 + $0x1] ss:$4 sm:$0xff] %v2928_v28  ;;  %v4189_v28 = vld [vmem:[%s7050_s7 + $0x38] sm:$0xff] }
 0x61c   :  { %2965 = vst [vmem:[#allocation1 + $0x3] ss:$4 sm:$0xff] %v2934_v29  ;;  %3542 = vmatpush.bf16.msra.mxu3 %v4189_v28 }
 0x61e   :  { %v2956_v50 = vld [vmem:[#allocation1 + $0x21] ss:$2 sm:$0xff] }
 0x61f   :  { %2970 = vst [vmem:[#allocation1 + $0x21] ss:$4 sm:$0xff] %v2938_v40 }
 0x620   :  { %2974 = vst [vmem:[#allocation1 + $0x23] ss:$4 sm:$0xff] %v2942_v42  ;;  %3543 = vmatpush.bf16.msra.mxu3 %v4188_v8  ;;  %v4206_v8 = vld [vmem:[%s7050_s7 + $0xc0] sm:$0xff] }
 0x623   :  { %v2966_v53 = vld.sshfl [vmem:[#allocation1] sm:$0xff pattern:$0x73625140] }
 0x624   :  { %2976 = vst [vmem:[#allocation1] ss:$4 sm:$0xff] %v2944_v31  ;;  %3544 = vmatpush.bf16.msra.mxu3 %v4187_v21  ;;  %v4216_v21 = vld [vmem:[%s7050_s7 + $0x110] sm:$0xff] }
 0x625   :  { %2977 = vst [vmem:[#allocation1 + $0x1] ss:$4 sm:$0xff] %v2946_v35 }
 0x626   :  { %2978 = vst [vmem:[#allocation1 + $0x2] ss:$4 sm:$0xff] %v2948_v60 }
 0x627   :  { %v2975_v47 = vld.sshfl [vmem:[#allocation1 + $0x20] sm:$0xff pattern:$0x73625140]  ;;  %2979 = vst [vmem:[#allocation1 + $0x3] ss:$4 sm:$0xff] %v2950_v20 }
 0x628   :  { %2981 = vst [vmem:[#allocation1 + $0x20] ss:$4 sm:$0xff] %v2952_v46  ;;  %3545 = vmatpush.bf16.msra.mxu3 %v4186_v36 }
 0x629   :  { %2982 = vst [vmem:[#allocation1 + $0x21] ss:$4 sm:$0xff] %v2954_v56 }
 0x62a   :  { %2983 = vst [vmem:[#allocation1 + $0x22] ss:$4 sm:$0xff] %v2956_v50 }
 0x62b   :  { %2984 = vst [vmem:[#allocation1 + $0x23] ss:$4 sm:$0xff] %v2958_v6 }
 0x62c   :  { %2990 = vst.msk [vmem:[#allocation3 + $0xa2] sm:$0xff] %vm101_vm9, %v2966_v53 }
 0x62d   :  { %2991 = vst.msk [vmem:[#allocation3 + $0xb2] sm:$0xff] %vm101_vm9, %v2975_v47  ;;  %v4197_v47 = vld [vmem:[%s7050_s7 + $0x78] sm:$0xff] }
 0x62e   :  { %v2980_v14 = vld.sshfl [vmem:[#allocation1] sm:$0xff pattern:$0x73625140]  ;;  %3561 = vmatpush.bf16.msrb.mxu1 %v4197_v47  ;;  %v4217_v47 = vld [vmem:[%s7050_s7 + $0x118] sm:$0xff] }
 0x62f   :  { %3010 = vst [vmem:[#allocation1] ss:$4 sm:$0xff] %v2858_v7 }
 0x630   :  { %3012 = vst [vmem:[#allocation1 + $0x1] ss:$4 sm:$0xff] %v3002_v52 }
 0x631   :  { %3014 = vst [vmem:[#allocation1 + $0x2] ss:$4 sm:$0xff] %v2859_v51 }
 0x632   :  { %v2985_v62 = vld.sshfl [vmem:[#allocation1 + $0x20] sm:$0xff pattern:$0x73625140]  ;;  %3016 = vst [vmem:[#allocation1 + $0x3] ss:$4 sm:$0xff] %v3003_v4  ;;  %3562 = vmatpush.bf16.msrb.mxu1 %v4196_v45 }
 0x633   :  { %3019 = vst [vmem:[#allocation1 + $0x20] ss:$4 sm:$0xff] %v2862_v41  ;;  %v3130_v10 = vld [vmem:[#allocation3 + $0xa0] sm:$0xff] }
 0x634   :  { %3021 = vst [vmem:[#allocation1 + $0x21] ss:$4 sm:$0xff] %v3004_v54  ;;  %v3131_v9 = vld [vmem:[#allocation3 + $0xb0] sm:$0xff] }
 0x635   :  { %3023 = vst [vmem:[#allocation1 + $0x22] ss:$4 sm:$0xff] %v2863_v49  ;;  %v4492_v27 = vpack.i.bf16 %v3131_v9, %v3130_v10  ;;  %v3139_v30 = vld [vmem:[#allocation3 + $0xb2] sm:$0xff] }
 0x636   :  { %3025 = vst [vmem:[#allocation1 + $0x23] ss:$4 sm:$0xff] %v3005_v0 }
 0x637   :  { %2992 = vst.msk [vmem:[#allocation3 + $0xc2] sm:$0xff] %vm101_vm9, %v2980_v14  ;;  %4493 = vrot.lane.b32.xlu0 %v4492_v27, %s4553_s0  ;;  %v4185_v14 = vld [vmem:[%s7050_s7 + $0x18] sm:$0xff]  ;;  %v3126_v27 = vld [vmem:[#allocation3 + $0x2] sm:$0xff] }
 0x638   :  { %2993 = vst.msk [vmem:[#allocation3 + $0xd2] sm:$0xff] %vm101_vm9, %v2985_v62  ;;  %3546 = vmatpush.bf16.msra.mxu3 %v4185_v14  ;;  %v4183_v62 = vld [vmem:[%s7050_s7 + $0x8] sm:$0xff] }
 0x639   :  { %v3017_v26 = vld.sshfl [vmem:[#allocation1] sm:$0xff pattern:$0x73625140] }
 0x63a   :  { %3027 = vst [vmem:[#allocation1] ss:$4 sm:$0xff] %v2866_v59 }
 0x63b   :  { %3028 = vst [vmem:[#allocation1 + $0x1] ss:$4 sm:$0xff] %v3006_v57 }
 0x63c   :  { %3029 = vst [vmem:[#allocation1 + $0x2] ss:$4 sm:$0xff] %v2867_v32  ;;  %3547 = vmatpush.bf16.msra.mxu3 %v4184_v24  ;;  %v4214_v24 = vld [vmem:[%s7050_s7 + $0x100] sm:$0xff] }
 0x63d   :  { %v3026_v58 = vld.sshfl [vmem:[#allocation1 + $0x20] sm:$0xff pattern:$0x73625140]  ;;  %3030 = vst [vmem:[#allocation1 + $0x3] ss:$4 sm:$0xff] %v3007_v37 }
 0x63e   :  { %3032 = vst [vmem:[#allocation1 + $0x20] ss:$4 sm:$0xff] %v2870_v17  ;;  %v3140_v31 = vld [vmem:[#allocation3 + $0xc2] sm:$0xff] }
 0x63f   :  { %3033 = vst [vmem:[#allocation1 + $0x21] ss:$4 sm:$0xff] %v3008_v1  ;;  %v3141_v60 = vld [vmem:[#allocation3 + $0xd2] sm:$0xff] }
 0x640   :  { %3034 = vst [vmem:[#allocation1 + $0x22] ss:$4 sm:$0xff] %v2871_v43  ;;  %v4522_v50 = vpack.i.bf16 %v3141_v60, %v3140_v31  ;;  %3548 = vmatpush.bf16.msra.mxu3 %v4183_v62  ;;  %v4200_v31 = vld [vmem:[%s7050_s7 + $0x90] sm:$0xff]  ;;  %v4210_v60 = vld [vmem:[%s7050_s7 + $0xe0] sm:$0xff] }
 0x641   :  { %3035 = vst [vmem:[#allocation1 + $0x23] ss:$4 sm:$0xff] %v3009_v25 }
 0x642   :  { %3049 = vst.sshfl [vmem:[#allocation1 + $0x10] sm:$0xff pattern:$0x75643120] %v3002_v52  ;;  %v3132_v52 = vld [vmem:[#allocation3 + $0xc0] sm:$0xff] }
 0x643   :  { %3055 = vst.sshfl [vmem:[#allocation1 + $0x30] sm:$0xff pattern:$0x75643120] %v3003_v4 }
 0x644   :  { %v3031_v2 = vld.sshfl [vmem:[#allocation1] sm:$0xff pattern:$0x73625140]  ;;  %3042 = vst.msk [vmem:[#allocation3 + $0x60] sm:$0xff] %vm101_vm9, %v3017_v26 }
 0x645   :  { %3046 = vst.sshfl [vmem:[#allocation1] sm:$0xff pattern:$0x75643120] %v2858_v7  ;;  %v4205_v7 = vld [vmem:[%s7050_s7 + $0xb8] sm:$0xff]  ;;  %v4182_v26 = vld [vmem:[%s7050_s7] sm:$0xff] }
 0x646   :  { %3043 = vst.msk [vmem:[#allocation3 + $0x70] sm:$0xff] %vm101_vm9, %v3026_v58  ;;  %3580 = vmatpush.bf16.msra.mxu2 %v4205_v7  ;;  %3549 = vmatpush.bf16.msra.mxu3 %v4182_v26  ;;  %v4190_v58 = vld [vmem:[%s7050_s7 + $0x40] sm:$0xff] }
 0x647   :  { %3044 = vst.msk [vmem:[#allocation3 + $0x80] sm:$0xff] %vm101_vm9, %v3031_v2  ;;  %v4212_v2 = vld [vmem:[%s7050_s7 + $0xf0] sm:$0xff] }
 0x648   :  { %v3036_v63 = vld.sshfl [vmem:[#allocation1 + $0x20] sm:$0xff pattern:$0x73625140] }
 0x649   :  { %v3051_v34 = vld [vmem:[#allocation1 + $0x11] ss:$2 sm:$0xff]  ;;  %3052 = vst.sshfl [vmem:[#allocation1 + $0x20] sm:$0xff pattern:$0x75643120] %v2859_v51  ;;  %v4195_v51 = vld [vmem:[%s7050_s7 + $0x68] sm:$0xff] }
 0x64a   :  { %v3057_v13 = vld [vmem:[#allocation1 + $0x31] ss:$2 sm:$0xff]  ;;  %3060 = vst.sshfl [vmem:[#allocation1 + $0x10] sm:$0xff pattern:$0x75643120] %v3004_v54  ;;  %3563 = vmatpush.bf16.msrb.mxu1 %v4195_v51 }
 0x64b   :  { %3064 = vst.sshfl [vmem:[#allocation1 + $0x30] sm:$0xff pattern:$0x75643120] %v3005_v0  ;;  %v3146_v29 = vld [vmem:[#allocation3 + $0x60] sm:$0xff] }
 0x64c   :  { %v3048_v12 = vld [vmem:[#allocation1 + $0x1] ss:$2 sm:$0xff]  ;;  %3045 = vst.msk [vmem:[#allocation3 + $0x90] sm:$0xff] %vm101_vm9, %v3036_v63  ;;  %v4502_v11 = vpack.i.bf16 %v3146_v29, %v3122_v22  ;;  %v4201_v63 = vld [vmem:[%s7050_s7 + $0x98] sm:$0xff] }
 0x64d   :  { %3058 = vst.sshfl [vmem:[#allocation1] sm:$0xff pattern:$0x75643120] %v2862_v41  ;;  %v3147_v61 = vld [vmem:[#allocation3 + $0x70] sm:$0xff]  ;;  %v3138_v54 = vld [vmem:[#allocation3 + $0xa2] sm:$0xff] }
 0x64e   :  { %v4507_v15 = vpack.i.bf16 %v3147_v61, %v3146_v29  ;;  %4503 = vrot.lane.b32.xlu2 %v4502_v11, %s4553_s0  ;;  %v3125_v46 = vld [vmem:[#allocation3 + $0x80] sm:$0xff]  ;;  %v3133_v41 = vld [vmem:[#allocation3 + $0xd0] sm:$0xff]  ;;  %3564 = vmatpush.bf16.msrb.mxu1 %v4194_v44  ;;  %v4512_v0 = vpack.i.bf16 %v3139_v30, %v3138_v54 }
 0x64f   :  { %v4517_v56 = vpack.i.bf16 %v3125_v46, %v3147_v61  ;;  %v4497_v4 = vpack.i.bf16 %v3133_v41, %v3132_v52  ;;  %v4215_v41 = vld [vmem:[%s7050_s7 + $0x108] sm:$0xff] }
 0x650   :  { %v3054_v38 = vld [vmem:[#allocation1 + $0x21] ss:$2 sm:$0xff]  ;;  %4508 = vrot.lane.b32.xlu0 %v4507_v15, %s4553_s0 }
 0x651   :  { %v3061_v33 = vld [vmem:[#allocation1 + $0x11] ss:$2 sm:$0xff]  ;;  %3062 = vst.sshfl [vmem:[#allocation1 + $0x20] sm:$0xff pattern:$0x75643120] %v2863_v49  ;;  %4498 = vrot.lane.b32.xlu1 %v4497_v4, %s4553_s0 }
 0x652   :  { %v3065_v19 = vld [vmem:[#allocation1 + $0x31] ss:$2 sm:$0xff]  ;;  %3068 = vst.sshfl [vmem:[#allocation1 + $0x10] sm:$0xff pattern:$0x75643120] %v3006_v57 }
 0x653   :  { %3072 = vst.sshfl [vmem:[#allocation1 + $0x30] sm:$0xff pattern:$0x75643120] %v3007_v37  ;;  %v4193_v49 = vld [vmem:[%s7050_s7 + $0x58] sm:$0xff]  ;;  %v4192_v57 = vld [vmem:[%s7050_s7 + $0x50] sm:$0xff]  ;;  %v4191_v37 = vld [vmem:[%s7050_s7 + $0x48] sm:$0xff] }
 0x654   :  { %v3059_v16 = vld [vmem:[#allocation1 + $0x1] ss:$2 sm:$0xff]  ;;  %3565 = vmatpush.bf16.msrb.mxu1 %v4193_v49  ;;  %v3149_v48 = vld [vmem:[#allocation3 + $0x90] sm:$0xff] }
 0x655   :  { %3066 = vst.sshfl [vmem:[#allocation1] sm:$0xff pattern:$0x75643120] %v2866_v59  ;;  %v4527_v59 = vpack.i.bf16 %v3149_v48, %v3125_v46  ;;  %v4199_v46 = vld [vmem:[%s7050_s7 + $0x88] sm:$0xff] }
 0x656   :  { %4518 = vrot.lane.b32.xlu2 %v4517_v56, %s4553_s0  ;;  %v4209_v56 = vld [vmem:[%s7050_s7 + $0xd8] sm:$0xff]  ;;  %v3135_v48 = vld [vmem:[#allocation3 + $0x100] sm:$0xff] }
 0x658   :  { %v3063_v5 = vld [vmem:[#allocation1 + $0x21] ss:$2 sm:$0xff]  ;;  %4523 = vrot.lane.b32.xlu0 %v4522_v50, %s4553_s0  ;;  %3566 = vmatpush.bf16.msrb.mxu1 %v4192_v57 }
 0x659   :  { %v3069_v39 = vld [vmem:[#allocation1 + $0x11] ss:$2 sm:$0xff]  ;;  %3070 = vst.sshfl [vmem:[#allocation1 + $0x20] sm:$0xff pattern:$0x75643120] %v2867_v32  ;;  %4513 = vrot.lane.b32.xlu1 %v4512_v0, %s4553_s0  ;;  %v4198_v50 = vld [vmem:[%s7050_s7 + $0x80] sm:$0xff] }
 0x65a   :  { %v3073_v3 = vld [vmem:[#allocation1 + $0x31] ss:$2 sm:$0xff]  ;;  %3076 = vst.sshfl [vmem:[#allocation1 + $0x10] sm:$0xff pattern:$0x75643120] %v3008_v1  ;;  %v4203_v1 = vld [vmem:[%s7050_s7 + $0xa8] sm:$0xff] }
 0x65b   :  { %3080 = vst.sshfl [vmem:[#allocation1 + $0x30] sm:$0xff pattern:$0x75643120] %v3009_v25  ;;  %v4202_v25 = vld [vmem:[%s7050_s7 + $0xa0] sm:$0xff]  ;;  %v3134_v0 = vld [vmem:[#allocation3 + $0xf0] sm:$0xff] }
 0x65c   :  { %v3067_v23 = vld [vmem:[#allocation1 + $0x1] ss:$2 sm:$0xff]  ;;  %3567 = vmatpush.bf16.msrb.mxu1 %v4191_v37 }
 0x65d   :  { %3074 = vst.sshfl [vmem:[#allocation1] sm:$0xff pattern:$0x75643120] %v2870_v17  ;;  %v4204_v17 = vld [vmem:[%s7050_s7 + $0xb0] sm:$0xff] }
 0x65e   :  { %3082 = vst [vmem:[#allocation1] ss:$4 sm:$0xff] %v3048_v12  ;;  %3581 = vmatpush.bf16.msra.mxu2 %v4204_v17 }
 0x65f   :  { %3086 = vst [vmem:[#allocation1 + $0x2] ss:$4 sm:$0xff] %v3054_v38 }
 0x660   :  { %v3071_v18 = vld [vmem:[#allocation1 + $0x21] ss:$2 sm:$0xff]  ;;  %3568 = vmatpush.bf16.msrb.mxu1 %v4190_v58 }
 0x661   :  { %3078 = vst.sshfl [vmem:[#allocation1 + $0x20] sm:$0xff pattern:$0x75643120] %v2871_v43  ;;  %v3077_v42 = vld [vmem:[#allocation1 + $0x11] ss:$2 sm:$0xff]  ;;  %4528 = vrot.lane.b32.xlu1 %v4527_v59, %s4553_s0 }
 0x662   :  { %3091 = vst [vmem:[#allocation1 + $0x20] ss:$4 sm:$0xff] %v3059_v16  ;;  %v3081_v20 = vld [vmem:[#allocation1 + $0x31] ss:$2 sm:$0xff]  ;;  %3582 = vmatpush.bf16.msra.mxu2 %v4203_v1 }
 0x663   :  { %3095 = vst [vmem:[#allocation1 + $0x22] ss:$4 sm:$0xff] %v3063_v5  ;;  %v4213_v43 = vld [vmem:[%s7050_s7 + $0xf8] sm:$0xff] }
 0x664   :  { %v3075_v40 = vld [vmem:[#allocation1 + $0x1] ss:$2 sm:$0xff]  ;;  %4238 = vmatpush.bf16.msrb.mxu3 %v4213_v43  ;;  %3599 = vmatpush.bf16.msra.mxu1 %v4213_v43 }
 0x665   :  { %3084 = vst [vmem:[#allocation1 + $0x1] ss:$4 sm:$0xff] %v3051_v34  ;;  %v4211_v34 = vld [vmem:[%s7050_s7 + $0xe8] sm:$0xff] }
 0x666   :  { %3088 = vst [vmem:[#allocation1 + $0x3] ss:$4 sm:$0xff] %v3057_v13  ;;  %3583 = vmatpush.bf16.msra.mxu2 %v4202_v25  ;;  %v3118_v13 = vld [vmem:[#allocation3] sm:$0xff] }
 0x668   :  { %v3079_v35 = vld [vmem:[#allocation1 + $0x21] ss:$2 sm:$0xff]  ;;  %4239 = vmatpush.bf16.msrb.mxu3 %v4212_v2  ;;  %3600 = vmatpush.bf16.msra.mxu1 %v4212_v2 }
 0x669   :  { %3093 = vst [vmem:[#allocation1 + $0x21] ss:$4 sm:$0xff] %v3061_v33 }
 0x66a   :  { %3097 = vst [vmem:[#allocation1 + $0x23] ss:$4 sm:$0xff] %v3065_v19  ;;  %3584 = vmatpush.bf16.msra.mxu2 %v4201_v63 }
 0x66c   :  { %4240 = vmatpush.bf16.msrb.mxu3 %v4211_v34  ;;  %3601 = vmatpush.bf16.msra.mxu1 %v4211_v34 }
 0x66d   :  { %v3089_v6 = vld.sshfl [vmem:[#allocation1] sm:$0xff pattern:$0x73625140] }
 0x66e   :  { %3099 = vst [vmem:[#allocation1] ss:$4 sm:$0xff] %v3067_v23  ;;  %3585 = vmatpush.bf16.msra.mxu2 %v4200_v31 }
 0x66f   :  { %3101 = vst [vmem:[#allocation1 + $0x2] ss:$4 sm:$0xff] %v3071_v18 }
 0x670   :  { %3100 = vst [vmem:[#allocation1 + $0x1] ss:$4 sm:$0xff] %v3069_v39  ;;  %4241 = vmatpush.bf16.msrb.mxu3 %v4210_v60  ;;  %3602 = vmatpush.bf16.msra.mxu1 %v4210_v60 }
 0x671   :  { %v3098_v53 = vld.sshfl [vmem:[#allocation1 + $0x20] sm:$0xff pattern:$0x73625140]  ;;  %3102 = vst [vmem:[#allocation1 + $0x3] ss:$4 sm:$0xff] %v3073_v3 }
 0x672   :  { %3104 = vst [vmem:[#allocation1 + $0x20] ss:$4 sm:$0xff] %v3075_v40  ;;  %3586 = vmatpush.bf16.msra.mxu2 %v4199_v46  ;;  %v4536_v46 = vld [vmem:[%s7051_s8] ss:$0 sm:$0xff] }
 0x673   :  { %3106 = vst [vmem:[#allocation1 + $0x22] ss:$4 sm:$0xff] %v3079_v35 }
 0x674   :  { %3115 = vst.msk [vmem:[#allocation3 + $0x22] sm:$0xff] %vm101_vm9, %v3098_v53  ;;  %4242 = vmatpush.bf16.msrb.mxu3 %v4209_v56  ;;  %3603 = vmatpush.bf16.msra.mxu1 %v4209_v56  ;;  %v4207_v53 = vld [vmem:[%s7050_s7 + $0xc8] sm:$0xff] }
 0x675   :  { %3105 = vst [vmem:[#allocation1 + $0x21] ss:$4 sm:$0xff] %v3077_v42 }
 0x676   :  { %3107 = vst [vmem:[#allocation1 + $0x23] ss:$4 sm:$0xff] %v3081_v20  ;;  %3587 = vmatpush.bf16.msra.mxu2 %v4198_v50 }
 0x677   :  { %3114 = vst.msk [vmem:[#allocation3 + $0x12] sm:$0xff] %vm101_vm9, %v3089_v6  ;;  %v4208_v6 = vld [vmem:[%s7050_s7 + $0xd0] sm:$0xff] }
 0x678   :  { %v3103_v55 = vld.sshfl [vmem:[#allocation1] sm:$0xff pattern:$0x73625140]  ;;  %4243 = vmatpush.bf16.msrb.mxu3 %v4208_v6  ;;  %3604 = vmatpush.bf16.msra.mxu1 %v4208_v6 }
 0x679   :  { %3116 = vst.msk [vmem:[#allocation3 + $0x32] sm:$0xff] %vm101_vm9, %v3103_v55 }
 0x67b   :  { %v3120_v42 = vld [vmem:[#allocation3 + $0x20] sm:$0xff] }
 0x67c   :  { %4244 = vmatpush.bf16.msrb.mxu3 %v4207_v53  ;;  %3605 = vmatpush.bf16.msra.mxu1 %v4207_v53  ;;  %v3128_v51 = vld [vmem:[#allocation3 + $0x22] sm:$0xff] }
 0x67d   :  { %v3108_v32 = vld.sshfl [vmem:[#allocation1 + $0x20] sm:$0xff pattern:$0x73625140] }
 0x67e   :  { %3117 = vst.msk [vmem:[#allocation3 + $0x42] sm:$0xff] %vm101_vm9, %v3108_v32  ;;  %v6939_v19 = vld [vmem:[#allocation3 + $0x10] sm:$0xff] }
 0x67f   :  { %v6944_v18 = vld [vmem:[#allocation3 + $0x12] sm:$0xff] }
 0x680   :  { %v6949_v15 = vld [vmem:[#allocation3 + $0x30] sm:$0xff]  ;;  %4245 = vmatpush.bf16.msrb.mxu3 %v4206_v8  ;;  %3606 = vmatpush.bf16.msra.mxu1 %v4206_v8 }
 0x681   :  { %v3129_v14 = vld [vmem:[#allocation3 + $0x32] sm:$0xff] }
 0x685   :  { %v3145_v2 = vld [vmem:[#allocation3 + $0x40] sm:$0xff] }
 0x6a8   :  { %v4504_v12 = vpop.permute.xlu2 %4503 }
 0x6a9   :  { %v4506_v38 = vunpack.i.h.bf16 %v4504_v12  ;;  %v4505_v33 = vunpack.i.l.bf16 %v4504_v12  ;;  %v4494_v5 = vpop.permute.xlu0 %4493 }
 0x6aa   :  { %v4496_v3 = vunpack.i.h.bf16 %v4494_v5  ;;  %v4495_v23 = vunpack.i.l.bf16 %v4494_v5  ;;  %v3238_v5 = vpack.c.bf16 %v3128_v51, %v6944_v18 }
 0x6ab   :  { %v3218_v10 = vsel %vm101_vm9, %v3118_v13, %v4505_v33  ;;  %v3219_v16 = vsel %vm101_vm9, %v6939_v19, %v4506_v38 }
 0x6ac   :  { %v3234_v9 = vpack.c.bf16 %v3219_v16, %v3218_v10  ;;  %v3222_v28 = vsel %vm101_vm9, %v3126_v27, %v4495_v23  ;;  %v3223_v29 = vsel %vm101_vm9, %v6944_v18, %v4496_v3  ;;  %v3136_v10 = vld [vmem:[#allocation3 + $0x110] sm:$0xff]  ;;  %v3137_v16 = vld [vmem:[#allocation3 + $0x120] sm:$0xff] }
 0x6ad   :  { %v3235_v40 = vpack.c.bf16 %v3223_v29, %v3222_v28 }
 0x6ae   :  { %3550 = vmatmul.bf16.vlgmr.msra.gmra.mxu3 %v3234_v9 }
 0x6af   :  { %3569 = vmatmul.bf16.vlgmr.msrb.gmra.mxu1 %v3235_v40 }
 0x6b0   :  { %v4519_v39 = vpop.permute.xlu2 %4518  ;;  %3622 = vmatpush.bf16.msrb.mxu1 %v4217_v47 }
 0x6b1   :  { %v4521_v61 = vunpack.i.h.bf16 %v4519_v39  ;;  %v4520_v22 = vunpack.i.l.bf16 %v4519_v39  ;;  %v3153_v39 = vld [vmem:[#allocation3 + $0x42] sm:$0xff] }
 0x6b2   :  { %v3243_v3 = vpack.c.bf16 %v3153_v39, %v3129_v14 }
 0x6b3   :  { %v3220_v11 = vsel %vm101_vm9, %v3120_v42, %v4520_v22  ;;  %v3221_v35 = vsel %vm101_vm9, %v6949_v15, %v4521_v61 }
 0x6b4   :  { %v3239_v20 = vpack.c.bf16 %v3221_v35, %v3220_v11  ;;  %3623 = vmatpush.bf16.msrb.mxu1 %v4216_v21 }
 0x6b8   :  { %3624 = vmatpush.bf16.msrb.mxu1 %v4215_v41 }
 0x6bc   :  { %3625 = vmatpush.bf16.msrb.mxu1 %v4214_v24 }
 0x6be   :  { %3555 = vmatmul.bf16.gmra.mxu3 %v3239_v20 }
 0x6c2   :  { %v4509_v49 = vpop.permute.xlu0 %4508 }
 0x6c3   :  { %v4499_v45 = vpop.permute.xlu1 %4498  ;;  %v4511_v57 = vunpack.i.h.bf16 %v4509_v49  ;;  %v4510_v26 = vunpack.i.l.bf16 %v4509_v49 }
 0x6c4   :  { %v4501_v7 = vunpack.i.h.bf16 %v4499_v45  ;;  %v4500_v36 = vunpack.i.l.bf16 %v4499_v45 }
 0x6c5   :  { %v3230_v37 = vsel %vm101_vm9, %v6939_v19, %v4510_v26  ;;  %v3231_v43 = vsel %vm101_vm9, %v3120_v42, %v4511_v57 }
 0x6c6   :  { %v3224_v52 = vsel %vm101_vm9, %v3128_v51, %v4500_v36  ;;  %v3225_v44 = vsel %vm101_vm9, %v3129_v14, %v4501_v7  ;;  %v3237_v13 = vpack.c.bf16 %v3231_v43, %v3230_v37  ;;  %v4557_v7 = vmov 32.0  }
 0x6c7   :  { %v3240_v4 = vpack.c.bf16 %v3225_v44, %v3224_v52  ;;  %4543 = vrcp.f32 %v4557_v7  ;;  %v4538_v7 = vld [vmem:[%s7053_s10] ss:$0 sm:$0xff] }
 0x6c9   :  { %3574 = vmatmul.bf16.gmra.mxu1 %v3240_v4 }
 0x6ca   :  { %v4524_v25 = vpop.permute.xlu0 %4523 }
 0x6cb   :  { %v4514_v62 = vpop.permute.xlu1 %4513  ;;  %v4526_v38 = vunpack.i.h.bf16 %v4524_v25  ;;  %v4525_v33 = vunpack.i.l.bf16 %v4524_v25 }
 0x6cc   :  { %v4516_v54 = vunpack.i.h.bf16 %v4514_v62  ;;  %v4515_v30 = vunpack.i.l.bf16 %v4514_v62 }
 0x6cd   :  { %v3228_v19 = vsel %vm101_vm9, %v3136_v10, %v4525_v33  ;;  %v3229_v9 = vsel %vm101_vm9, %v3137_v16, %v4526_v38  ;;  %v4544_v49 = vpop.eup %4543 }
 0x6ce   :  { %v3227_v59 = vsel %vm101_vm9, %v3135_v48, %v4516_v54  ;;  %v3226_v55 = vsel %vm101_vm9, %v3134_v0, %v4515_v30  ;;  %v3241_v27 = vpack.c.bf16 %v3229_v9, %v3228_v19 }
 0x6cf   :  { %v3236_v32 = vpack.c.bf16 %v3227_v59, %v3226_v55 }
 0x6d1   :  { %3588 = vmatmul.bf16.vlgmr.msra.gmra.mxu2 %v3236_v32  ;;  %v3649_v32 = vmul.f32 32.0, %v4544_v49 }
 0x6d3   :  { %v4529_v17 = vpop.permute.xlu1 %4528 }
 0x6d4   :  { %v4531_v1 = vunpack.i.h.bf16 %v4529_v17  ;;  %v4530_v58 = vunpack.i.l.bf16 %v4529_v17 }
 0x6d6   :  { %v3233_v63 = vsel %vm101_vm9, %v3145_v2, %v4531_v1  ;;  %v3232_v34 = vsel %vm101_vm9, %v6949_v15, %v4530_v58  ;;  %v3650_v1 = vsub.f32 1.0, %v3649_v32 }
 0x6d7   :  { %v3242_v12 = vpack.c.bf16 %v3233_v63, %v3232_v34 }
 0x6d8   :  { %v3651_v2 = vmul.f32 %v4544_v49, %v3650_v1 }
 0x6d9   :  { %3612 = vmatmul.bf16.vlgmr.msrb.gmra.mxu3 %v3242_v12  ;;  %3607 = vmatmul.bf16.vlgmr.msra.gmra.mxu1 %v3237_v13 }
 0x6da   :  { %v3652_v13 = vadd.f32 %v4544_v49, %v3651_v2 }
 0x6e1   :  { %3593 = vmatmul.bf16.gmra.mxu2 %v3241_v27 }
 0x6e9   :  { %4161 = vmatmul.msk.bf16.vlgmr.msrb.gmra.mxu1 %vm101_vm9, %v3238_v5 }
 0x6f9   :  { %4162 = vmatmul.msk.bf16.gmra.mxu1 %vm101_vm9, %v3243_v3  ;;  %vm3653_vm9 = vweird.f32 %v4544_v49 }
 0x6fa   :  { %v3654_v33 = vsel %vm3653_vm9, %v4544_v49, %v3652_v13 }
 0x72c   :  { %v3570_v23 = vpop.f32.mrf.mxu1 }
 0x731   :  { %v3551_v61 = vpop.f32.mrf.mxu3 }
 0x732   :  { %v3552_v53 = vadd.f32 %v4536_v46, %v3551_v61 }
 0x734   :  { %v3572_v28 = vpop.f32.mrf.mxu1  ;;  %v3571_v36 = vadd.f32 %v3570_v23, %v3552_v53 }
 0x739   :  { %v3553_v40 = vpop.f32.mrf.mxu3 }
 0x73a   :  { %v3554_v50 = vadd.f32 %v4536_v46, %v3553_v40 }
 0x73c   :  { %v3573_v47 = vadd.f32 %v3572_v28, %v3554_v50 }
 0x741   :  { %v3556_v11 = vpop.f32.mrf.mxu3 }
 0x742   :  { %v3557_v6 = vadd.f32 %v4536_v46, %v3556_v11 }
 0x746   :  { %v3575_v29 = vpop.f32.mrf.mxu1 }
 0x747   :  { %v3576_v21 = vadd.f32 %v3575_v29, %v3557_v6 }
 0x749   :  { %v3558_v60 = vpop.f32.mrf.mxu3 }
 0x74a   :  { %v3559_v45 = vadd.f32 %v4536_v46, %v3558_v60 }
 0x74e   :  { %v3577_v22 = vpop.f32.mrf.mxu1 }
 0x74f   :  { %v3578_v4 = vadd.f32 %v3577_v22, %v3559_v45 }
 0x754   :  { %v3589_v15 = vpop.f32.mrf.mxu2 }
 0x755   :  { %v3590_v41 = vadd.f32 %v3589_v15, %v3571_v36 }
 0x756   :  { %v3608_v42 = vpop.f32.mrf.mxu1 }
 0x757   :  { %v3609_v62 = vadd.f32 %v3608_v42, %v3590_v41 }
 0x75c   :  { %v3591_v20 = vpop.f32.mrf.mxu2  ;;  %v3613_v8 = vpop.f32.mrf.mxu3 }
 0x75d   :  { %v3592_v51 = vadd.f32 %v3591_v20, %v3573_v47 }
 0x75e   :  { %v3610_v35 = vpop.f32.mrf.mxu1 }
 0x75f   :  { %v3611_v24 = vadd.f32 %v3610_v35, %v3592_v51 }
 0x764   :  { %v3594_v18 = vpop.f32.mrf.mxu2  ;;  %v3615_v55 = vpop.f32.mrf.mxu3 }
 0x765   :  { %v3595_v14 = vadd.f32 %v3594_v18, %v3576_v21 }
 0x766   :  { %v3627_v31 = vpop.f32.mrf.mxu1 }
 0x767   :  { %v3614_v0 = vadd.f32 %v3613_v8, %v3595_v14  ;;  %v3628_v48 = vadd.f32 %v3627_v31, %v3609_v62  ;;  %v4537_v8 = vld [vmem:[%s7052_s9] ss:$0 sm:$0xff] }
 0x768   :  { %v3743_v14 = vld [vmem:[%s7054_s11] sm:$0xff] }
 0x769   :  { %v3749_v49 = vrot.slane %v3743_v14, 3  ;;  %v3751_v1 = vrot.slane %v3743_v14, 5 }
 0x76c   :  { %v3596_v52 = vpop.f32.mrf.mxu2 }
 0x76d   :  { %v3597_v54 = vadd.f32 %v3596_v52, %v3578_v4  ;;  %v3747_v4 = vrot.slane %v3743_v14, 1 }
 0x76e   :  { %v3629_v56 = vpop.f32.mrf.mxu1 }
 0x76f   :  { %v3630_v30 = vadd.f32 %v3629_v56, %v3611_v24  ;;  %v3616_v26 = vadd.f32 %v3615_v55, %v3597_v54  ;;  %v3748_v24 = vrot.slane %v3743_v14, 2  ;;  %v3761_v54 = vperm.slane %v3743_v14, 0 }
 0x770   :  { %v3750_v55 = vrot.slane %v3743_v14, 4 }
 0x771   :  { %v3639_v57 = vadd.f32 %v3630_v30, %v3628_v48  ;;  %v3763_v32 = vperm.slane %v3748_v24, 0 }
 0x772   :  { %v3765_v13 = vperm.slane %v3750_v55, 0 }
 0x776   :  { %v3632_v44 = vpop.f32.mrf.mxu1 }
 0x777   :  { %v3633_v59 = vadd.f32 %v3632_v44, %v3614_v0 }
 0x779   :  { %v3640_v37 = vadd.f32 %v3639_v57, %v3633_v59 }
 0x77e   :  { %v3634_v17 = vpop.f32.mrf.mxu1 }
 0x77f   :  { %v3635_v43 = vadd.f32 %v3634_v17, %v3616_v26  ;;  %v3764_v17 = vperm.slane %v3749_v49, 0 }
 0x781   :  { %v3641_v58 = vadd.f32 %v3640_v37, %v3635_v43 }
 0x783   :  { %v3642_v25 = vrot.slane %v3641_v58, 4 }
 0x785   :  { %v3643_v63 = vadd.f32 %v3642_v25, %v3641_v58  ;;  %v3752_v58 = vrot.slane %v3743_v14, 6 }
 0x787   :  { %v3644_v34 = vrot.slane %v3643_v63, 2 }
 0x789   :  { %v3645_v12 = vadd.f32 %v3644_v34, %v3643_v63 }
 0x78b   :  { %v3646_v38 = vrot.slane %v3645_v12, 1 }
 0x78d   :  { %v3647_v10 = vadd.f32 %v3646_v38, %v3645_v12 }
 0x78f   :  { %v3655_v16 = vmul.f32 %v3654_v33, %v3647_v10  ;;  %v3753_v10 = vrot.slane %v3743_v14, 7 }
 0x791   :  { %v3656_v19 = vsub.f32 %v3628_v48, %v3655_v16  ;;  %v3657_v9 = vsub.f32 %v3630_v30, %v3655_v16  ;;  %v3658_v27 = vsub.f32 %v3633_v59, %v3655_v16  ;;  %v3659_v5 = vsub.f32 %v3635_v43, %v3655_v16 }
 0x792   :  { %v3762_v48 = vperm.slane %v3747_v4, 0 }
 0x793   :  { %v3660_v39 = vmul.f32 %v3656_v19, %v3656_v19  ;;  %v3661_v3 = vmul.f32 %v3657_v9, %v3657_v9  ;;  %v3662_v23 = vmul.f32 %v3658_v27, %v3658_v27  ;;  %v3663_v29 = vmul.f32 %v3659_v5, %v3659_v5 }
 0x795   :  { %v3664_v28 = vadd.f32 %v3661_v3, %v3660_v39 }
 0x797   :  { %v3665_v61 = vadd.f32 %v3664_v28, %v3662_v23  ;;  %v3767_v23 = vperm.slane %v3752_v58, 0 }
 0x799   :  { %v3666_v22 = vadd.f32 %v3665_v61, %v3663_v29  ;;  %v3744_v61 = vld [vmem:[%s7054_s11 + $0x8] sm:$0xff] }
 0x79a   :  { %v3758_v4 = vrot.slane %v3744_v61, 5 }
 0x79b   :  { %v3667_v40 = vrot.slane %v3666_v22, 4 }
 0x79d   :  { %v3668_v42 = vadd.f32 %v3667_v40, %v3666_v22  ;;  %v3754_v22 = vrot.slane %v3744_v61, 1 }
 0x79f   :  { %v3669_v15 = vrot.slane %v3668_v42, 2 }
 0x7a1   :  { %v3670_v11 = vadd.f32 %v3669_v15, %v3668_v42  ;;  %v3768_v15 = vperm.slane %v3753_v10, 0 }
 0x7a3   :  { %v3671_v35 = vrot.slane %v3670_v11, 1 }
 0x7a5   :  { %v3672_v20 = vadd.f32 %v3671_v35, %v3670_v11 }
 0x7a7   :  { %v3673_v31 = vmul.f32 %v3672_v20, %v3654_v33 }
 0x7a9   :  { %v3674_v60 = vadd.f32 1e-05, %v3673_v31 }
 0x7ab   :  { %4545 = vrsqrt.f32 %v3674_v60  ;;  %vm3681_vm2 = vweird.f32 %v3674_v60 }
 0x7b1   :  { %v4546_v18 = vpop.eup %4545 }
 0x7b2   :  { %v3676_v46 = vmul.f32 %v4546_v18, %v3674_v60  ;;  %vm3682_vm0 = vweird.f32 %v4546_v18  ;;  %v3755_v60 = vrot.slane %v3744_v61, 2 }
 0x7b3   :  { %vm3683_vm3 = vmor %vm3681_vm2, %vm3682_vm0 }
 0x7b4   :  { %v3677_v56 = vmul.f32 %v4546_v18, %v3676_v46  ;;  %v3769_v46 = vperm.slane %v3744_v61, 0  ;;  %v3771_v14 = vperm.slane %v3755_v60, 0 }
 0x7b6   :  { %v3678_v50 = vmul.f32 0.5, %v3677_v56 }
 0x7b8   :  { %v3679_v6 = vsub.f32 1.5, %v3678_v50 }
 0x7ba   :  { %v3680_v53 = vmul.f32 %v4546_v18, %v3679_v6  ;;  %v3756_v6 = vrot.slane %v3744_v61, 3 }
 0x7bc   :  { %v3684_v47 = vsel %vm3683_vm3, %v4546_v18, %v3680_v53 }
 0x7bd   :  { %v3685_v21 = vmul.f32 %v3684_v47, %v3656_v19  ;;  %v3686_v45 = vmul.f32 %v3684_v47, %v3657_v9  ;;  %v3687_v52 = vmul.f32 %v3684_v47, %v3658_v27  ;;  %v3688_v25 = vmul.f32 %v3684_v47, %v3659_v5 }
 0x7be   :  { %v3766_v27 = vperm.slane %v3751_v1, 0  ;;  %v3770_v47 = vperm.slane %v3754_v22, 0 }
 0x7bf   :  { %v3692_v36 = vmul.f32 %v4537_v8, %v3685_v21  ;;  %v3693_v51 = vmul.f32 %v4537_v8, %v3686_v45  ;;  %v3694_v30 = vmul.f32 %v4537_v8, %v3687_v52  ;;  %v3695_v39 = vmul.f32 %v4537_v8, %v3688_v25 }
 0x7c1   :  { %v3699_v44 = vadd.f32 %v4538_v7, %v3692_v36  ;;  %v3700_v41 = vadd.f32 %v4538_v7, %v3693_v51  ;;  %v3701_v2 = vadd.f32 %v4538_v7, %v3694_v30  ;;  %v3702_v20 = vadd.f32 %v4538_v7, %v3695_v39 }
 0x7c2   :  { %v3757_v51 = vrot.slane %v3744_v61, 4 }
 0x7c3   :  { %vm3703_vm4 = vcmp.gt.f32.partialorder %v3699_v44, 0.0  ;;  %v3707_v62 = vmul.f32 0.01, %v3699_v44  ;;  %v3708_v0 = vmul.f32 0.01, %v3700_v41  ;;  %vm3704_vm5 = vcmp.gt.f32.partialorder %v3700_v41, 0.0 }
 0x7c4   :  { %v3709_v3 = vmul.f32 0.01, %v3701_v2  ;;  %vm3705_vm7 = vcmp.gt.f32.partialorder %v3701_v2, 0.0  ;;  %v3710_v36 = vmul.f32 0.01, %v3702_v20  ;;  %vm3706_vm8 = vcmp.gt.f32.partialorder %v3702_v20, 0.0 }
 0x7c5   :  { %v3711_v59 = vsel %vm3703_vm4, %v3699_v44, %v3707_v62  ;;  %v3712_v63 = vsel %vm3704_vm5, %v3700_v41, %v3708_v0  ;;  %v3772_v62 = vperm.slane %v3756_v6, 0  ;;  %v3773_v55 = vperm.slane %v3757_v51, 0 }
 0x7c6   :  { %v3719_v57 = vrot.slane %v3711_v59, 2  ;;  %v3720_v26 = vrot.slane %v3711_v59, 4  ;;  %v3721_v37 = vrot.slane %v3711_v59, 6  ;;  %v3793_v43 = vmul.f32 %v3761_v54, %v3711_v59 }
 0x7c7   :  { %v3722_v16 = vrot.slane %v3712_v63, 2  ;;  %v3723_v28 = vrot.slane %v3712_v63, 4  ;;  %v3797_v5 = vmul.f32 %v3765_v13, %v3712_v63  ;;  %v3724_v42 = vrot.slane %v3712_v63, 6 }
 0x7c8   :  { %v3794_v34 = vmul.f32 %v3762_v48, %v3719_v57  ;;  %v3795_v12 = vmul.f32 %v3763_v32, %v3720_v26  ;;  %v3810_v38 = vsel %vm3809_vm1, %v3793_v43, 0.0  ;;  %v3796_v19 = vmul.f32 %v3764_v17, %v3721_v37 }
 0x7c9   :  { %v3798_v11 = vmul.f32 %v3766_v27, %v3722_v16  ;;  %v3713_v31 = vsel %vm3705_vm7, %v3701_v2, %v3709_v3  ;;  %v3799_v56 = vmul.f32 %v3767_v23, %v3723_v28  ;;  %v3817_v50 = vsel %vm3809_vm1, %v3797_v5, 0.0 }
 0x7ca   :  { %v3811_v33 = vsel %vm3809_vm1, %v3794_v34, 0.0  ;;  %v3813_v29 = vsel %vm3809_vm1, %v3795_v12, 0.0  ;;  %v3815_v35 = vsel %vm3809_vm1, %v3796_v19, 0.0  ;;  %v3725_v8 = vrot.slane %v3713_v31, 2 }
 0x7cb   :  { %v3812_v9 = vadd.f32 %v3811_v33, %v3810_v38  ;;  %v3800_v21 = vmul.f32 %v3768_v15, %v3724_v42  ;;  %v3819_v45 = vsel %vm3809_vm1, %v3798_v11, 0.0  ;;  %v3726_v7 = vrot.slane %v3713_v31, 4 }
 0x7cc   :  { %v3801_v44 = vmul.f32 %v3769_v46, %v3713_v31  ;;  %v3821_v41 = vsel %vm3809_vm1, %v3799_v56, 0.0  ;;  %v3727_v49 = vrot.slane %v3713_v31, 6  ;;  %v3802_v54 = vmul.f32 %v3770_v47, %v3725_v8 }
 0x7cd   :  { %v3814_v40 = vadd.f32 %v3813_v29, %v3812_v9  ;;  %v3823_v30 = vsel %vm3809_vm1, %v3800_v21, 0.0  ;;  %v3714_v0 = vsel %vm3706_vm8, %v3702_v20, %v3710_v36  ;;  %v3759_v59 = vrot.slane %v3744_v61, 6 }
 0x7ce   :  { %v3803_v32 = vmul.f32 %v3771_v14, %v3726_v7  ;;  %v3825_v57 = vsel %vm3809_vm1, %v3801_v44, 0.0  ;;  %v3760_v26 = vrot.slane %v3744_v61, 7  ;;  %v3728_v37 = vrot.slane %v3714_v0, 2 }
 0x7cf   :  { %v3816_v18 = vadd.f32 %v3815_v35, %v3814_v40  ;;  %v3774_v43 = vperm.slane %v3758_v4, 0  ;;  %v3804_v1 = vmul.f32 %v3772_v62, %v3727_v49  ;;  %v3827_v58 = vsel %vm3809_vm1, %v3802_v54, 0.0 }
 0x7d0   :  { %v3729_v2 = vrot.slane %v3714_v0, 4  ;;  %v3775_v63 = vperm.slane %v3759_v59, 0  ;;  %v3805_v34 = vmul.f32 %v3773_v55, %v3714_v0  ;;  %v3829_v13 = vsel %vm3809_vm1, %v3803_v32, 0.0 }
 0x7d1   :  { %v3818_v53 = vadd.f32 %v3817_v50, %v3816_v18  ;;  %v3730_v38 = vrot.slane %v3714_v0, 6  ;;  %v3776_v33 = vperm.slane %v3760_v26, 0  ;;  %v3806_v10 = vmul.f32 %v3774_v43, %v3728_v37 }
 0x7d2   :  { %v3831_v16 = vsel %vm3809_vm1, %v3804_v1, 0.0  ;;  %v3807_v9 = vmul.f32 %v3775_v63, %v3729_v2  ;;  %v3833_v27 = vsel %vm3809_vm1, %v3805_v34, 0.0  ;;  %v3845_v42 = vstv %s7055_s12 }
 0x7d3   :  { %v3820_v52 = vadd.f32 %v3819_v45, %v3818_v53  ;;  %v3808_v3 = vmul.f32 %v3776_v33, %v3730_v38  ;;  %v3835_v23 = vsel %vm3809_vm1, %v3806_v10, 0.0 }
 0x7d4   :  { %v3837_v5 = vsel %vm3809_vm1, %v3807_v9, 0.0 }
 0x7d5   :  { %v3822_v24 = vadd.f32 %v3821_v41, %v3820_v52  ;;  %v3839_v61 = vsel %vm3809_vm1, %v3808_v3, 0.0 }
 0x7d7   :  { %v3824_v48 = vadd.f32 %v3823_v30, %v3822_v24 }
 0x7d9   :  { %v3826_v17 = vadd.f32 %v3825_v57, %v3824_v48 }
 0x7db   :  { %v3828_v25 = vadd.f32 %v3827_v58, %v3826_v17 }
 0x7dd   :  { %v3830_v12 = vadd.f32 %v3829_v13, %v3828_v25 }
 0x7df   :  { %v3832_v19 = vadd.f32 %v3831_v16, %v3830_v12 }
 0x7e1   :  { %v3834_v39 = vadd.f32 %v3833_v27, %v3832_v19 }
 0x7e3   :  { %v3836_v28 = vadd.f32 %v3835_v23, %v3834_v39 }
 0x7e5   :  { %v3838_v29 = vadd.f32 %v3837_v5, %v3836_v28 }
 0x7e7   :  { %v3840_v22 = vadd.f32 %v3839_v61, %v3838_v29 }
 0x7e9   :  { %v3841_v40 = vsel %vm3809_vm1, %v3840_v22, 0.0 }
 0x7ea   :  { %3842 = vadd.xlane.f32.xlu2 %v3841_v40 }
 0x85d   :  { %v3843_v15 = vpop.xlane.xlu2 %3842 }
 0x85e   :  { %v3846_v11 = vadd.f32 %v3845_v42, %v3843_v15 }
 0x860   :  { %v4163_v35 = vmul.f32 -1.442695, %v3846_v11 }
 0x862   :  { %4547 = vpow2.f32 %v4163_v35 }
 0x868   :  { %v4548_v20 = vpop.eup %4547 }
 0x869   :  { %v3850_v31 = vadd.f32 1.0, %v4548_v20 }
 0x86b   :  { %4549 = vrcp.f32 %v3850_v31  ;;  %v3862_v56 = vand.u32 2147483648, %v3850_v31  ;;  %v3860_v6 = vand.u32 2147483647, %v3850_v31  ;;  %vm3856_vm6 = vweird.f32 %v3850_v31 }
 0x86d   :  { %v3863_v8 = vor.u32 1.1754944e-38, %v3862_v56  ;;  %vm3861_vm13 = vcmp.eq.f32.partialorder %v3860_v6, 8.507059e+37 }
 0x871   :  { %v4550_v60 = vpop.eup %4549 }
 0x872   :  { %v3852_v18 = vmul.f32 %v4550_v60, %v3850_v31  ;;  %vm3857_vm10 = vweird.f32 %v4550_v60 }
 0x873   :  { %vm3858_vm12 = vmor %vm3856_vm6, %vm3857_vm10 }
 0x874   :  { %v3853_v46 = vsub.f32 1.0, %v3852_v18 }
 0x876   :  { %v3854_v50 = vmul.f32 %v4550_v60, %v3853_v46 }
 0x878   :  { %v3855_v53 = vadd.f32 %v4550_v60, %v3854_v50 }
 0x87a   :  { %v3859_v47 = vsel %vm3858_vm12, %v4550_v60, %v3855_v53 }
 0x87b   :  { %v3864_v21 = vsel %vm3861_vm13, %v3863_v8, %v3859_v47 }
 0x87c   :  { %3867 = vst.msk [vmem:[%s7056_s13] sm:$0x3] %vm3866_vm11, %v3864_v21 }

</bundles_post_ra>
